<compile_context>
chip_gen: v7x
topology: tpu7x:2x2x1
jax: 0.10.0
libtpu: 0.0.40
codegen_flags: <defaults>
</compile_context>

<pallas_src>
import jax
import jax.numpy as jnp
from jax.experimental import pallas as pl
from jax.experimental.pallas import tpu as pltpu

# ---- hyperparameters implied by the module ----
N_CLASSES = 10                  # opt.n_classes
CHANNELS = 1                    # opt.channels
IMG_SIZE = 16                   # opt.img_size
IMG_FLAT = CHANNELS * IMG_SIZE * IMG_SIZE        # 256 (lane aligned: 2 * 128)
D_IN = N_CLASSES + IMG_FLAT                      # 266 (never materialized)
HIDDEN = 512
BATCH = 256                     # >= 2 grid steps so both v7x TensorCores get work
BM = 128                        # batch tile (rows per grid step)
OUT_LANES = 128                 # lane-dense output slab width (sliced to 1 outside)


def _leaky_relu(x, slope=0.2):
    return jnp.where(x > 0, x, slope * x)


def mlp_kernel(x_ref, lab_ref, w1i_ref, ew1_ref, b1_ref, w2_ref, b2_ref,
               w3_ref, b3_ref, w4_ref, b4_ref, out_ref):
    """Fused 4-layer MLP + LeakyReLU + Sigmoid on one BM-row batch tile.

    x_ref  : (BM, 256)  bf16  flattened image
    lab_ref: (BM, 1)    int32 class labels
    w1i_ref: (256, 512) bf16  image half of layer-1 weight
    ew1_ref: (10, 512)  bf16  emb_table @ (label half of layer-1 weight), pre-folded
    w2/w3  : (512, 512) bf16
    w4_ref : (1, 512)   f32   final weight as a row (VPU reduce, no N=1 MXU pass)
    b*     : f32 biases
    out_ref: (BM, 128)  f32   lane-dense slab; sigmoid(logit) broadcast across lanes
    """
    x = x_ref[...]                                                      # bf16

    # ---- layer 1: aligned K=256 MXU matmul + one-hot label contribution ----
    h = jnp.dot(x, w1i_ref[...], preferred_element_type=jnp.float32)    # (BM, 512) f32
    classes = jax.lax.broadcasted_iota(jnp.int32, (BM, N_CLASSES), 1)
    onehot = jnp.where(classes == lab_ref[...], 1.0, 0.0).astype(jnp.bfloat16)
    h = h + jnp.dot(onehot, ew1_ref[...], preferred_element_type=jnp.float32)
    h = _leaky_relu(h + b1_ref[...])

    # TODO(synk): nn.Dropout(0.4) is stochastic in train mode; identity here
    # (eval-mode semantics).

    # ---- layers 2 & 3: bf16 MXU matmuls, f32 accumulation / activations ----
    h = jnp.dot(h.astype(jnp.bfloat16), w2_ref[...],
                preferred_element_type=jnp.float32) + b2_ref[...]
    h = _leaky_relu(h)

    h = jnp.dot(h.astype(jnp.bfloat16), w3_ref[...],
                preferred_element_type=jnp.float32) + b3_ref[...]
    h = _leaky_relu(h)

    # ---- layer 4 (512 -> 1): VPU multiply + lane reduction, then sigmoid ----
    logit = jnp.sum(h * w4_ref[...], axis=-1, keepdims=True) + b4_ref[...]   # (BM, 1)
    sig = jax.nn.sigmoid(logit)
    out_ref[...] = jnp.broadcast_to(sig, out_ref.shape).astype(out_ref.dtype)


@jax.jit
def discriminator_forward(img, labels, params):
    """img: [B, C, H, W] float32, labels: [B] int32 -> validity [B, 1] float32."""
    B = img.shape[0]
    assert B % BM == 0, "batch must be a multiple of BM"

    img_flat = img.reshape(B, -1).astype(jnp.bfloat16)             # (B, 256)
    labels_2d = labels.reshape(B, 1).astype(jnp.int32)             # (B, 1)

    # Split layer-1 weight so the big matmul keeps a lane-aligned K=256, and fold
    # the 10x10 embedding table into the label half (exact: row selection commutes
    # with the matmul:  emb[labels] @ w1[256:] == (emb @ w1[256:])[labels]).
    w1_img = params["w1"][:IMG_FLAT].astype(jnp.bfloat16)                      # (256, 512)
    emb_w1 = (params["emb"] @ params["w1"][IMG_FLAT:]).astype(jnp.bfloat16)    # (10, 512)

    w2 = params["w2"].astype(jnp.bfloat16)
    w3 = params["w3"].astype(jnp.bfloat16)
    w4_row = params["w4"].reshape(1, HIDDEN)                       # (1, 512) f32
    b1, b2, b3, b4 = params["b1"], params["b2"], params["b3"], params["b4"]

    full2d = lambda shape: pl.BlockSpec(shape, lambda i: (0, 0))

    out_slab = pl.pallas_call(
        mlp_kernel,
        out_shape=jax.ShapeDtypeStruct((B, OUT_LANES), jnp.float32),
        grid_spec=pltpu.PrefetchScalarGridSpec(
            num_scalar_prefetch=0,
            grid=(B // BM,),
            in_specs=[
                pl.BlockSpec((BM, IMG_FLAT), lambda i: (i, 0)),    # img tile (bf16)
                pl.BlockSpec((BM, 1), lambda i: (i, 0)),           # labels tile
                full2d((IMG_FLAT, HIDDEN)),                        # w1 (image half)
                full2d((N_CLASSES, HIDDEN)),                       # emb @ w1 (label half)
                full2d((1, HIDDEN)),                               # b1
                full2d((HIDDEN, HIDDEN)),                          # w2
                full2d((1, HIDDEN)),                               # b2
                full2d((HIDDEN, HIDDEN)),                          # w3
                full2d((1, HIDDEN)),                               # b3
                full2d((1, HIDDEN)),                               # w4 row
                full2d((1, 1)),                                    # b4
            ],
            out_specs=pl.BlockSpec((BM, OUT_LANES), lambda i: (i, 0)),
        ),
        compiler_params=pltpu.CompilerParams(
            dimension_semantics=("parallel",),
        ),
    )(img_flat, labels_2d, w1_img, emb_w1, b1, w2, b2, w3, b3, w4_row, b4)

    return out_slab[:, :1]                                         # (B, 1)


def init_params(key):
    """Deterministic synthetic parameters (shapes match the PyTorch module), f32."""
    ks = jax.random.split(key, 9)
    scale = 0.02
    return {
        "emb": jax.random.normal(ks[0], (N_CLASSES, N_CLASSES), jnp.float32) * scale,
        "w1": jax.random.normal(ks[1], (D_IN, HIDDEN), jnp.float32) * scale,
        "b1": jax.random.normal(ks[2], (1, HIDDEN), jnp.float32) * scale,
        "w2": jax.random.normal(ks[3], (HIDDEN, HIDDEN), jnp.float32) * scale,
        "b2": jax.random.normal(ks[4], (1, HIDDEN), jnp.float32) * scale,
        "w3": jax.random.normal(ks[5], (HIDDEN, HIDDEN), jnp.float32) * scale,
        "b3": jax.random.normal(ks[6], (1, HIDDEN), jnp.float32) * scale,
        "w4": jax.random.normal(ks[7], (HIDDEN, 1), jnp.float32) * scale,
        "b4": jax.random.normal(ks[8], (1, 1), jnp.float32) * scale,
    }


def _reference(img, labels, params):
    """Pure-JAX f32 reference matching the PyTorch module (eval mode)."""
    B = img.shape[0]
    d_in = jnp.concatenate([img.reshape(B, -1), params["emb"][labels]], axis=-1)
    h = _leaky_relu(d_in @ params["w1"] + params["b1"])
    h = _leaky_relu(h @ params["w2"] + params["b2"])
    h = _leaky_relu(h @ params["w3"] + params["b3"])
    return jax.nn.sigmoid(h @ params["w4"] + params["b4"])


if __name__ == "__main__":
    key = jax.random.PRNGKey(0)
    k_img, k_lab, k_par = jax.random.split(key, 3)

    img = jax.random.normal(k_img, (BATCH, CHANNELS, IMG_SIZE, IMG_SIZE), jnp.float32)
    labels = jax.random.randint(k_lab, (BATCH,), 0, N_CLASSES, jnp.int32)
    params = init_params(k_par)

    out = discriminator_forward(img, labels, params)
    out = jax.block_until_ready(out)

    ref = _reference(img, labels, params)
    assert out.shape == (BATCH, 1), out.shape
    # bf16 matmul inputs (f32 accumulation) -> relaxed tolerance vs f32 reference.
    assert jnp.allclose(out, ref, atol=2e-2, rtol=0.0), "mismatch vs reference"

    print("KERNEL_OK")
</pallas_src>

<mosaic_0001>
module attributes {stable_mosaic.version = 11 : i64} {
  func.func @mlp_kernel(%arg0: i32, %arg1: memref<128x256xbf16, #tpu.memory_space<vmem>>, %arg2: memref<128x1xi32, #tpu.memory_space<vmem>>, %arg3: memref<256x512xbf16, #tpu.memory_space<vmem>>, %arg4: memref<10x512xbf16, #tpu.memory_space<vmem>>, %arg5: memref<1x512xf32, #tpu.memory_space<vmem>>, %arg6: memref<512x512xbf16, #tpu.memory_space<vmem>>, %arg7: memref<1x512xf32, #tpu.memory_space<vmem>>, %arg8: memref<512x512xbf16, #tpu.memory_space<vmem>>, %arg9: memref<1x512xf32, #tpu.memory_space<vmem>>, %arg10: memref<1x512xf32, #tpu.memory_space<vmem>>, %arg11: memref<1x1xf32, #tpu.memory_space<vmem>>, %arg12: memref<128x128xf32, #tpu.memory_space<vmem>>) attributes {dimension_semantics = [#tpu.dimension_semantics<parallel>], iteration_bounds = array<i64: 2>, scalar_prefetch = 0 : i64, scratch_operands = 0 : i64, tpu.core_type = #tpu.core_type<tc>, window_params = [{transform_indices = @transform_0, window_bounds = array<i64: 128, 256>}, {transform_indices = @transform_1, window_bounds = array<i64: 128, 1>}, {pipeline_mode = #tpu.pipeline_mode<synchronous>, transform_indices = @transform_2, window_bounds = array<i64: 256, 512>}, {pipeline_mode = #tpu.pipeline_mode<synchronous>, transform_indices = @transform_3, window_bounds = array<i64: 10, 512>}, {pipeline_mode = #tpu.pipeline_mode<synchronous>, transform_indices = @transform_4, window_bounds = array<i64: 1, 512>}, {pipeline_mode = #tpu.pipeline_mode<synchronous>, transform_indices = @transform_5, window_bounds = array<i64: 512, 512>}, {pipeline_mode = #tpu.pipeline_mode<synchronous>, transform_indices = @transform_6, window_bounds = array<i64: 1, 512>}, {pipeline_mode = #tpu.pipeline_mode<synchronous>, transform_indices = @transform_7, window_bounds = array<i64: 512, 512>}, {pipeline_mode = #tpu.pipeline_mode<synchronous>, transform_indices = @transform_8, window_bounds = array<i64: 1, 512>}, {pipeline_mode = #tpu.pipeline_mode<synchronous>, transform_indices = @transform_9, window_bounds = array<i64: 1, 512>}, {pipeline_mode = #tpu.pipeline_mode<synchronous>, transform_indices = @transform_10, window_bounds = array<i64: 1, 1>}, {transform_indices = @transform_11, window_bounds = array<i64: 128, 128>}]} {
    %c0 = arith.constant 0 : index
    %c0_0 = arith.constant 0 : index
    %0 = vector.load %arg1[%c0, %c0_0] : memref<128x256xbf16, #tpu.memory_space<vmem>>, vector<128x256xbf16>
    %c0_1 = arith.constant 0 : index
    %c0_2 = arith.constant 0 : index
    %1 = vector.load %arg3[%c0_1, %c0_2] : memref<256x512xbf16, #tpu.memory_space<vmem>>, vector<256x512xbf16>
    %cst = arith.constant dense<0.000000e+00> : vector<128x512xf32>
    %2 = tpu.matmul %0, %1, %cst {dimension_numbers = #tpu.dot_dimension_numbers<[1], [0], [0], [1], [0, 0, 1, 1], [], []>} : vector<128x256xbf16>, vector<256x512xbf16>, vector<128x512xf32> -> vector<128x512xf32>
    %3 = tpu.iota {dimensions = array<i32: 1>} : vector<128x10xi32>
    %c0_3 = arith.constant 0 : index
    %c0_4 = arith.constant 0 : index
    %4 = vector.load %arg2[%c0_3, %c0_4] : memref<128x1xi32, #tpu.memory_space<vmem>>, vector<128x1xi32>
    %5 = vector.broadcast %4 : vector<128x1xi32> to vector<128x10xi32>
    %6 = arith.cmpi eq, %3, %5 : vector<128x10xi32>
    %cst_5 = arith.constant 1.000000e+00 : f32
    %cst_6 = arith.constant 0.000000e+00 : f32
    %7 = vector.broadcast %cst_5 : f32 to vector<128x10xf32>
    %8 = vector.broadcast %cst_6 : f32 to vector<128x10xf32>
    %9 = arith.select %6, %7, %8 : vector<128x10xi1>, vector<128x10xf32>
    %10 = arith.truncf %9 : vector<128x10xf32> to vector<128x10xbf16>
    %c0_7 = arith.constant 0 : index
    %c0_8 = arith.constant 0 : index
    %11 = vector.load %arg4[%c0_7, %c0_8] : memref<10x512xbf16, #tpu.memory_space<vmem>>, vector<10x512xbf16>
    %cst_9 = arith.constant dense<0.000000e+00> : vector<128x512xf32>
    %12 = tpu.matmul %10, %11, %cst_9 {dimension_numbers = #tpu.dot_dimension_numbers<[1], [0], [0], [1], [0, 0, 1, 1], [], []>} : vector<128x10xbf16>, vector<10x512xbf16>, vector<128x512xf32> -> vector<128x512xf32>
    %13 = arith.addf %2, %12 : vector<128x512xf32>
    %c0_10 = arith.constant 0 : index
    %c0_11 = arith.constant 0 : index
    %14 = vector.load %arg5[%c0_10, %c0_11] : memref<1x512xf32, #tpu.memory_space<vmem>>, vector<1x512xf32>
    %15 = vector.broadcast %14 : vector<1x512xf32> to vector<128x512xf32>
    %16 = arith.addf %13, %15 : vector<128x512xf32>
    %cst_12 = arith.constant 0.000000e+00 : f32
    %17 = vector.broadcast %cst_12 : f32 to vector<128x512xf32>
    %18 = arith.cmpf ogt, %16, %17 : vector<128x512xf32>
    %cst_13 = arith.constant 2.000000e-01 : f32
    %19 = vector.broadcast %cst_13 : f32 to vector<128x512xf32>
    %20 = arith.mulf %19, %16 : vector<128x512xf32>
    %21 = arith.select %18, %16, %20 : vector<128x512xi1>, vector<128x512xf32>
    %22 = arith.truncf %21 : vector<128x512xf32> to vector<128x512xbf16>
    %c0_14 = arith.constant 0 : index
    %c0_15 = arith.constant 0 : index
    %23 = vector.load %arg6[%c0_14, %c0_15] : memref<512x512xbf16, #tpu.memory_space<vmem>>, vector<512x512xbf16>
    %cst_16 = arith.constant dense<0.000000e+00> : vector<128x512xf32>
    %24 = tpu.matmul %22, %23, %cst_16 {dimension_numbers = #tpu.dot_dimension_numbers<[1], [0], [0], [1], [0, 0, 1, 1], [], []>} : vector<128x512xbf16>, vector<512x512xbf16>, vector<128x512xf32> -> vector<128x512xf32>
    %c0_17 = arith.constant 0 : index
    %c0_18 = arith.constant 0 : index
    %25 = vector.load %arg7[%c0_17, %c0_18] : memref<1x512xf32, #tpu.memory_space<vmem>>, vector<1x512xf32>
    %26 = vector.broadcast %25 : vector<1x512xf32> to vector<128x512xf32>
    %27 = arith.addf %24, %26 : vector<128x512xf32>
    %cst_19 = arith.constant 0.000000e+00 : f32
    %28 = vector.broadcast %cst_19 : f32 to vector<128x512xf32>
    %29 = arith.cmpf ogt, %27, %28 : vector<128x512xf32>
    %cst_20 = arith.constant 2.000000e-01 : f32
    %30 = vector.broadcast %cst_20 : f32 to vector<128x512xf32>
    %31 = arith.mulf %30, %27 : vector<128x512xf32>
    %32 = arith.select %29, %27, %31 : vector<128x512xi1>, vector<128x512xf32>
    %33 = arith.truncf %32 : vector<128x512xf32> to vector<128x512xbf16>
    %c0_21 = arith.constant 0 : index
    %c0_22 = arith.constant 0 : index
    %34 = vector.load %arg8[%c0_21, %c0_22] : memref<512x512xbf16, #tpu.memory_space<vmem>>, vector<512x512xbf16>
    %cst_23 = arith.constant dense<0.000000e+00> : vector<128x512xf32>
    %35 = tpu.matmul %33, %34, %cst_23 {dimension_numbers = #tpu.dot_dimension_numbers<[1], [0], [0], [1], [0, 0, 1, 1], [], []>} : vector<128x512xbf16>, vector<512x512xbf16>, vector<128x512xf32> -> vector<128x512xf32>
    %c0_24 = arith.constant 0 : index
    %c0_25 = arith.constant 0 : index
    %36 = vector.load %arg9[%c0_24, %c0_25] : memref<1x512xf32, #tpu.memory_space<vmem>>, vector<1x512xf32>
    %37 = vector.broadcast %36 : vector<1x512xf32> to vector<128x512xf32>
    %38 = arith.addf %35, %37 : vector<128x512xf32>
    %cst_26 = arith.constant 0.000000e+00 : f32
    %39 = vector.broadcast %cst_26 : f32 to vector<128x512xf32>
    %40 = arith.cmpf ogt, %38, %39 : vector<128x512xf32>
    %cst_27 = arith.constant 2.000000e-01 : f32
    %41 = vector.broadcast %cst_27 : f32 to vector<128x512xf32>
    %42 = arith.mulf %41, %38 : vector<128x512xf32>
    %43 = arith.select %40, %38, %42 : vector<128x512xi1>, vector<128x512xf32>
    %c0_28 = arith.constant 0 : index
    %c0_29 = arith.constant 0 : index
    %44 = vector.load %arg10[%c0_28, %c0_29] : memref<1x512xf32, #tpu.memory_space<vmem>>, vector<1x512xf32>
    %45 = vector.broadcast %44 : vector<1x512xf32> to vector<128x512xf32>
    %46 = arith.mulf %43, %45 : vector<128x512xf32>
    %cst_30 = arith.constant dense<0.000000e+00> : vector<128xf32>
    %47 = vector.multi_reduction <add>, %46, %cst_30 [1] : vector<128x512xf32> to vector<128xf32>
    %48 = vector.shape_cast %47 : vector<128xf32> to vector<128x1xf32>
    %c0_31 = arith.constant 0 : index
    %c0_32 = arith.constant 0 : index
    %49 = vector.load %arg11[%c0_31, %c0_32] : memref<1x1xf32, #tpu.memory_space<vmem>>, vector<1x1xf32>
    %50 = vector.broadcast %49 : vector<1x1xf32> to vector<128x1xf32>
    %51 = arith.addf %48, %50 : vector<128x1xf32>
    %52 = arith.negf %51 : vector<128x1xf32>
    %53 = math.exp %52 : vector<128x1xf32>
    %cst_33 = arith.constant 1.000000e+00 : f32
    %54 = vector.broadcast %cst_33 : f32 to vector<128x1xf32>
    %55 = arith.addf %54, %53 : vector<128x1xf32>
    %56 = arith.divf %54, %55 : vector<128x1xf32>
    %57 = vector.shape_cast %56 : vector<128x1xf32> to vector<128x1xf32>
    %58 = vector.broadcast %57 : vector<128x1xf32> to vector<128x128xf32>
    %c0_34 = arith.constant 0 : index
    %c0_35 = arith.constant 0 : index
    %59 = vector.load %arg12[%c0_34, %c0_35] : memref<128x128xf32, #tpu.memory_space<vmem>>, vector<128x128xf32>
    tpu.vector_store %arg12[%c0_34, %c0_35], %58 {strides = array<i32>} : memref<128x128xf32, #tpu.memory_space<vmem>>, vector<128x128xf32>,
    return
  }
  func.func @transform_0(%arg0: i32) -> (i32, i32) {
    %c0_i32 = arith.constant 0 : i32
    %c0_i32_0 = arith.constant 0 : i32
    return %arg0, %c0_i32 : i32, i32
  }
  func.func @transform_1(%arg0: i32) -> (i32, i32) {
    %c0_i32 = arith.constant 0 : i32
    %c0_i32_0 = arith.constant 0 : i32
    return %arg0, %c0_i32 : i32, i32
  }
  func.func @transform_2(%arg0: i32) -> (i32, i32) {
    %c0_i32 = arith.constant 0 : i32
    %c0_i32_0 = arith.constant 0 : i32
    %c0_i32_1 = arith.constant 0 : i32
    return %c0_i32, %c0_i32_0 : i32, i32
  }
  func.func @transform_3(%arg0: i32) -> (i32, i32) {
    %c0_i32 = arith.constant 0 : i32
    %c0_i32_0 = arith.constant 0 : i32
    %c0_i32_1 = arith.constant 0 : i32
    return %c0_i32, %c0_i32_0 : i32, i32
  }
  func.func @transform_4(%arg0: i32) -> (i32, i32) {
    %c0_i32 = arith.constant 0 : i32
    %c0_i32_0 = arith.constant 0 : i32
    %c0_i32_1 = arith.constant 0 : i32
    return %c0_i32, %c0_i32_0 : i32, i32
  }
  func.func @transform_5(%arg0: i32) -> (i32, i32) {
    %c0_i32 = arith.constant 0 : i32
    %c0_i32_0 = arith.constant 0 : i32
    %c0_i32_1 = arith.constant 0 : i32
    return %c0_i32, %c0_i32_0 : i32, i32
  }
  func.func @transform_6(%arg0: i32) -> (i32, i32) {
    %c0_i32 = arith.constant 0 : i32
    %c0_i32_0 = arith.constant 0 : i32
    %c0_i32_1 = arith.constant 0 : i32
    return %c0_i32, %c0_i32_0 : i32, i32
  }
  func.func @transform_7(%arg0: i32) -> (i32, i32) {
    %c0_i32 = arith.constant 0 : i32
    %c0_i32_0 = arith.constant 0 : i32
    %c0_i32_1 = arith.constant 0 : i32
    return %c0_i32, %c0_i32_0 : i32, i32
  }
  func.func @transform_8(%arg0: i32) -> (i32, i32) {
    %c0_i32 = arith.constant 0 : i32
    %c0_i32_0 = arith.constant 0 : i32
    %c0_i32_1 = arith.constant 0 : i32
    return %c0_i32, %c0_i32_0 : i32, i32
  }
  func.func @transform_9(%arg0: i32) -> (i32, i32) {
    %c0_i32 = arith.constant 0 : i32
    %c0_i32_0 = arith.constant 0 : i32
    %c0_i32_1 = arith.constant 0 : i32
    return %c0_i32, %c0_i32_0 : i32, i32
  }
  func.func @transform_10(%arg0: i32) -> (i32, i32) {
    %c0_i32 = arith.constant 0 : i32
    %c0_i32_0 = arith.constant 0 : i32
    %c0_i32_1 = arith.constant 0 : i32
    return %c0_i32, %c0_i32_0 : i32, i32
  }
  func.func @transform_11(%arg0: i32) -> (i32, i32) {
    %c0_i32 = arith.constant 0 : i32
    %c0_i32_0 = arith.constant 0 : i32
    return %arg0, %c0_i32 : i32, i32
  }
}

</mosaic_0001>

<bundles_post_ra>
// kernel: discriminator_forward.1
= control target key start
LH: loop header
LB: loop body
LE: loop exit
PB: predicated region body
PF: predicated region fallthrough
CT: control target
= control target key end

     0   :  { %s6542_s19 = smov 0   ;;  %s9205_s0 = inlined_call_operand.vmem [shape: bf16[256,256], index: 0, kind: input, shape index: {}]   ;;  %s9206_s1 = inlined_call_operand.vmem [shape: s32[256,1], index: 1, kind: input, shape index: {}]   ;;  %s9207_s2 = inlined_call_operand.vmem [shape: bf16[256,512], index: 2, kind: input, shape index: {}]   ;;  %s9208_s3 = inlined_call_operand.vmem [shape: bf16[10,512], index: 3, kind: input, shape index: {}]   ;;  %s9209_s4 = inlined_call_operand.vmem [shape: f32[1,512], index: 4, kind: input, shape index: {}]   ;;  %s9210_s5 = inlined_call_operand.vmem [shape: bf16[512,512], index: 5, kind: input, shape index: {}]   ;;  %s9211_s6 = inlined_call_operand.vmem [shape: f32[1,512], index: 6, kind: input, shape index: {}]   ;;  %s9212_s7 = inlined_call_operand.vmem [shape: bf16[512,512], index: 7, kind: input, shape index: {}]   ;;  %s9213_s8 = inlined_call_operand.vmem [shape: f32[1,512], index: 8, kind: input, shape index: {}]   ;;  %s9214_s9 = inlined_call_operand.vmem [shape: f32[1,512], index: 9, kind: input, shape index: {}]   ;;  %s9215_s10 = inlined_call_operand.<no memory space> [shape: f32[1,1], index: 10, kind: input, shape index: {}]   ;;  %s9216_s11 = inlined_call_operand.vmem [shape: f32[256,128], index: 11, kind: output, shape index: {}]  }
   0x1   :  { %v16_v0 = vstv %s9215_s10 }
   0x2   :  { %17 = vst [vmem:[#allocation2] sm:$0x1] %v16_v0 }
   0x3 LB: > { %s5173_s20 = sadd.s32 4294967295, %s6475_s19   ;;  %p5177_p0 = scmp.ge.s32.totalorder %s6475_s19, 1  ;;  %s6475_s19 = sphi %s6542_s19, %s23_s19  }
   0x4   : > { %p352_p1 = scmp.lt.s32.totalorder %s6475_s19, 3 }
   0x6   : > { %p353_p2 = pnand %p5177_p0, %p352_p1 }
   0x8   : > { %356 = sbr.rel (%p353_p2) target bundleno = 1422 (0x58e), region = 64 }
   0xf   : > { %s5178_s21 = sshll.u32 %s5173_s20, 4  ;;  %v6477_v1 = vmov 0   ;;  %vm649_vm0 = vcmask 1044480   ;;  %v5895_v8 = vld [vmem:[%s9208_s3 + $0x4] ss:$16 sps:$4 sm:$0x1f]   ;;  %v498_v26 = vlaneseq }
  0x10   : > { %5894 = vset.pattern.permute.xlu1 %v6477_v1  ;;  %5893 = vset.pattern.permute.xlu0 %v6477_v1  ;;  %p399_p3 = scmp.lt.s32.totalorder %s5178_s21, 31  ;;  %v5897_v9 = vld [vmem:[%s9208_s3] ss:$16 sps:$4 sm:$0x1f]   ;;  %v5903_v15 = vld [vmem:[%s9207_s2 + $0x4] ss:$16 sps:$4 sm:$0xff]  }
  0x11   : > { %694 = vmatprep.mubr.bf16.mxu0 %v6477_v1  ;;  %807 = vmatprep.mubr.bf16.mxu1 %v6477_v1  ;;  %v5898_v10 = vld [vmem:[%s9208_s3 + $0xc] ss:$16 sps:$4 sm:$0x1f]   ;;  %v5900_v11 = vld [vmem:[%s9208_s3 + $0x8] ss:$16 sps:$4 sm:$0x1f]  }
  0x12   : > { %s9323_s21 = smov (!%p399_p3, %s5178_s21), 31  ;;  %5189 = vmatprep.subr.msk.bf16.mxu0 %vm649_vm0, %v5895_v8  ;;  %v651_v14 = vsel %vm649_vm0, %v5897_v9, 0  ;;  %5198 = vmatprep.subr.msk.bf16.mxu1 %vm649_vm0, %v5898_v10  ;;  %v657_v16 = vsel %vm649_vm0, %v5900_v11, 0  ;;  %v5906_v17 = vld [vmem:[%s9207_s2 + $0xc] ss:$16 sps:$4 sm:$0xff]   ;;  %v6607_v27 = vand.u32 127, %v498_v26 }
  0x13   : > { %s6554_s10 = sshll.u32 %s9323_s21, 3  ;;  %663 = vmatpush1.bf16.msra.mxu0 %v651_v14  ;;  %776 = vmatpush1.bf16.msra.mxu1 %v657_v16  ;;  %v5901_v31 = vld [vmem:[%s9207_s2] ss:$16 sps:$4 sm:$0xff]   ;;  %v6478_v32 = vmov 0.0   ;;  %vm624_vm3 = vcmask 80896  }
  0x14   : > { %s6560_s24 = scalar_lea.vmem %s9206_s1, %s6554_s10  ;;  %1288 = vmatprep.subr.bf16.mxu0 %v5903_v15  ;;  %1401 = vmatprep.subr.bf16.mxu1 %v5906_v17  ;;  %s6604_s21 = scalar_lea.vmem %s9205_s0, %s6554_s10  ;;  %v5904_v35 = vld [vmem:[%s9207_s2 + $0x8] ss:$16 sps:$4 sm:$0xff]   ;;  %v5909_v37 = vld [vmem:[%s9207_s2 + $0x24] ss:$16 sps:$4 sm:$0xff]   ;;  %v5912_v38 = vld [vmem:[%s9207_s2 + $0x2c] ss:$16 sps:$4 sm:$0xff]  }
  0x15   : > { %v502_v2 = vld [vmem:[%s6560_s24 + $0x10] sm:$0xff]  ;;  %v500_v3 = vld [vmem:[%s6560_s24] sm:$0xff]  ;;  %v503_v4 = vld [vmem:[%s6560_s24 + $0x18] sm:$0xff]  ;;  %s9184_s14 = scalar_lea.vmem %s9216_s11, %s6554_s10 }
  0x16   : > { %523 = vperm.xlu1 %5894, %v502_v2   ;;  %517 = vperm.xlu0 %5893, %v500_v3   ;;  %v501_v5 = vld [vmem:[%s6560_s24 + $0x8] sm:$0xff]  ;;  %v504_v7 = vld [vmem:[%s6560_s24 + $0x20] sm:$0xff]  ;;  %v507_v12 = vld [vmem:[%s6560_s24 + $0x38] sm:$0xff] }
  0x17   : > { %v505_v6 = vld [vmem:[%s6560_s24 + $0x28] sm:$0xff]  ;;  %v506_v13 = vld [vmem:[%s6560_s24 + $0x30] sm:$0xff]  ;;  %v508_v19 = vld [vmem:[%s6560_s24 + $0x40] sm:$0xff] }
  0x18   : > { %v509_v18 = vld [vmem:[%s6560_s24 + $0x48] sm:$0xff]  ;;  %v511_v20 = vld [vmem:[%s6560_s24 + $0x58] sm:$0xff]  ;;  %v510_v21 = vld [vmem:[%s6560_s24 + $0x50] sm:$0xff] }
  0x19   : > { %v513_v22 = vld [vmem:[%s6560_s24 + $0x68] sm:$0xff]  ;;  %v512_v23 = vld [vmem:[%s6560_s24 + $0x60] sm:$0xff]  ;;  %v515_v24 = vld [vmem:[%s6560_s24 + $0x78] sm:$0xff] }
  0x1a   : > { %526 = vperm.xlu1 %5894, %v503_v4   ;;  %520 = vperm.xlu0 %5893, %v501_v5   ;;  %v514_v25 = vld [vmem:[%s6560_s24 + $0x70] sm:$0xff]  ;;  %v5910_v41 = vld [vmem:[%s9207_s2 + $0x28] ss:$16 sps:$4 sm:$0xff]   ;;  %v5918_v43 = vld [vmem:[%s9207_s2 + $0x4c] ss:$16 sps:$4 sm:$0xff]  }
  0x1b   : > { %v5907_v40 = vld [vmem:[%s9207_s2 + $0x20] ss:$16 sps:$4 sm:$0xff]   ;;  %v5915_v42 = vld [vmem:[%s9207_s2 + $0x44] ss:$16 sps:$4 sm:$0xff]   ;;  %v5916_v49 = vld [vmem:[%s9207_s2 + $0x48] ss:$16 sps:$4 sm:$0xff]  }
  0x1c   : > { %v5913_v48 = vld [vmem:[%s9207_s2 + $0x40] ss:$16 sps:$4 sm:$0xff]   ;;  %v5921_v51 = vld [vmem:[%s9207_s2 + $0x64] ss:$16 sps:$4 sm:$0xff]   ;;  %v5924_v52 = vld [vmem:[%s9207_s2 + $0x6c] ss:$16 sps:$4 sm:$0xff]  }
  0x1d   : > { %v5919_v53 = vld [vmem:[%s9207_s2 + $0x60] ss:$16 sps:$4 sm:$0xff]   ;;  %v5922_v54 = vld [vmem:[%s9207_s2 + $0x68] ss:$16 sps:$4 sm:$0xff]   ;;  %v5927_v55 = vld [vmem:[%s9207_s2 + $0x84] ss:$16 sps:$4 sm:$0xff]  }
  0x1e   : > { %532 = vperm.xlu1 %5894, %v505_v6   ;;  %529 = vperm.xlu0 %5893, %v504_v7   ;;  %v5930_v56 = vld [vmem:[%s9207_s2 + $0x8c] ss:$16 sps:$4 sm:$0xff]   ;;  %v5925_v59 = vld [vmem:[%s9207_s2 + $0x80] ss:$16 sps:$4 sm:$0xff]   ;;  %v5928_v60 = vld [vmem:[%s9207_s2 + $0x88] ss:$16 sps:$4 sm:$0xff]  }
  0x1f   : > { %v5933_v61 = vld [vmem:[%s9207_s2 + $0xa4] ss:$16 sps:$4 sm:$0xff]   ;;  %v5936_v62 = vld [vmem:[%s9207_s2 + $0xac] ss:$16 sps:$4 sm:$0xff]   ;;  %v5931_v3 = vld [vmem:[%s9207_s2 + $0xa0] ss:$16 sps:$4 sm:$0xff]  }
  0x20   : > { %v5934_v4 = vld [vmem:[%s9207_s2 + $0xa8] ss:$16 sps:$4 sm:$0xff]   ;;  %v5939_v5 = vld [vmem:[%s9207_s2 + $0xc4] ss:$16 sps:$4 sm:$0xff]   ;;  %v5942_v6 = vld [vmem:[%s9207_s2 + $0xcc] ss:$16 sps:$4 sm:$0xff]  }
  0x21   : > { %v5937_v9 = vld [vmem:[%s9207_s2 + $0xc0] ss:$16 sps:$4 sm:$0xff]   ;;  %v5940_v10 = vld [vmem:[%s9207_s2 + $0xc8] ss:$16 sps:$4 sm:$0xff]   ;;  %v5945_v11 = vld [vmem:[%s9207_s2 + $0xe4] ss:$16 sps:$4 sm:$0xff]  }
  0x22   : > { %538 = vperm.xlu1 %5894, %v507_v12   ;;  %535 = vperm.xlu0 %5893, %v506_v13   ;;  %v5948_v12 = vld [vmem:[%s9207_s2 + $0xec] ss:$16 sps:$4 sm:$0xff]   ;;  %v5943_v16 = vld [vmem:[%s9207_s2 + $0xe0] ss:$16 sps:$4 sm:$0xff]   ;;  %v5946_v17 = vld [vmem:[%s9207_s2 + $0xe8] ss:$16 sps:$4 sm:$0xff]  }
  0x26   : > { %544 = vperm.xlu1 %5894, %v509_v18   ;;  %541 = vperm.xlu0 %5893, %v508_v19   ;;  %v5951_v18 = vld [vmem:[%s9207_s2 + $0x104] ss:$16 sps:$4 sm:$0xff]   ;;  %v5954_v19 = vld [vmem:[%s9207_s2 + $0x10c] ss:$16 sps:$4 sm:$0xff]  }
  0x2a   : > { %550 = vperm.xlu1 %5894, %v511_v20   ;;  %547 = vperm.xlu0 %5893, %v510_v21  }
  0x2e   : > { %556 = vperm.xlu1 %5894, %v513_v22   ;;  %553 = vperm.xlu0 %5893, %v512_v23  }
  0x32   : > { %562 = vperm.xlu1 %5894, %v515_v24   ;;  %559 = vperm.xlu0 %5893, %v514_v25   ;;  %v5949_v24 = vld [vmem:[%s9207_s2 + $0x100] ss:$16 sps:$4 sm:$0xff]   ;;  %v5952_v25 = vld [vmem:[%s9207_s2 + $0x108] ss:$16 sps:$4 sm:$0xff]  }
  0x95   : > { %v518_v28 = vpop.permute.xlu0 %517  ;;  %v524_v29 = vpop.permute.xlu1 %523 }
  0x96   : > { %vm564_vm1 = vcmp.eq.s32.totalorder %v6607_v27, %v518_v28  ;;  %vm566_vm4 = vcmp.eq.s32.totalorder %v6607_v27, %v524_v29  ;;  %v5957_v29 = vld [vmem:[%s9207_s2 + $0x124] ss:$16 sps:$4 sm:$0xff]  }
  0x97   : > { %v580_v33 = vsel %vm564_vm1, 1.0, %v6478_v32  ;;  %v582_v44 = vsel %vm566_vm4, 1.0, %v6478_v32 }
  0x99   : > { %v521_v30 = vpop.permute.xlu0 %520  ;;  %v527_v39 = vpop.permute.xlu1 %526 }
  0x9a   : > { %vm565_vm2 = vcmp.eq.s32.totalorder %v6607_v27, %v521_v30  ;;  %vm567_vm5 = vcmp.eq.s32.totalorder %v6607_v27, %v527_v39  ;;  %v5960_v30 = vld [vmem:[%s9207_s2 + $0x12c] ss:$16 sps:$4 sm:$0xff]  }
  0x9b   : > { %v581_v34 = vsel %vm565_vm2, 1.0, %v6478_v32  ;;  %v583_v45 = vsel %vm567_vm5, 1.0, %v6478_v32 }
  0x9c   : > { %v596_v36 = vpack.c.bf16 %v581_v34, %v580_v33  ;;  %v597_v50 = vpack.c.bf16 %v583_v45, %v582_v44  ;;  %v5958_v33 = vld [vmem:[%s9207_s2 + $0x128] ss:$16 sps:$4 sm:$0xff]   ;;  %v5963_v34 = vld [vmem:[%s9207_s2 + $0x144] ss:$16 sps:$4 sm:$0xff]   ;;  %v5972_v44 = vld [vmem:[%s9207_s2 + $0x16c] ss:$16 sps:$4 sm:$0xff]  }
  0x9d   : > { %v533_v46 = vpop.permute.xlu1 %532  ;;  %v530_v47 = vpop.permute.xlu0 %529  ;;  %v5967_v45 = vld [vmem:[%s9207_s2 + $0x160] ss:$16 sps:$4 sm:$0xff]  }
  0x9e   : > { %5190 = vmatmul.mubr.msk.bf16.vlgmr.msra.gmra.mrb[0].mxu0 %vm624_vm3, %v596_v36  ;;  %5199 = vmatmul.mubr.msk.bf16.vlgmr.msra.gmra.mrb[0].mxu1 %vm624_vm3, %v596_v36  ;;  %vm569_vm6 = vcmp.eq.s32.totalorder %v6607_v27, %v533_v46  ;;  %vm568_vm7 = vcmp.eq.s32.totalorder %v6607_v27, %v530_v47  ;;  %v5970_v46 = vld [vmem:[%s9207_s2 + $0x168] ss:$16 sps:$4 sm:$0xff]   ;;  %v5975_v47 = vld [vmem:[%s9207_s2 + $0x184] ss:$16 sps:$4 sm:$0xff]  }
  0x9f   : > { %1289 = vmatpush1.bf16.msra.mxu0 %v5901_v31  ;;  %1402 = vmatpush1.bf16.msra.mxu1 %v5904_v35  ;;  %v585_v57 = vsel %vm569_vm6, 1.0, %v6478_v32  ;;  %v584_v58 = vsel %vm568_vm7, 1.0, %v6478_v32  ;;  %v5955_v31 = vld [vmem:[%s9207_s2 + $0x120] ss:$16 sps:$4 sm:$0xff]   ;;  %v5966_v35 = vld [vmem:[%s9207_s2 + $0x14c] ss:$16 sps:$4 sm:$0xff]  }
  0xa0   : > { %1290 = vmatprep.subr.bf16.mxu0 %v5909_v37  ;;  %1403 = vmatprep.subr.bf16.mxu1 %v5912_v38  ;;  %v598_v2 = vpack.c.bf16 %v585_v57, %v584_v58  ;;  %v5984_v57 = vld [vmem:[%s9207_s2 + $0x1ac] ss:$16 sps:$4 sm:$0xff]   ;;  %v5979_v58 = vld [vmem:[%s9207_s2 + $0x1a0] ss:$16 sps:$4 sm:$0xff]  }
  0xa1   : > { %704 = vmatprep.mubr.bf16.mxu0 %v6477_v1  ;;  %817 = vmatprep.mubr.bf16.mxu1 %v6477_v1  ;;  %v539_v63 = vpop.permute.xlu1 %538  ;;  %v536_v0 = vpop.permute.xlu0 %535 }
  0xa2   : > { %vm571_vm8 = vcmp.eq.s32.totalorder %v6607_v27, %v539_v63  ;;  %vm570_vm9 = vcmp.eq.s32.totalorder %v6607_v27, %v536_v0  ;;  %v5985_v63 = vld [vmem:[%s9207_s2 + $0x1c0] ss:$16 sps:$4 sm:$0xff]   ;;  %v5988_v0 = vld [vmem:[%s9207_s2 + $0x1c8] ss:$16 sps:$4 sm:$0xff]  }
  0xa3   : > { %1291 = vmatpush1.bf16.msra.mxu0 %v5907_v40  ;;  %1404 = vmatpush1.bf16.msra.mxu1 %v5910_v41  ;;  %v587_v7 = vsel %vm571_vm8, 1.0, %v6478_v32  ;;  %v586_v8 = vsel %vm570_vm9, 1.0, %v6478_v32  ;;  %v5961_v40 = vld [vmem:[%s9207_s2 + $0x140] ss:$16 sps:$4 sm:$0xff]   ;;  %v5964_v41 = vld [vmem:[%s9207_s2 + $0x148] ss:$16 sps:$4 sm:$0xff]  }
  0xa4   : > { %1292 = vmatprep.subr.bf16.mxu0 %v5915_v42  ;;  %1405 = vmatprep.subr.bf16.mxu1 %v5918_v43  ;;  %v599_v15 = vpack.c.bf16 %v587_v7, %v586_v8  ;;  %v5969_v43 = vld [vmem:[%s9207_s2 + $0x164] ss:$16 sps:$4 sm:$0xff]   ;;  %v6026_v7 = vld [vmem:[%s9210_s5 + $0xc] ss:$16 sps:$4 sm:$0xff]   ;;  %v5997_v8 = vld [vmem:[%s6604_s21] ss:$8 sps:$4 sm:$0xff]  }
  0xa5   : > { %v545_v13 = vpop.permute.xlu1 %544  ;;  %v542_v14 = vpop.permute.xlu0 %541 }
  0xa6   : > { %5191 = vmatmul.mubr.msk.bf16.gmra.mrb[4].mxu0 %vm624_vm3, %v597_v50  ;;  %5200 = vmatmul.mubr.msk.bf16.gmra.mrb[4].mxu1 %vm624_vm3, %v597_v50  ;;  %vm573_vm10 = vcmp.eq.s32.totalorder %v6607_v27, %v545_v13  ;;  %vm572_vm11 = vcmp.eq.s32.totalorder %v6607_v27, %v542_v14  ;;  %v6032_v13 = vld [vmem:[%s9210_s5 + $0x2c] ss:$16 sps:$4 sm:$0xff]   ;;  %v6027_v14 = vld [vmem:[%s9210_s5 + $0x20] ss:$16 sps:$4 sm:$0xff]  }
  0xa7   : > { %1293 = vmatpush1.bf16.msra.mxu0 %v5913_v48  ;;  %1406 = vmatpush1.bf16.msra.mxu1 %v5916_v49  ;;  %v589_v20 = vsel %vm573_vm10, 1.0, %v6478_v32  ;;  %v588_v21 = vsel %vm572_vm11, 1.0, %v6478_v32  ;;  %v5978_v48 = vld [vmem:[%s9207_s2 + $0x18c] ss:$16 sps:$4 sm:$0xff]  }
  0xa8   : > { %1294 = vmatprep.subr.bf16.mxu0 %v5921_v51  ;;  %1407 = vmatprep.subr.bf16.mxu1 %v5924_v52  ;;  %v600_v28 = vpack.c.bf16 %v589_v20, %v588_v21  ;;  %v6033_v20 = vld [vmem:[%s9210_s5 + $0x40] ss:$16 sps:$4 sm:$0xff]   ;;  %v6036_v21 = vld [vmem:[%s9210_s5 + $0x48] ss:$16 sps:$4 sm:$0xff]  }
  0xa9   : > { %714 = vmatprep.mubr.bf16.mxu0 %v6477_v1  ;;  %827 = vmatprep.mubr.bf16.mxu1 %v6477_v1  ;;  %v551_v22 = vpop.permute.xlu1 %550  ;;  %v548_v23 = vpop.permute.xlu0 %547 }
  0xaa   : > { %vm575_vm12 = vcmp.eq.s32.totalorder %v6607_v27, %v551_v22  ;;  %vm574_vm13 = vcmp.eq.s32.totalorder %v6607_v27, %v548_v23  ;;  %v6041_v22 = vld [vmem:[%s9210_s5 + $0x64] ss:$16 sps:$4 sm:$0xff]   ;;  %v6044_v23 = vld [vmem:[%s9210_s5 + $0x6c] ss:$16 sps:$4 sm:$0xff]  }
  0xab   : > { %1295 = vmatpush1.bf16.msra.mxu0 %v5919_v53  ;;  %1408 = vmatpush1.bf16.msra.mxu1 %v5922_v54  ;;  %v591_v36 = vsel %vm575_vm12, 1.0, %v6478_v32  ;;  %v590_v37 = vsel %vm574_vm13, 1.0, %v6478_v32  ;;  %v5973_v53 = vld [vmem:[%s9207_s2 + $0x180] ss:$16 sps:$4 sm:$0xff]   ;;  %v5976_v54 = vld [vmem:[%s9207_s2 + $0x188] ss:$16 sps:$4 sm:$0xff]  }
  0xac   : > { %1296 = vmatprep.subr.bf16.mxu0 %v5927_v55  ;;  %1409 = vmatprep.subr.bf16.mxu1 %v5930_v56  ;;  %v601_v42 = vpack.c.bf16 %v591_v36, %v590_v37  ;;  %v5981_v56 = vld [vmem:[%s9207_s2 + $0x1a4] ss:$16 sps:$4 sm:$0xff]   ;;  %v6056_v36 = vld [vmem:[%s9210_s5 + $0xac] ss:$16 sps:$4 sm:$0xff]   ;;  %v6051_v37 = vld [vmem:[%s9210_s5 + $0xa0] ss:$16 sps:$4 sm:$0xff]  }
  0xad   : > { %v557_v38 = vpop.permute.xlu1 %556  ;;  %v554_v39 = vpop.permute.xlu0 %553 }
  0xae   : > { %5192 = vmatmul.mubr.msk.bf16.gmra.mrb[8].mxu0 %vm624_vm3, %v598_v2  ;;  %5201 = vmatmul.mubr.msk.bf16.gmra.mrb[8].mxu1 %vm624_vm3, %v598_v2  ;;  %vm577_vm14 = vcmp.eq.s32.totalorder %v6607_v27, %v557_v38  ;;  %vm576_vm15 = vcmp.eq.s32.totalorder %v6607_v27, %v554_v39  ;;  %v6054_v38 = vld [vmem:[%s9210_s5 + $0xa8] ss:$16 sps:$4 sm:$0xff]   ;;  %v6059_v39 = vld [vmem:[%s9210_s5 + $0xc4] ss:$16 sps:$4 sm:$0xff]  }
  0xaf   : > { %1297 = vmatpush1.bf16.msra.mxu0 %v5925_v59  ;;  %1410 = vmatpush1.bf16.msra.mxu1 %v5928_v60  ;;  %v593_v49 = vsel %vm577_vm14, 1.0, %v6478_v32  ;;  %v592_v50 = vsel %vm576_vm15, 1.0, %v6478_v32  ;;  %v5982_v59 = vld [vmem:[%s9207_s2 + $0x1a8] ss:$16 sps:$4 sm:$0xff]   ;;  %v5990_v60 = vld [vmem:[%s9207_s2 + $0x1cc] ss:$16 sps:$4 sm:$0xff]  }
  0xb0   : > { %1298 = vmatprep.subr.bf16.mxu0 %v5933_v61  ;;  %1411 = vmatprep.subr.bf16.mxu1 %v5936_v62  ;;  %v602_v55 = vpack.c.bf16 %v593_v49, %v592_v50  ;;  %v6071_v49 = vld [vmem:[%s9210_s5 + $0x104] ss:$16 sps:$4 sm:$0xff]   ;;  %v6074_v50 = vld [vmem:[%s9210_s5 + $0x10c] ss:$16 sps:$4 sm:$0xff]  }
  0xb1   : > { %724 = vmatprep.mubr.bf16.mxu0 %v6477_v1  ;;  %837 = vmatprep.mubr.bf16.mxu1 %v6477_v1  ;;  %v563_v51 = vpop.permute.xlu1 %562  ;;  %v560_v52 = vpop.permute.xlu0 %559 }
  0xb2   : > { %vm579_vm0 = vcmp.eq.s32.totalorder %v6607_v27, %v563_v51  ;;  %vm578_vm1 = vcmp.eq.s32.totalorder %v6607_v27, %v560_v52  ;;  %v5987_v27 = vld [vmem:[%s9207_s2 + $0x1c4] ss:$16 sps:$4 sm:$0xff]   ;;  %v6011_v51 = vld [vmem:[%s6604_s21 + $0x40] ss:$8 sps:$4 sm:$0xff]  }
  0xb3   : > { %1299 = vmatpush1.bf16.msra.mxu0 %v5931_v3  ;;  %1412 = vmatpush1.bf16.msra.mxu1 %v5934_v4  ;;  %v595_v61 = vsel %vm579_vm0, 1.0, %v6478_v32  ;;  %v594_v62 = vsel %vm578_vm1, 1.0, %v6478_v32  ;;  %v5993_v32 = vld [vmem:[%s9207_s2 + $0x1e4] ss:$16 sps:$4 sm:$0xff]   ;;  %v5991_v4 = vld [vmem:[%s9207_s2 + $0x1e0] ss:$16 sps:$4 sm:$0xff]  }
  0xb4   : > { %1300 = vmatprep.subr.bf16.mxu0 %v5939_v5  ;;  %1413 = vmatprep.subr.bf16.mxu1 %v5942_v6  ;;  %v603_v2 = vpack.c.bf16 %v595_v61, %v594_v62  ;;  %v5999_v3 = vld [vmem:[%s6604_s21 + $0x4] ss:$8 sps:$4 sm:$0xff]   ;;  %v5994_v5 = vld [vmem:[%s9207_s2 + $0x1e8] ss:$16 sps:$4 sm:$0xff]   ;;  %v6012_v52 = vld [vmem:[%s6604_s21 + $0x54] ss:$8 sps:$4 sm:$0xff]  }
  0xb5   : > { %v6023_v6 = vld [vmem:[%s9210_s5 + $0x4] ss:$16 sps:$4 sm:$0xff]   ;;  %v6081_v62 = vld [vmem:[%s9210_s5 + $0x140] ss:$16 sps:$4 sm:$0xff]  }
  0xb6   : > { %5193 = vmatmul.mubr.msk.bf16.gmra.mrb[12].mxu0 %vm624_vm3, %v599_v15  ;;  %5202 = vmatmul.mubr.msk.bf16.gmra.mrb[12].mxu1 %vm624_vm3, %v599_v15  ;;  %v6030_v15 = vld [vmem:[%s9210_s5 + $0x28] ss:$16 sps:$4 sm:$0xff]   ;;  %v6015_v61 = vld [vmem:[%s6604_s21 + $0x64] ss:$8 sps:$4 sm:$0xff]  }
  0xb7   : > { %1301 = vmatpush1.bf16.msra.mxu0 %v5937_v9  ;;  %1414 = vmatpush1.bf16.msra.mxu1 %v5940_v10  ;;  %v6000_v9 = vld [vmem:[%s6604_s21 + $0x14] ss:$8 sps:$4 sm:$0xff]   ;;  %v6021_v10 = vld [vmem:[%s9210_s5] ss:$16 sps:$4 sm:$0xff]  }
  0xb8   : > { %1302 = vmatprep.subr.bf16.mxu0 %v5945_v11  ;;  %1415 = vmatprep.subr.bf16.mxu1 %v5948_v12  ;;  %v6024_v11 = vld [vmem:[%s9210_s5 + $0x8] ss:$16 sps:$4 sm:$0xff]   ;;  %v6029_v12 = vld [vmem:[%s9210_s5 + $0x24] ss:$16 sps:$4 sm:$0xff]  }
  0xb9   : > { %734 = vmatprep.mubr.bf16.mxu0 %v6477_v1  ;;  %847 = vmatprep.mubr.bf16.mxu1 %v6477_v1 }
  0xbb   : > { %1303 = vmatpush1.bf16.msra.mxu0 %v5943_v16  ;;  %1416 = vmatpush1.bf16.msra.mxu1 %v5946_v17  ;;  %v6035_v16 = vld [vmem:[%s9210_s5 + $0x44] ss:$16 sps:$4 sm:$0xff]   ;;  %v6038_v17 = vld [vmem:[%s9210_s5 + $0x4c] ss:$16 sps:$4 sm:$0xff]  }
  0xbc   : > { %1304 = vmatprep.subr.bf16.mxu0 %v5951_v18  ;;  %1417 = vmatprep.subr.bf16.mxu1 %v5954_v19  ;;  %v6002_v18 = vld [vmem:[%s6604_s21 + $0x10] ss:$8 sps:$4 sm:$0xff]   ;;  %v6003_v19 = vld [vmem:[%s6604_s21 + $0x24] ss:$8 sps:$4 sm:$0xff]  }
  0xbe   : > { %5194 = vmatmul.mubr.msk.bf16.gmra.mrb[16].mxu0 %vm624_vm3, %v600_v28  ;;  %5203 = vmatmul.mubr.msk.bf16.gmra.mrb[16].mxu1 %vm624_vm3, %v600_v28  ;;  %v6047_v28 = vld [vmem:[%s9210_s5 + $0x84] ss:$16 sps:$4 sm:$0xff]  }
  0xbf   : > { %1305 = vmatpush1.bf16.msra.mxu0 %v5949_v24  ;;  %1418 = vmatpush1.bf16.msra.mxu1 %v5952_v25  ;;  %v6039_v24 = vld [vmem:[%s9210_s5 + $0x60] ss:$16 sps:$4 sm:$0xff]   ;;  %v6042_v25 = vld [vmem:[%s9210_s5 + $0x68] ss:$16 sps:$4 sm:$0xff]  }
  0xc0   : > { %1306 = vmatprep.subr.bf16.mxu0 %v5957_v29  ;;  %1419 = vmatprep.subr.bf16.mxu1 %v5960_v30  ;;  %v6050_v29 = vld [vmem:[%s9210_s5 + $0x8c] ss:$16 sps:$4 sm:$0xff]   ;;  %v6005_v30 = vld [vmem:[%s6604_s21 + $0x20] ss:$8 sps:$4 sm:$0xff]  }
  0xc1   : > { %744 = vmatprep.mubr.bf16.mxu0 %v6477_v1  ;;  %857 = vmatprep.mubr.bf16.mxu1 %v6477_v1 }
  0xc3   : > { %1307 = vmatpush1.bf16.msra.mxu0 %v5955_v31  ;;  %1420 = vmatpush1.bf16.msra.mxu1 %v5958_v33  ;;  %v6006_v31 = vld [vmem:[%s6604_s21 + $0x34] ss:$8 sps:$4 sm:$0xff]   ;;  %v6045_v33 = vld [vmem:[%s9210_s5 + $0x80] ss:$16 sps:$4 sm:$0xff]  }
  0xc4   : > { %1308 = vmatprep.subr.bf16.mxu0 %v5963_v34  ;;  %1421 = vmatprep.subr.bf16.mxu1 %v5966_v35  ;;  %v6048_v34 = vld [vmem:[%s9210_s5 + $0x88] ss:$16 sps:$4 sm:$0xff]   ;;  %v6053_v35 = vld [vmem:[%s9210_s5 + $0xa4] ss:$16 sps:$4 sm:$0xff]  }
  0xc6   : > { %5195 = vmatmul.mubr.msk.bf16.gmra.mrb[20].mxu0 %vm624_vm3, %v601_v42  ;;  %5204 = vmatmul.mubr.msk.bf16.gmra.mrb[20].mxu1 %vm624_vm3, %v601_v42  ;;  %v6009_v42 = vld [vmem:[%s6604_s21 + $0x44] ss:$8 sps:$4 sm:$0xff]  }
  0xc7   : > { %1309 = vmatpush1.bf16.msra.mxu0 %v5961_v40  ;;  %1422 = vmatpush1.bf16.msra.mxu1 %v5964_v41  ;;  %v6062_v40 = vld [vmem:[%s9210_s5 + $0xcc] ss:$16 sps:$4 sm:$0xff]   ;;  %v6008_v41 = vld [vmem:[%s6604_s21 + $0x30] ss:$8 sps:$4 sm:$0xff]  }
  0xc8   : > { %1310 = vmatprep.subr.bf16.mxu0 %v5969_v43  ;;  %1423 = vmatprep.subr.bf16.mxu1 %v5972_v44  ;;  %v6057_v43 = vld [vmem:[%s9210_s5 + $0xc0] ss:$16 sps:$4 sm:$0xff]   ;;  %v6060_v44 = vld [vmem:[%s9210_s5 + $0xc8] ss:$16 sps:$4 sm:$0xff]  }
  0xc9   : > { %754 = vmatprep.mubr.bf16.mxu0 %v6477_v1  ;;  %867 = vmatprep.mubr.bf16.mxu1 %v6477_v1 }
  0xcb   : > { %1311 = vmatpush1.bf16.msra.mxu0 %v5967_v45  ;;  %1424 = vmatpush1.bf16.msra.mxu1 %v5970_v46  ;;  %v6065_v45 = vld [vmem:[%s9210_s5 + $0xe4] ss:$16 sps:$4 sm:$0xff]   ;;  %v6068_v46 = vld [vmem:[%s9210_s5 + $0xec] ss:$16 sps:$4 sm:$0xff]  }
  0xcc   : > { %1312 = vmatprep.subr.bf16.mxu0 %v5975_v47  ;;  %1425 = vmatprep.subr.bf16.mxu1 %v5978_v48  ;;  %v6063_v47 = vld [vmem:[%s9210_s5 + $0xe0] ss:$16 sps:$4 sm:$0xff]   ;;  %v6066_v48 = vld [vmem:[%s9210_s5 + $0xe8] ss:$16 sps:$4 sm:$0xff]  }
  0xce   : > { %5196 = vmatmul.mubr.msk.bf16.gmra.mrb[24].mxu0 %vm624_vm3, %v602_v55  ;;  %5205 = vmatmul.mubr.msk.bf16.gmra.mrb[24].mxu1 %vm624_vm3, %v602_v55  ;;  %v6077_v55 = vld [vmem:[%s9210_s5 + $0x124] ss:$16 sps:$4 sm:$0xff]  }
  0xcf   : > { %1313 = vmatpush1.bf16.msra.mxu0 %v5973_v53  ;;  %1426 = vmatpush1.bf16.msra.mxu1 %v5976_v54  ;;  %v6069_v53 = vld [vmem:[%s9210_s5 + $0x100] ss:$16 sps:$4 sm:$0xff]   ;;  %v6072_v54 = vld [vmem:[%s9210_s5 + $0x108] ss:$16 sps:$4 sm:$0xff]  }
  0xd0   : > { %1314 = vmatprep.subr.bf16.mxu0 %v5981_v56  ;;  %1427 = vmatprep.subr.bf16.mxu1 %v5984_v57  ;;  %v6080_v56 = vld [vmem:[%s9210_s5 + $0x12c] ss:$16 sps:$4 sm:$0xff]   ;;  %v6075_v57 = vld [vmem:[%s9210_s5 + $0x120] ss:$16 sps:$4 sm:$0xff]  }
  0xd1   : > { %764 = vmatprep.mubr.bf16.mxu0 %v6477_v1  ;;  %877 = vmatprep.mubr.bf16.mxu1 %v6477_v1  ;;  %v5996_v1 = vld [vmem:[%s9207_s2 + $0x1ec] ss:$16 sps:$4 sm:$0xff]  }
  0xd3   : > { %1315 = vmatpush1.bf16.msra.mxu0 %v5979_v58  ;;  %1428 = vmatpush1.bf16.msra.mxu1 %v5982_v59  ;;  %v6078_v58 = vld [vmem:[%s9210_s5 + $0x128] ss:$16 sps:$4 sm:$0xff]   ;;  %v6083_v59 = vld [vmem:[%s9210_s5 + $0x144] ss:$16 sps:$4 sm:$0xff]  }
  0xd4   : > { %1316 = vmatprep.subr.bf16.mxu0 %v5987_v27  ;;  %1429 = vmatprep.subr.bf16.mxu1 %v5990_v60  ;;  %v6086_v27 = vld [vmem:[%s9210_s5 + $0x14c] ss:$16 sps:$4 sm:$0xff]   ;;  %v6014_v60 = vld [vmem:[%s6604_s21 + $0x50] ss:$8 sps:$4 sm:$0xff]  }
  0xd6   : > { %5197 = vmatmul.mubr.msk.bf16.gmra.mrb[28].mxu0 %vm624_vm3, %v603_v2  ;;  %5206 = vmatmul.mubr.msk.bf16.gmra.mrb[28].mxu1 %vm624_vm3, %v603_v2  ;;  %v6092_v2 = vld [vmem:[%s9210_s5 + $0x16c] ss:$16 sps:$4 sm:$0xff]  }
  0xd7   : > { %1317 = vmatpush1.bf16.msra.mxu0 %v5985_v63  ;;  %1430 = vmatpush1.bf16.msra.mxu1 %v5988_v0  ;;  %v6084_v63 = vld [vmem:[%s9210_s5 + $0x148] ss:$16 sps:$4 sm:$0xff]   ;;  %v6089_v0 = vld [vmem:[%s9210_s5 + $0x164] ss:$16 sps:$4 sm:$0xff]  }
  0xd8   : > { %1318 = vmatprep.subr.bf16.mxu0 %v5993_v32  ;;  %1431 = vmatprep.subr.bf16.mxu1 %v5996_v1  ;;  %v6087_v32 = vld [vmem:[%s9210_s5 + $0x160] ss:$16 sps:$4 sm:$0xff]   ;;  %v6090_v1 = vld [vmem:[%s9210_s5 + $0x168] ss:$16 sps:$4 sm:$0xff]  }
  0xd9   : > { %1320 = vmatprep.mubr.bf16.mxu0 %v5999_v3  ;;  %1433 = vmatprep.mubr.bf16.mxu1 %v5999_v3  ;;  %v6095_v3 = vld [vmem:[%s9210_s5 + $0x184] ss:$16 sps:$4 sm:$0xff]  }
  0xdb   : > { %1319 = vmatpush1.bf16.msra.mxu0 %v5991_v4  ;;  %1432 = vmatpush1.bf16.msra.mxu1 %v5994_v5  ;;  %v6098_v4 = vld [vmem:[%s9210_s5 + $0x18c] ss:$16 sps:$4 sm:$0xff]   ;;  %v6017_v5 = vld [vmem:[%s6604_s21 + $0x60] ss:$8 sps:$4 sm:$0xff]  }
  0xdc   : > { %2614 = vmatprep.subr.bf16.mxu0 %v6023_v6  ;;  %2840 = vmatprep.subr.bf16.mxu1 %v6026_v7  ;;  %v6018_v6 = vld [vmem:[%s6604_s21 + $0x74] ss:$8 sps:$4 sm:$0xff]   ;;  %v6093_v7 = vld [vmem:[%s9210_s5 + $0x180] ss:$16 sps:$4 sm:$0xff]  }
  0xde   : > { %1321 = vmatmul.mubr.bf16.vlgmr.msra.gmra.mrb[0].mxu0 %v5997_v8  ;;  %1434 = vmatmul.mubr.bf16.vlgmr.msra.gmra.mrb[0].mxu1 %v5997_v8  ;;  %v6096_v8 = vld [vmem:[%s9210_s5 + $0x188] ss:$16 sps:$4 sm:$0xff]  }
  0xdf   : > { %1330 = vmatprep.mubr.bf16.mxu0 %v6000_v9  ;;  %1443 = vmatprep.mubr.bf16.mxu1 %v6000_v9  ;;  %v6101_v9 = vld [vmem:[%s9210_s5 + $0x1a4] ss:$16 sps:$4 sm:$0xff]  }
  0xe0   : > { %2615 = vmatpush1.bf16.msra.mxu0 %v6021_v10  ;;  %2841 = vmatpush1.bf16.msra.mxu1 %v6024_v11  ;;  %v6099_v10 = vld [vmem:[%s9210_s5 + $0x1a0] ss:$16 sps:$4 sm:$0xff]  }
  0xe1   : > { %2616 = vmatprep.subr.bf16.mxu0 %v6029_v12  ;;  %2842 = vmatprep.subr.bf16.mxu1 %v6032_v13  ;;  %v6020_v11 = vld [vmem:[%s6604_s21 + $0x70] ss:$8 sps:$4 sm:$0xff]   ;;  %v6104_v12 = vld [vmem:[%s9210_s5 + $0x1ac] ss:$16 sps:$4 sm:$0xff]  }
  0xe2   : > { %v6102_v13 = vld [vmem:[%s9210_s5 + $0x1a8] ss:$16 sps:$4 sm:$0xff]  }
  0xe4   : > { %2617 = vmatpush1.bf16.msra.mxu0 %v6027_v14  ;;  %2843 = vmatpush1.bf16.msra.mxu1 %v6030_v15  ;;  %v6107_v14 = vld [vmem:[%s9210_s5 + $0x1c4] ss:$16 sps:$4 sm:$0xff]   ;;  %v6110_v15 = vld [vmem:[%s9210_s5 + $0x1cc] ss:$16 sps:$4 sm:$0xff]  }
  0xe5   : > { %2618 = vmatprep.subr.bf16.mxu0 %v6035_v16  ;;  %2844 = vmatprep.subr.bf16.mxu1 %v6038_v17  ;;  %v6105_v16 = vld [vmem:[%s9210_s5 + $0x1c0] ss:$16 sps:$4 sm:$0xff]   ;;  %v6108_v17 = vld [vmem:[%s9210_s5 + $0x1c8] ss:$16 sps:$4 sm:$0xff]  }
  0xe6   : > { %1331 = vmatmul.mubr.bf16.gmra.mrb[4].mxu0 %v6002_v18  ;;  %1444 = vmatmul.mubr.bf16.gmra.mrb[4].mxu1 %v6002_v18  ;;  %v6113_v18 = vld [vmem:[%s9210_s5 + $0x1e4] ss:$16 sps:$4 sm:$0xff]  }
  0xe7   : > { %1340 = vmatprep.mubr.bf16.mxu0 %v6003_v19  ;;  %1453 = vmatprep.mubr.bf16.mxu1 %v6003_v19  ;;  %v6116_v19 = vld [vmem:[%s9210_s5 + $0x1ec] ss:$16 sps:$4 sm:$0xff]  }
  0xe8   : > { %2619 = vmatpush1.bf16.msra.mxu0 %v6033_v20  ;;  %2845 = vmatpush1.bf16.msra.mxu1 %v6036_v21  ;;  %v6111_v20 = vld [vmem:[%s9210_s5 + $0x1e0] ss:$16 sps:$4 sm:$0xff]   ;;  %v6114_v21 = vld [vmem:[%s9210_s5 + $0x1e8] ss:$16 sps:$4 sm:$0xff]  }
  0xe9   : > { %2620 = vmatprep.subr.bf16.mxu0 %v6041_v22  ;;  %2846 = vmatprep.subr.bf16.mxu1 %v6044_v23  ;;  %v6119_v22 = vld [vmem:[%s9210_s5 + $0x204] ss:$16 sps:$4 sm:$0xff]   ;;  %v6122_v23 = vld [vmem:[%s9210_s5 + $0x20c] ss:$16 sps:$4 sm:$0xff]  }
  0xec   : > { %2621 = vmatpush1.bf16.msra.mxu0 %v6039_v24  ;;  %2847 = vmatpush1.bf16.msra.mxu1 %v6042_v25  ;;  %v1517_v24 = vshrl.u32 %v498_v26, 7 }
  0xed   : > { %2622 = vmatprep.subr.bf16.mxu0 %v6047_v28  ;;  %2848 = vmatprep.subr.bf16.mxu1 %v6050_v29  ;;  %v1514_v29 = vld [vmem:[%s9209_s4] sm:$0xf] }
  0xee   : > { %1341 = vmatmul.mubr.bf16.gmra.mrb[8].mxu0 %v6005_v30  ;;  %1454 = vmatmul.mubr.bf16.gmra.mrb[8].mxu1 %v6005_v30  ;;  %v7072_v25 = vsub.s32 0, %v1517_v24  ;;  %v7074_v28 = vsub.s32 2, %v1517_v24  ;;  %v7079_v30 = vsub.s32 1, %v1517_v24 }
  0xef   : > { %1350 = vmatprep.mubr.bf16.mxu0 %v6006_v31  ;;  %1463 = vmatprep.mubr.bf16.mxu1 %v6006_v31  ;;  %v7081_v31 = vsub.s32 3, %v1517_v24  ;;  %v6128_v24 = vld [vmem:[%s9210_s5 + $0x22c] ss:$16 sps:$4 sm:$0xff]  }
  0xf0   : > { %2623 = vmatpush1.bf16.msra.mxu0 %v6045_v33  ;;  %2849 = vmatpush1.bf16.msra.mxu1 %v6048_v34  ;;  %9235 = vst [vmem:[#allocation3_spill] sm:$0xff] %v7072_v25  ;;  %9236 = vst [vmem:[#allocation4_spill] sm:$0xff] %v7074_v28  ;;  %v7084_v33 = vrot.slane %v1514_v29, %v7072_v25  ;;  %v7087_v34 = vrot.slane %v1514_v29, %v7074_v28 }
  0xf1   : > { %2624 = vmatprep.subr.bf16.mxu0 %v6053_v35  ;;  %2850 = vmatprep.subr.bf16.mxu1 %v6056_v36  ;;  %9237 = vst [vmem:[#allocation5_spill] sm:$0xff] %v7079_v30  ;;  %9238 = vst [vmem:[#allocation6_spill] sm:$0xff] %v7081_v31  ;;  %v7090_v26 = vrot.slane %v1514_v29, %v7079_v30  ;;  %v7093_v35 = vrot.slane %v1514_v29, %v7081_v31 }
  0xf4   : > { %2625 = vmatpush1.bf16.msra.mxu0 %v6051_v37  ;;  %2851 = vmatpush1.bf16.msra.mxu1 %v6054_v38 }
  0xf5   : > { %2626 = vmatprep.subr.bf16.mxu0 %v6059_v39  ;;  %2852 = vmatprep.subr.bf16.mxu1 %v6062_v40 }
  0xf6   : > { %1351 = vmatmul.mubr.bf16.gmra.mrb[12].mxu0 %v6008_v41  ;;  %1464 = vmatmul.mubr.bf16.gmra.mrb[12].mxu1 %v6008_v41 }
  0xf7   : > { %1360 = vmatprep.mubr.bf16.mxu0 %v6009_v42  ;;  %1473 = vmatprep.mubr.bf16.mxu1 %v6009_v42 }
  0xf8   : > { %2627 = vmatpush1.bf16.msra.mxu0 %v6057_v43  ;;  %2853 = vmatpush1.bf16.msra.mxu1 %v6060_v44 }
  0xf9   : > { %2628 = vmatprep.subr.bf16.mxu0 %v6065_v45  ;;  %2854 = vmatprep.subr.bf16.mxu1 %v6068_v46 }
  0xfc   : > { %2629 = vmatpush1.bf16.msra.mxu0 %v6063_v47  ;;  %2855 = vmatpush1.bf16.msra.mxu1 %v6066_v48 }
  0xfd   : > { %2630 = vmatprep.subr.bf16.mxu0 %v6071_v49  ;;  %2856 = vmatprep.subr.bf16.mxu1 %v6074_v50 }
  0xfe   : > { %1361 = vmatmul.mubr.bf16.gmra.mrb[16].mxu0 %v6011_v51  ;;  %1474 = vmatmul.mubr.bf16.gmra.mrb[16].mxu1 %v6011_v51 }
  0xff   : > { %1370 = vmatprep.mubr.bf16.mxu0 %v6012_v52  ;;  %1483 = vmatprep.mubr.bf16.mxu1 %v6012_v52 }
 0x100   : > { %2631 = vmatpush1.bf16.msra.mxu0 %v6069_v53  ;;  %2857 = vmatpush1.bf16.msra.mxu1 %v6072_v54 }
 0x101   : > { %2632 = vmatprep.subr.bf16.mxu0 %v6077_v55  ;;  %2858 = vmatprep.subr.bf16.mxu1 %v6080_v56 }
 0x104   : > { %2633 = vmatpush1.bf16.msra.mxu0 %v6075_v57  ;;  %2859 = vmatpush1.bf16.msra.mxu1 %v6078_v58 }
 0x105   : > { %2634 = vmatprep.subr.bf16.mxu0 %v6083_v59  ;;  %2860 = vmatprep.subr.bf16.mxu1 %v6086_v27 }
 0x106   : > { %1371 = vmatmul.mubr.bf16.gmra.mrb[20].mxu0 %v6014_v60  ;;  %1484 = vmatmul.mubr.bf16.gmra.mrb[20].mxu1 %v6014_v60 }
 0x107   : > { %1380 = vmatprep.mubr.bf16.mxu0 %v6015_v61  ;;  %1493 = vmatprep.mubr.bf16.mxu1 %v6015_v61 }
 0x108   : > { %2635 = vmatpush1.bf16.msra.mxu0 %v6081_v62  ;;  %2861 = vmatpush1.bf16.msra.mxu1 %v6084_v63 }
 0x109   : > { %2636 = vmatprep.subr.bf16.mxu0 %v6089_v0  ;;  %2862 = vmatprep.subr.bf16.mxu1 %v6092_v2 }
 0x10c   : > { %2637 = vmatpush1.bf16.msra.mxu0 %v6087_v32  ;;  %2863 = vmatpush1.bf16.msra.mxu1 %v6090_v1 }
 0x10d   : > { %2638 = vmatprep.subr.bf16.mxu0 %v6095_v3  ;;  %2864 = vmatprep.subr.bf16.mxu1 %v6098_v4 }
 0x10e   : > { %1381 = vmatmul.mubr.bf16.gmra.mrb[24].mxu0 %v6017_v5  ;;  %1494 = vmatmul.mubr.bf16.gmra.mrb[24].mxu1 %v6017_v5 }
 0x10f   : > { %1390 = vmatprep.mubr.bf16.mxu0 %v6018_v6  ;;  %1503 = vmatprep.mubr.bf16.mxu1 %v6018_v6 }
 0x110   : > { %2639 = vmatpush1.bf16.msra.mxu0 %v6093_v7  ;;  %2865 = vmatpush1.bf16.msra.mxu1 %v6096_v8 }
 0x111   : > { %2640 = vmatprep.subr.bf16.mxu0 %v6101_v9  ;;  %2866 = vmatprep.subr.bf16.mxu1 %v6104_v12 }
 0x114   : > { %2641 = vmatpush1.bf16.msra.mxu0 %v6099_v10  ;;  %2867 = vmatpush1.bf16.msra.mxu1 %v6102_v13  ;;  %v6117_v13 = vld [vmem:[%s9210_s5 + $0x200] ss:$16 sps:$4 sm:$0xff]  }
 0x115   : > { %2642 = vmatprep.subr.bf16.mxu0 %v6107_v14  ;;  %2868 = vmatprep.subr.bf16.mxu1 %v6110_v15 }
 0x116   : > { %1391 = vmatmul.mubr.bf16.gmra.mrb[28].mxu0 %v6020_v11  ;;  %1504 = vmatmul.mubr.bf16.gmra.mrb[28].mxu1 %v6020_v11 }
 0x118   : > { %2643 = vmatpush1.bf16.msra.mxu0 %v6105_v16  ;;  %2869 = vmatpush1.bf16.msra.mxu1 %v6108_v17 }
 0x119   : > { %2644 = vmatprep.subr.bf16.mxu0 %v6113_v18  ;;  %2870 = vmatprep.subr.bf16.mxu1 %v6116_v19 }
 0x11c   : > { %2645 = vmatpush1.bf16.msra.mxu0 %v6111_v20  ;;  %2871 = vmatpush1.bf16.msra.mxu1 %v6114_v21  ;;  %v6120_v21 = vld [vmem:[%s9210_s5 + $0x208] ss:$16 sps:$4 sm:$0xff]  }
 0x11d   : > { %2727 = vmatprep.subr.bf16.mxu0 %v6119_v22  ;;  %2953 = vmatprep.subr.bf16.mxu1 %v6122_v23  ;;  %v6125_v23 = vld [vmem:[%s9210_s5 + $0x224] ss:$16 sps:$4 sm:$0xff]  }
 0x1b1   : > { %v1322_v36 = vpop.f32.mrb[0].mxu0  ;;  %v1435_v37 = vpop.f32.mrb[0].mxu1 }
 0x1b2   : > { %v1536_v38 = vadd.f32 %v7084_v33, %v1322_v36  ;;  %v1538_v39 = vadd.f32 %v7087_v34, %v1435_v37  ;;  %v1324_v40 = vpop.f32.mrb[1].mxu0  ;;  %v1437_v41 = vpop.f32.mrb[1].mxu1 }
 0x1b3   : > { %v1537_v42 = vadd.f32 %v7090_v26, %v1324_v40  ;;  %v1539_v43 = vadd.f32 %v7093_v35, %v1437_v41  ;;  %v1326_v44 = vpop.f32.mrb[2].mxu0  ;;  %v1439_v45 = vpop.f32.mrb[2].mxu1  ;;  %v6126_v41 = vld [vmem:[%s9210_s5 + $0x228] ss:$16 sps:$4 sm:$0xff]  }
 0x1b4   : > { %vm1600_vm2 = vcmp.gt.f32.partialorder %v1536_v38, 0.0  ;;  %v1664_v46 = vmul.f32 0.2, %v1536_v38  ;;  %vm1602_vm3 = vcmp.gt.f32.partialorder %v1538_v39, 0.0  ;;  %v1666_v47 = vmul.f32 0.2, %v1538_v39 }
 0x1b5   : > { %vm1601_vm4 = vcmp.gt.f32.partialorder %v1537_v42, 0.0  ;;  %v1665_v48 = vmul.f32 0.2, %v1537_v42  ;;  %v1540_v49 = vadd.f32 %v7084_v33, %v1326_v44  ;;  %v1542_v50 = vadd.f32 %v7087_v34, %v1439_v45  ;;  %v1328_v51 = vpop.f32.mrb[3].mxu0  ;;  %v1441_v52 = vpop.f32.mrb[3].mxu1 }
 0x1b6   : > { %vm1603_vm5 = vcmp.gt.f32.partialorder %v1539_v43, 0.0  ;;  %v1667_v53 = vmul.f32 0.2, %v1539_v43  ;;  %v1541_v54 = vadd.f32 %v7090_v26, %v1328_v51  ;;  %v1543_v55 = vadd.f32 %v7093_v35, %v1441_v52 }
 0x1b7   : > { %vm1604_vm6 = vcmp.gt.f32.partialorder %v1540_v49, 0.0  ;;  %v1668_v56 = vmul.f32 0.2, %v1540_v49  ;;  %vm1606_vm7 = vcmp.gt.f32.partialorder %v1542_v50, 0.0  ;;  %v1670_v57 = vmul.f32 0.2, %v1542_v50 }
 0x1b8   : > { %v1728_v58 = vsel %vm1600_vm2, %v1536_v38, %v1664_v46  ;;  %vm1605_vm8 = vcmp.gt.f32.partialorder %v1541_v54, 0.0  ;;  %v1669_v59 = vmul.f32 0.2, %v1541_v54  ;;  %v1671_v27 = vmul.f32 0.2, %v1543_v55 }
 0x1b9   : > { %v1730_v60 = vsel %vm1602_vm3, %v1538_v39, %v1666_v47  ;;  %v1732_v61 = vsel %vm1604_vm6, %v1540_v49, %v1668_v56  ;;  %v1734_v62 = vsel %vm1606_vm7, %v1542_v50, %v1670_v57  ;;  %vm1607_vm9 = vcmp.gt.f32.partialorder %v1543_v55, 0.0  ;;  %v1332_v63 = vpop.f32.mrb[4].mxu0  ;;  %v1445_v0 = vpop.f32.mrb[4].mxu1  ;;  %v6123_v38 = vld [vmem:[%s9210_s5 + $0x220] ss:$16 sps:$4 sm:$0xff]  }
 0x1ba   : > { %v1792_v2 = vpack.c.bf16 %v1732_v61, %v1728_v58  ;;  %v7105_v32 = vpack.c.bf16 %v1734_v62, %v1730_v60  ;;  %v1544_v1 = vadd.f32 %v7084_v33, %v1332_v63  ;;  %v7109_v3 = vadd.f32 %v7087_v34, %v1445_v0  ;;  %v1334_v4 = vpop.f32.mrb[5].mxu0  ;;  %v7111_v5 = vpop.f32.mrb[5].mxu1  ;;  %v6131_v50 = vld [vmem:[%s9210_s5 + $0x244] ss:$16 sps:$4 sm:$0xff]   ;;  %v6129_v57 = vld [vmem:[%s9210_s5 + $0x240] ss:$16 sps:$4 sm:$0xff]  }
 0x1bb   : > { %v1545_v6 = vadd.f32 %v7090_v26, %v1334_v4  ;;  %v1336_v7 = vpop.f32.mrb[6].mxu0  ;;  %v1449_v8 = vpop.f32.mrb[6].mxu1  ;;  %v1733_v9 = vsel %vm1605_vm8, %v1541_v54, %v1669_v59  ;;  %v1735_v10 = vsel %vm1607_vm9, %v1543_v55, %v1671_v27  ;;  %v1729_v12 = vsel %vm1601_vm4, %v1537_v42, %v1665_v48  ;;  %v6134_v55 = vld [vmem:[%s9210_s5 + $0x24c] ss:$16 sps:$4 sm:$0xff]   ;;  %v6132_v58 = vld [vmem:[%s9210_s5 + $0x248] ss:$16 sps:$4 sm:$0xff]  }
 0x1bc   : > { %9239 = vst [vmem:[#allocation7_spill] sm:$0xff] %v7105_v32  ;;  %v1672_v11 = vmul.f32 0.2, %v1544_v1  ;;  %v1731_v14 = vsel %vm1603_vm5, %v1539_v43, %v1667_v53  ;;  %v1548_v16 = vadd.f32 %v7084_v33, %v1336_v7  ;;  %v7122_v17 = vadd.f32 %v7087_v34, %v1449_v8  ;;  %v1338_v18 = vpop.f32.mrb[7].mxu0  ;;  %v7124_v19 = vpop.f32.mrb[7].mxu1 }
 0x1bd   : > { %v1673_v15 = vmul.f32 0.2, %v1545_v6  ;;  %v1793_v20 = vpack.c.bf16 %v1733_v9, %v1729_v12  ;;  %vm1608_vm10 = vcmp.gt.f32.partialorder %v1544_v1, 0.0  ;;  %vm1609_vm11 = vcmp.gt.f32.partialorder %v1545_v6, 0.0  ;;  %v6137_v59 = vld [vmem:[%s9210_s5 + $0x264] ss:$16 sps:$4 sm:$0xff]  }
 0x1be   : > { %v1549_v22 = vadd.f32 %v7090_v26, %v1338_v18  ;;  %v7136_v29 = vpack.c.bf16 %v1735_v10, %v1731_v14  ;;  %vm1612_vm12 = vcmp.gt.f32.partialorder %v1548_v16, 0.0  ;;  %v1676_v36 = vmul.f32 0.2, %v1548_v16  ;;  %v6140_v0 = vld [vmem:[%s9210_s5 + $0x26c] ss:$16 sps:$4 sm:$0xff]  }
 0x1bf   : > { %2646 = vmatprep.mubr.bf16.mxu0 %v1793_v20  ;;  %2872 = vmatprep.mubr.bf16.mxu1 %v1793_v20  ;;  %v1737_v42 = vsel %vm1609_vm11, %v1545_v6, %v1673_v15  ;;  %v1736_v43 = vsel %vm1608_vm10, %v1544_v1, %v1672_v11  ;;  %v6135_v1 = vld [vmem:[%s9210_s5 + $0x260] ss:$16 sps:$4 sm:$0xff]   ;;  %v6138_v7 = vld [vmem:[%s9210_s5 + $0x268] ss:$16 sps:$4 sm:$0xff]   ;;  %v6143_v9 = vld [vmem:[%s9210_s5 + $0x284] ss:$16 sps:$4 sm:$0xff]  }
 0x1c0   : > { %9240 = vst [vmem:[#allocation8_spill] sm:$0xff] %v7136_v29  ;;  %vm1613_vm13 = vcmp.gt.f32.partialorder %v1549_v22, 0.0  ;;  %v1677_v37 = vmul.f32 0.2, %v1549_v22  ;;  %2647 = vmatmul.mubr.bf16.vlgmr.msra.gmra.mrb[32].mxu0 %v1792_v2  ;;  %2873 = vmatmul.mubr.bf16.vlgmr.msra.gmra.mrb[32].mxu1 %v1792_v2  ;;  %v1740_v44 = vsel %vm1612_vm12, %v1548_v16, %v1676_v36  ;;  %v6146_v18 = vld [vmem:[%s9210_s5 + $0x28c] ss:$16 sps:$4 sm:$0xff]  }
 0x1c1   : > { %2728 = vmatpush1.bf16.msra.mxu0 %v6117_v13  ;;  %2954 = vmatpush1.bf16.msra.mxu1 %v6120_v21  ;;  %v1342_v39 = vpop.f32.mrb[8].mxu0  ;;  %v1455_v40 = vpop.f32.mrb[8].mxu1  ;;  %v1796_v54 = vpack.c.bf16 %v1740_v44, %v1736_v43  ;;  %v6141_v43 = vld [vmem:[%s9210_s5 + $0x280] ss:$16 sps:$4 sm:$0xff]   ;;  %v6144_v44 = vld [vmem:[%s9210_s5 + $0x288] ss:$16 sps:$4 sm:$0xff]  }
 0x1c2   : > { %2729 = vmatprep.subr.bf16.mxu0 %v6125_v23  ;;  %v1552_v45 = vadd.f32 %v7084_v33, %v1342_v39  ;;  %v7149_v46 = vadd.f32 %v7087_v34, %v1455_v40  ;;  %2955 = vmatprep.subr.bf16.mxu1 %v6128_v24  ;;  %v1344_v47 = vpop.f32.mrb[9].mxu0  ;;  %v7151_v48 = vpop.f32.mrb[9].mxu1  ;;  %v1741_v49 = vsel %vm1613_vm13, %v1549_v22, %v1677_v37  ;;  %vm1610_vm8 = vcmp.gt.f32.partialorder %v7109_v3, 0.0  ;;  %v6185_v29 = vld [vmem:[%s9210_s5 + $0x364] ss:$16 sps:$4 sm:$0xff]  }
 0x1c3   : > { %v1346_v51 = vpop.f32.mrb[10].mxu0  ;;  %v1459_v52 = vpop.f32.mrb[10].mxu1  ;;  %v1797_v53 = vpack.c.bf16 %v1741_v49, %v1737_v42  ;;  %v1553_v56 = vadd.f32 %v7090_v26, %v1344_v47  ;;  %v6149_v47 = vld [vmem:[%s9210_s5 + $0x2a4] ss:$16 sps:$4 sm:$0xff]  }
 0x1c4   : > { %v1680_v27 = vmul.f32 0.2, %v1552_v45  ;;  %v1556_v60 = vadd.f32 %v7084_v33, %v1346_v51  ;;  %v7172_v61 = vadd.f32 %v7087_v34, %v1459_v52  ;;  %v1348_v62 = vpop.f32.mrb[11].mxu0  ;;  %v7174_v63 = vpop.f32.mrb[11].mxu1  ;;  %vm1616_vm14 = vcmp.gt.f32.partialorder %v1552_v45, 0.0 }
 0x1c5   : > { %2730 = vmatpush1.bf16.msra.mxu0 %v6123_v38  ;;  %2956 = vmatpush1.bf16.msra.mxu1 %v6126_v41  ;;  %v1557_v2 = vadd.f32 %v7090_v26, %v1348_v62  ;;  %v1681_v10 = vmul.f32 0.2, %v1553_v56  ;;  %vm1617_vm1 = vcmp.gt.f32.partialorder %v1553_v56, 0.0  ;;  %v6152_v51 = vld [vmem:[%s9210_s5 + $0x2ac] ss:$16 sps:$4 sm:$0xff]  }
 0x1c6   : > { %2656 = vmatprep.mubr.bf16.mxu0 %v1797_v53  ;;  %2731 = vmatprep.subr.bf16.mxu0 %v6131_v50  ;;  %vm1620_vm15 = vcmp.gt.f32.partialorder %v1556_v60, 0.0  ;;  %v1684_v8 = vmul.f32 0.2, %v1556_v60  ;;  %v1744_v15 = vsel %vm1616_vm14, %v1552_v45, %v1680_v27 }
 0x1c7   : > { %2882 = vmatprep.mubr.bf16.mxu1 %v1797_v53  ;;  %2957 = vmatprep.subr.bf16.mxu1 %v6134_v55  ;;  %vm1621_vm0 = vcmp.gt.f32.partialorder %v1557_v2, 0.0  ;;  %v1685_v11 = vmul.f32 0.2, %v1557_v2  ;;  %v1745_v37 = vsel %vm1617_vm1, %v1553_v56, %v1681_v10  ;;  %v6147_v53 = vld [vmem:[%s9210_s5 + $0x2a0] ss:$16 sps:$4 sm:$0xff]  }
 0x1c8   : > { %2657 = vmatmul.mubr.bf16.gmra.mrb[36].mxu0 %v1796_v54  ;;  %2883 = vmatmul.mubr.bf16.gmra.mrb[36].mxu1 %v1796_v54  ;;  %v1748_v16 = vsel %vm1620_vm15, %v1556_v60, %v1684_v8  ;;  %v6150_v54 = vld [vmem:[%s9210_s5 + $0x2a8] ss:$16 sps:$4 sm:$0xff]  }
 0x1c9   : > { %v1352_v4 = vpop.f32.mrb[12].mxu0  ;;  %v1465_v6 = vpop.f32.mrb[12].mxu1  ;;  %2732 = vmatpush1.bf16.msra.mxu0 %v6129_v57  ;;  %2958 = vmatpush1.bf16.msra.mxu1 %v6132_v58  ;;  %v1749_v22 = vsel %vm1621_vm0, %v1557_v2, %v1685_v11  ;;  %v1800_v23 = vpack.c.bf16 %v1748_v16, %v1744_v15  ;;  %v6155_v57 = vld [vmem:[%s9210_s5 + $0x2c4] ss:$16 sps:$4 sm:$0xff]   ;;  %v6156_v16 = vld [vmem:[%s9210_s5 + $0x2c8] ss:$16 sps:$4 sm:$0xff]  }
 0x1ca   : > { %2733 = vmatprep.subr.bf16.mxu0 %v6137_v59  ;;  %v7190_v12 = vadd.f32 %v7087_v34, %v1465_v6  ;;  %2959 = vmatprep.subr.bf16.mxu1 %v6140_v0  ;;  %v1354_v13 = vpop.f32.mrb[13].mxu0  ;;  %v7192_v14 = vpop.f32.mrb[13].mxu1  ;;  %v1560_v24 = vadd.f32 %v7084_v33, %v1352_v4  ;;  %v1801_v42 = vpack.c.bf16 %v1749_v22, %v1745_v37  ;;  %v6161_v22 = vld [vmem:[%s9210_s5 + $0x2e4] ss:$16 sps:$4 sm:$0xff]   ;;  %v7273_v37 = vmul.f32 0.2, %v7109_v3 }
 0x1cb   : > { %v1356_v20 = vpop.f32.mrb[14].mxu0  ;;  %v1469_v21 = vpop.f32.mrb[14].mxu1  ;;  %v1561_v36 = vadd.f32 %v7090_v26, %v1354_v13  ;;  %v1547_v4 = vadd.f32 %v7093_v35, %v7111_v5  ;;  %v6153_v5 = vld [vmem:[%s9210_s5 + $0x2c0] ss:$16 sps:$4 sm:$0xff]  }
 0x1cc   : > { %v1564_v38 = vadd.f32 %v7084_v33, %v1356_v20  ;;  %v7204_v39 = vadd.f32 %v7087_v34, %v1469_v21  ;;  %v1358_v40 = vpop.f32.mrb[15].mxu0  ;;  %v7206_v41 = vpop.f32.mrb[15].mxu1  ;;  %2666 = vmatprep.mubr.bf16.mxu0 %v1801_v42  ;;  %2892 = vmatprep.mubr.bf16.mxu1 %v1801_v42  ;;  %v1688_v58 = vmul.f32 0.2, %v1560_v24  ;;  %vm1624_vm5 = vcmp.gt.f32.partialorder %v1560_v24, 0.0 }
 0x1cd   : > { %2734 = vmatpush1.bf16.msra.mxu0 %v6135_v1  ;;  %2960 = vmatpush1.bf16.msra.mxu1 %v6138_v7  ;;  %v1565_v45 = vadd.f32 %v7090_v26, %v1358_v40  ;;  %v1689_v55 = vmul.f32 0.2, %v1561_v36  ;;  %vm1625_vm4 = vcmp.gt.f32.partialorder %v1561_v36, 0.0  ;;  %v6158_v1 = vld [vmem:[%s9210_s5 + $0x2cc] ss:$16 sps:$4 sm:$0xff]   ;;  %v7244_v7 = vadd.f32 %v7093_v35, %v7124_v19 }
 0x1ce   : > { %9241 = vst [vmem:[#allocation9_spill] sm:$0xff] %v7204_v39  ;;  %2735 = vmatprep.subr.bf16.mxu0 %v6143_v9  ;;  %2961 = vmatprep.subr.bf16.mxu1 %v6146_v18  ;;  %v1692_v52 = vmul.f32 0.2, %v1564_v38  ;;  %vm1628_vm2 = vcmp.gt.f32.partialorder %v1564_v38, 0.0  ;;  %v1752_v19 = vsel %vm1624_vm5, %v1560_v24, %v1688_v58  ;;  %v6164_v24 = vld [vmem:[%s9210_s5 + $0x2ec] ss:$16 sps:$4 sm:$0xff]   ;;  %v7277_v40 = vadd.f32 %v7093_v35, %v7151_v48 }
 0x1cf   : > { %vm1629_vm3 = vcmp.gt.f32.partialorder %v1565_v45, 0.0  ;;  %v1693_v56 = vmul.f32 0.2, %v1565_v45  ;;  %v1753_v9 = vsel %vm1625_vm4, %v1561_v36, %v1689_v55  ;;  %vm1611_vm6 = vcmp.gt.f32.partialorder %v1547_v4, 0.0  ;;  %v6159_v42 = vld [vmem:[%s9210_s5 + $0x2e0] ss:$16 sps:$4 sm:$0xff]  }
 0x1d0   : > { %2667 = vmatmul.mubr.bf16.gmra.mrb[40].mxu0 %v1800_v23  ;;  %2893 = vmatmul.mubr.bf16.gmra.mrb[40].mxu1 %v1800_v23  ;;  %v1756_v6 = vsel %vm1628_vm2, %v1564_v38, %v1692_v52  ;;  %v1675_v38 = vmul.f32 0.2, %v1547_v4  ;;  %v6167_v48 = vld [vmem:[%s9210_s5 + $0x304] ss:$16 sps:$4 sm:$0xff]   ;;  %vm1615_vm0 = vcmp.gt.f32.partialorder %v7244_v7, 0.0  ;;  %vm1614_vm2 = vcmp.gt.f32.partialorder %v7122_v17, 0.0 }
 0x1d1   : > { %v1362_v49 = vpop.f32.mrb[16].mxu0  ;;  %v1475_v50 = vpop.f32.mrb[16].mxu1  ;;  %2736 = vmatpush1.bf16.msra.mxu0 %v6141_v43  ;;  %2962 = vmatpush1.bf16.msra.mxu1 %v6144_v44  ;;  %v1757_v2 = vsel %vm1629_vm3, %v1565_v45, %v1693_v56  ;;  %v1804_v21 = vpack.c.bf16 %v1756_v6, %v1752_v19  ;;  %v6162_v43 = vld [vmem:[%s9210_s5 + $0x2e8] ss:$16 sps:$4 sm:$0xff]   ;;  %vm1619_vm3 = vcmp.gt.f32.partialorder %v7277_v40, 0.0  ;;  %vm1618_vm5 = vcmp.gt.f32.partialorder %v7149_v46, 0.0 }
 0x1d2   : > { %v7231_v59 = vadd.f32 %v7087_v34, %v1475_v50  ;;  %v1364_v27 = vpop.f32.mrb[17].mxu0  ;;  %v7233_v60 = vpop.f32.mrb[17].mxu1  ;;  %2737 = vmatprep.subr.bf16.mxu0 %v6149_v47  ;;  %2963 = vmatprep.subr.bf16.mxu1 %v6152_v51  ;;  %v1805_v15 = vpack.c.bf16 %v1757_v2, %v1753_v9  ;;  %v1568_v44 = vadd.f32 %v7084_v33, %v1362_v49  ;;  %v7291_v50 = vmul.f32 0.2, %v7122_v17  ;;  %v6170_v2 = vld [vmem:[%s9210_s5 + $0x30c] ss:$16 sps:$4 sm:$0xff]  }
 0x1d3   : > { %v1366_v62 = vpop.f32.mrb[18].mxu0  ;;  %v1479_v0 = vpop.f32.mrb[18].mxu1  ;;  %v1569_v8 = vadd.f32 %v7090_v26, %v1364_v27  ;;  %v7308_v27 = vmul.f32 0.2, %v7149_v46 }
 0x1d4   : > { %v7249_v10 = vadd.f32 %v7087_v34, %v1479_v0  ;;  %v1368_v11 = vpop.f32.mrb[19].mxu0  ;;  %v7251_v13 = vpop.f32.mrb[19].mxu1  ;;  %v7261_v18 = vadd.f32 %v7084_v33, %v1366_v62  ;;  %2676 = vmatprep.mubr.bf16.mxu0 %v1805_v15  ;;  %2902 = vmatprep.mubr.bf16.mxu1 %v1805_v15  ;;  %v7312_v62 = vadd.f32 %v7093_v35, %v7192_v14  ;;  %v6168_v0 = vld [vmem:[%s9210_s5 + $0x308] ss:$16 sps:$4 sm:$0xff]   ;;  %v7328_v14 = vmul.f32 0.2, %v7277_v40 }
 0x1d5   : > { %2738 = vmatpush1.bf16.msra.mxu0 %v6147_v53  ;;  %2964 = vmatpush1.bf16.msra.mxu1 %v6150_v54  ;;  %v1573_v20 = vadd.f32 %v7090_v26, %v1368_v11  ;;  %v1697_v45 = vmul.f32 0.2, %v1569_v8  ;;  %vm1633_vm9 = vcmp.gt.f32.partialorder %v1569_v8, 0.0  ;;  %v7299_v53 = vmul.f32 0.2, %v7244_v7 }
 0x1d6   : > { %2739 = vmatprep.subr.bf16.mxu0 %v6155_v57  ;;  %2965 = vmatprep.subr.bf16.mxu1 %v6158_v1  ;;  %v7303_v54 = vadd.f32 %v7093_v35, %v7174_v63  ;;  %v1700_v55 = vmul.f32 0.2, %v7261_v18  ;;  %vm1636_vm10 = vcmp.gt.f32.partialorder %v7261_v18, 0.0  ;;  %v6165_v63 = vld [vmem:[%s9210_s5 + $0x300] ss:$16 sps:$4 sm:$0xff]   ;;  %v7325_v1 = vsel %vm1611_vm6, %v1547_v4, %v1675_v38 }
 0x1d7   : > { %vm1637_vm7 = vcmp.gt.f32.partialorder %v1573_v20, 0.0  ;;  %v1701_v47 = vmul.f32 0.2, %v1573_v20  ;;  %v1696_v6 = vmul.f32 0.2, %v1568_v44  ;;  %v1761_v11 = vsel %vm1633_vm9, %v1569_v8, %v1697_v45 }
 0x1d8   : > { %2677 = vmatmul.mubr.bf16.gmra.mrb[44].mxu0 %v1804_v21  ;;  %2903 = vmatmul.mubr.bf16.gmra.mrb[44].mxu1 %v1804_v21  ;;  %v6173_v15 = vld [vmem:[%s9210_s5 + $0x324] ss:$16 sps:$4 sm:$0xff]   ;;  %vm1632_vm11 = vcmp.gt.f32.partialorder %v1568_v44, 0.0  ;;  %v7344_v21 = vmul.f32 0.2, %v7303_v54  ;;  %v7348_v8 = vadd.f32 %v7093_v35, %v7206_v41  ;;  %vm1623_vm4 = vcmp.gt.f32.partialorder %v7303_v54, 0.0 }
 0x1d9   : > { %v7267_v23 = vpop.f32.mrb[20].mxu0  ;;  %v1485_v36 = vpop.f32.mrb[20].mxu1  ;;  %2740 = vmatpush1.bf16.msra.mxu0 %v6153_v5  ;;  %2966 = vmatpush1.bf16.msra.mxu1 %v6156_v16  ;;  %v1765_v58 = vsel %vm1637_vm7, %v1573_v20, %v1701_v47  ;;  %v7338_v5 = vmul.f32 0.2, %v7172_v61  ;;  %v7361_v45 = vmul.f32 0.2, %v7312_v62  ;;  %v7368_v47 = vadd.f32 %v7093_v35, %v7233_v60 }
 0x1da   : > { %v7294_v51 = vadd.f32 %v7087_v34, %v1485_v36  ;;  %v1374_v49 = vpop.f32.mrb[21].mxu0  ;;  %v7296_v52 = vpop.f32.mrb[21].mxu1  ;;  %2741 = vmatprep.subr.bf16.mxu0 %v6161_v22  ;;  %2967 = vmatprep.subr.bf16.mxu1 %v6164_v24  ;;  %v1809_v20 = vpack.c.bf16 %v1765_v58, %v1761_v11  ;;  %v1764_v36 = vsel %vm1636_vm10, %v7261_v18, %v1700_v55  ;;  %v7364_v41 = vmul.f32 0.2, %v7204_v39  ;;  %v6171_v18 = vld [vmem:[%s9210_s5 + $0x320] ss:$16 sps:$4 sm:$0xff]  }
 0x1db   : > { %v1376_v56 = vpop.f32.mrb[22].mxu0  ;;  %v1489_v57 = vpop.f32.mrb[22].mxu1  ;;  %v7331_v9 = vadd.f32 %v7090_v26, %v1374_v49  ;;  %v7379_v49 = vadd.f32 %v7084_v33, %v7267_v23  ;;  %v6174_v60 = vld [vmem:[%s9210_s5 + $0x328] ss:$16 sps:$4 sm:$0xff]   ;;  %v6179_v58 = vld [vmem:[%s9210_s5 + $0x344] ss:$16 sps:$4 sm:$0xff]  }
 0x1dc   : > { %v7341_v4 = vadd.f32 %v7087_v34, %v1489_v57  ;;  %v1378_v19 = vpop.f32.mrb[23].mxu0  ;;  %v1491_v16 = vpop.f32.mrb[23].mxu1  ;;  %2686 = vmatprep.mubr.bf16.mxu0 %v1809_v20  ;;  %2912 = vmatprep.mubr.bf16.mxu1 %v1809_v20  ;;  %v1760_v57 = vsel %vm1632_vm11, %v1568_v44, %v1696_v6  ;;  %v6182_v6 = vld [vmem:[%s9210_s5 + $0x34c] ss:$16 sps:$4 sm:$0xff]   ;;  %v7399_v20 = vmul.f32 0.2, %v7348_v8 }
 0x1dd   : > { %2742 = vmatpush1.bf16.msra.mxu0 %v6159_v42  ;;  %2968 = vmatpush1.bf16.msra.mxu1 %v6162_v43  ;;  %v1581_v22 = vadd.f32 %v7090_v26, %v1378_v19  ;;  %v6176_v42 = vld [vmem:[%s9210_s5 + $0x32c] ss:$16 sps:$4 sm:$0xff]   ;;  %v7358_v43 = vmul.f32 0.2, %v7190_v12  ;;  %v1705_v55 = vmul.f32 0.2, %v7331_v9  ;;  %v1808_v19 = vpack.c.bf16 %v1764_v36, %v1760_v57 }
 0x1de   : > { %2743 = vmatprep.subr.bf16.mxu0 %v6167_v48  ;;  %v7375_v48 = vadd.f32 %v7093_v35, %v7251_v13  ;;  %2969 = vmatprep.subr.bf16.mxu1 %v6170_v2  ;;  %v7390_v13 = vadd.f32 %v7084_v33, %v1376_v56  ;;  %vm1641_vm12 = vcmp.gt.f32.partialorder %v7331_v9, 0.0  ;;  %v7409_v36 = vmul.f32 0.2, %v7231_v59  ;;  %v6197_v39 = vld [vmem:[%s9210_s5 + $0x3a4] ss:$16 sps:$4 sm:$0xff]  }
 0x1df   : > { %v1709_v11 = vmul.f32 0.2, %v1581_v22  ;;  %vm1645_vm13 = vcmp.gt.f32.partialorder %v1581_v22, 0.0  ;;  %v7415_v57 = vmul.f32 0.2, %v7249_v10  ;;  %v7429_v31 = vadd.f32 %v7093_v35, %v1491_v16 }
 0x1e0   : > { %9242 = vst [vmem:[#allocation10_spill] sm:$0xff] %v7409_v36  ;;  %2687 = vmatmul.mubr.bf16.gmra.mrb[48].mxu0 %v1808_v19  ;;  %2913 = vmatmul.mubr.bf16.gmra.mrb[48].mxu1 %v1808_v19  ;;  %v1708_v19 = vmul.f32 0.2, %v7390_v13  ;;  %v1769_v16 = vsel %vm1641_vm12, %v7331_v9, %v1705_v55  ;;  %vm1640_vm14 = vcmp.gt.f32.partialorder %v7379_v49, 0.0  ;;  %vm1644_vm15 = vcmp.gt.f32.partialorder %v7390_v13, 0.0 }
 0x1e1   : > { %v1382_v24 = vpop.f32.mrb[24].mxu0  ;;  %v1495_v38 = vpop.f32.mrb[24].mxu1  ;;  %2744 = vmatpush1.bf16.msra.mxu0 %v6165_v63  ;;  %2970 = vmatpush1.bf16.msra.mxu1 %v6168_v0  ;;  %v7406_v0 = vsel %vm1610_vm8, %v7109_v3, %v7273_v37  ;;  %9244 = vst [vmem:[#allocation12_spill] sm:$0xff] %v7415_v57  ;;  %v6177_v3 = vld [vmem:[%s9210_s5 + $0x340] ss:$16 sps:$4 sm:$0xff]   ;;  %vm1646_vm10 = vcmp.gt.f32.partialorder %v7341_v4, 0.0 }
 0x1e2   : > { %v7393_v23 = vadd.f32 %v7087_v34, %v1495_v38  ;;  %v1384_v44 = vpop.f32.mrb[25].mxu0  ;;  %v1497_v2 = vpop.f32.mrb[25].mxu1  ;;  %2745 = vmatprep.subr.bf16.mxu0 %v6173_v15  ;;  %2971 = vmatprep.subr.bf16.mxu1 %v6176_v42  ;;  %v7412_v38 = vmul.f32 0.2, %v7368_v47  ;;  %v7419_v15 = vadd.f32 %v7093_v35, %v7296_v52  ;;  %v7425_v37 = vmul.f32 0.2, %v7375_v48 }
 0x1e3   : > { %v1386_v56 = vpop.f32.mrb[26].mxu0  ;;  %v1499_v63 = vpop.f32.mrb[26].mxu1  ;;  %v1704_v42 = vmul.f32 0.2, %v7379_v49  ;;  %v7432_v30 = vadd.f32 %v7084_v33, %v1382_v24  ;;  %v6180_v52 = vld [vmem:[%s9210_s5 + $0x348] ss:$16 sps:$4 sm:$0xff]   ;;  %v1773_v24 = vsel %vm1645_vm13, %v1581_v22, %v1709_v11 }
 0x1e4   : > { %9243 = vst [vmem:[#allocation11_spill] sm:$0xff] %v7412_v38  ;;  %9245 = vst [vmem:[#allocation13_spill] sm:$0xff] %v7425_v37  ;;  %v7439_v28 = vadd.f32 %v7087_v34, %v1499_v63  ;;  %v1388_v25 = vpop.f32.mrb[27].mxu0  ;;  %v1501_v32 = vpop.f32.mrb[27].mxu1  ;;  %v6188_v9 = vld [vmem:[%s9210_s5 + $0x36c] ss:$16 sps:$4 sm:$0xff]  }
 0x1e5   : > { %2746 = vmatpush1.bf16.msra.mxu0 %v6171_v18  ;;  %2972 = vmatpush1.bf16.msra.mxu1 %v6174_v60  ;;  %v7451_v18 = vadd.f32 %v7090_v26, %v1388_v25  ;;  %v1813_v60 = vpack.c.bf16 %v1773_v24, %v1769_v16  ;;  %v7457_v22 = vmul.f32 0.2, %v7294_v51  ;;  %v7460_v55 = vmul.f32 0.2, %v7419_v15 }
 0x1e6   : > { %2747 = vmatprep.subr.bf16.mxu0 %v6179_v58  ;;  %v7463_v11 = vmul.f32 0.2, %v7341_v4  ;;  %v7466_v25 = vadd.f32 %v7090_v26, %v1384_v44  ;;  %2973 = vmatprep.subr.bf16.mxu1 %v6182_v6  ;;  %v6183_v58 = vld [vmem:[%s9210_s5 + $0x360] ss:$16 sps:$4 sm:$0xff]   ;;  %v7473_v16 = vmul.f32 0.2, %v7429_v31  ;;  %v7477_v24 = vadd.f32 %v7093_v35, %v1497_v2 }
 0x1e7   : > { %9246 = vst [vmem:[#allocation14_spill] sm:$0xff] %v7457_v22  ;;  %9247 = vst [vmem:[#allocation15_spill] sm:$0xff] %v7460_v55  ;;  %vm1648_vm1 = vcmp.gt.f32.partialorder %v7432_v30, 0.0  ;;  %2696 = vmatprep.mubr.bf16.mxu0 %v1813_v60  ;;  %2922 = vmatprep.mubr.bf16.mxu1 %v1813_v60  ;;  %v6186_v44 = vld [vmem:[%s9210_s5 + $0x368] ss:$16 sps:$4 sm:$0xff]   ;;  %v1768_v22 = vsel %vm1640_vm14, %v7379_v49, %v1704_v42  ;;  %v1772_v2 = vsel %vm1644_vm15, %v7390_v13, %v1708_v19 }
 0x1e8   : > { %9248 = vst [vmem:[#allocation16_spill] sm:$0xff] %v7463_v11  ;;  %9249 = vst [vmem:[#allocation17_spill] sm:$0xff] %v7473_v16  ;;  %v7480_v11 = vadd.f32 %v7084_v33, %v1386_v56  ;;  %v7487_v6 = vmul.f32 0.2, %v7432_v30  ;;  %v6191_v55 = vld [vmem:[%s9210_s5 + $0x384] ss:$16 sps:$4 sm:$0xff]   ;;  %v1812_v42 = vpack.c.bf16 %v1772_v2, %v1768_v22 }
 0x1e9   : > { %v1392_v63 = vpop.f32.mrb[28].mxu0  ;;  %v1505_v57 = vpop.f32.mrb[28].mxu1  ;;  %2748 = vmatpush1.bf16.msra.mxu0 %v6177_v3  ;;  %2974 = vmatpush1.bf16.msra.mxu1 %v6180_v52  ;;  %v1717_v49 = vmul.f32 0.2, %v7451_v18  ;;  %v6194_v19 = vld [vmem:[%s9210_s5 + $0x38c] ss:$16 sps:$4 sm:$0xff]  }
 0x1ea   : > { %v7496_v56 = vadd.f32 %v7087_v34, %v1505_v57  ;;  %v1394_v60 = vpop.f32.mrb[29].mxu0  ;;  %v1507_v16 = vpop.f32.mrb[29].mxu1  ;;  %2749 = vmatprep.subr.bf16.mxu0 %v6185_v29  ;;  %v7505_v13 = vadd.f32 %v7084_v33, %v1392_v63  ;;  %2975 = vmatprep.subr.bf16.mxu1 %v6188_v9  ;;  %v7516_v22 = vmul.f32 0.2, %v7393_v23  ;;  %vm1649_vm7 = vcmp.gt.f32.partialorder %v7466_v25, 0.0 }
 0x1eb   : > { %v7508_v57 = vadd.f32 %v7090_v26, %v1394_v60  ;;  %v1396_v3 = vpop.f32.mrb[30].mxu0  ;;  %v1509_v52 = vpop.f32.mrb[30].mxu1  ;;  %v1713_v29 = vmul.f32 0.2, %v7466_v25  ;;  %vm1653_vm8 = vcmp.gt.f32.partialorder %v7451_v18, 0.0  ;;  %vm1652_vm11 = vcmp.gt.f32.partialorder %v7480_v11, 0.0  ;;  %2697 = vmatmul.mubr.bf16.gmra.mrb[52].mxu0 %v1812_v42  ;;  %2923 = vmatmul.mubr.bf16.gmra.mrb[52].mxu1 %v1812_v42 }
 0x1ec   : > { %9250 = vst [vmem:[#allocation18_spill] sm:$0xff] %v7516_v22  ;;  %v6189_v63 = vld [vmem:[%s9210_s5 + $0x380] ss:$16 sps:$4 sm:$0xff]   ;;  %v6192_v9 = vld [vmem:[%s9210_s5 + $0x388] ss:$16 sps:$4 sm:$0xff]   ;;  %v7535_v22 = vadd.f32 %v7093_v35, %v1501_v32  ;;  %v1596_v37 = vadd.f32 %v7084_v33, %v1396_v3  ;;  %v7546_v32 = vadd.f32 %v7087_v34, %v1509_v52  ;;  %v1398_v38 = vpop.f32.mrb[31].mxu0  ;;  %v1781_v33 = vsel %vm1653_vm8, %v7451_v18, %v1717_v49 }
 0x1ed   : > { %v7530_v2 = vmul.f32 0.2, %v7477_v24  ;;  %v1716_v60 = vmul.f32 0.2, %v7480_v11  ;;  %2750 = vmatpush1.bf16.msra.mxu0 %v6183_v58  ;;  %v1721_v36 = vmul.f32 0.2, %v7508_v57  ;;  %2976 = vmatpush1.bf16.msra.mxu1 %v6186_v44 }
 0x1ee   : > { %v1511_v42 = vpop.f32.mrb[31].mxu1  ;;  %v1720_v58 = vmul.f32 0.2, %v7505_v13  ;;  %vm1657_vm13 = vcmp.gt.f32.partialorder %v7508_v57, 0.0  ;;  %2751 = vmatprep.subr.bf16.mxu0 %v6191_v55  ;;  %v6200_v34 = vld [vmem:[%s9210_s5 + $0x3ac] ss:$16 sps:$4 sm:$0xff]   ;;  %2977 = vmatprep.subr.bf16.mxu1 %v6194_v19 }
 0x1ef   : > { %9251 = vst [vmem:[#allocation19_spill] sm:$0xff] %v7530_v2  ;;  %v7542_v2 = vadd.f32 %v7093_v35, %v1507_v16  ;;  %v1597_v16 = vadd.f32 %v7090_v26, %v1398_v38  ;;  %vm1656_vm14 = vcmp.gt.f32.partialorder %v7505_v13, 0.0  ;;  %v1724_v44 = vmul.f32 0.2, %v1596_v37  ;;  %v6195_v49 = vld [vmem:[%s9210_s5 + $0x3a0] ss:$16 sps:$4 sm:$0xff]  }
 0x1f0   : > { %v7566_v3 = vadd.f32 %v7093_v35, %v1511_v42  ;;  %v1777_v26 = vsel %vm1649_vm7, %v7466_v25, %v1713_v29  ;;  %vm1642_vm8 = vcmp.gt.f32.partialorder %v7294_v51, 0.0  ;;  %vm1647_vm9 = vcmp.gt.f32.partialorder %v7429_v31, 0.0  ;;  %v6203_v19 = vld [vmem:[%s9210_s5 + $0x3c4] ss:$16 sps:$4 sm:$0xff]  }
 0x1f1   : > { %vm1660_vm12 = vcmp.gt.f32.partialorder %v1596_v37, 0.0  ;;  %vm1661_vm6 = vcmp.gt.f32.partialorder %v1597_v16, 0.0  ;;  %v1725_v38 = vmul.f32 0.2, %v1597_v16  ;;  %v1776_v35 = vsel %vm1648_vm1, %v7432_v30, %v7487_v6  ;;  %2752 = vmatpush1.bf16.msra.mxu0 %v6189_v63  ;;  %2978 = vmatpush1.bf16.msra.mxu1 %v6192_v9  ;;  %v6198_v30 = vld [vmem:[%s9210_s5 + $0x3a8] ss:$16 sps:$4 sm:$0xff]  }
 0x1f2   : > { %vm1651_vm15 = vcmp.gt.f32.partialorder %v7477_v24, 0.0  ;;  %v7580_v18 = vmul.f32 0.2, %v7439_v28  ;;  %v1817_v55 = vpack.c.bf16 %v1781_v33, %v1777_v26  ;;  %v1780_v25 = vsel %vm1652_vm11, %v7480_v11, %v1716_v60  ;;  %2753 = vmatprep.subr.bf16.mxu0 %v6197_v39  ;;  %2979 = vmatprep.subr.bf16.mxu1 %v6200_v34  ;;  %v6206_v39 = vld [vmem:[%s9210_s5 + $0x3cc] ss:$16 sps:$4 sm:$0xff]  }
 0x1f3   : > { %v1785_v6 = vsel %vm1657_vm13, %v7508_v57, %v1721_v36  ;;  %vm1650_vm1 = vcmp.gt.f32.partialorder %v7393_v23, 0.0  ;;  %vm1654_vm7 = vcmp.gt.f32.partialorder %v7439_v28, 0.0  ;;  %vm1655_vm11 = vcmp.gt.f32.partialorder %v7535_v22, 0.0 }
 0x1f4   : > { %v1816_v11 = vpack.c.bf16 %v1780_v25, %v1776_v35  ;;  %v1789_v52 = vsel %vm1661_vm6, %v1597_v16, %v1725_v38  ;;  %v1784_v29 = vsel %vm1656_vm14, %v7505_v13, %v1720_v58  ;;  %v7605_v36 = vmul.f32 0.2, %v7535_v22  ;;  %2706 = vmatprep.mubr.bf16.mxu0 %v1817_v55  ;;  %2932 = vmatprep.mubr.bf16.mxu1 %v1817_v55  ;;  %v6209_v16 = vld [vmem:[%s9210_s5 + $0x3e4] ss:$16 sps:$4 sm:$0xff]   ;;  %v6210_v38 = vld [vmem:[%s9210_s5 + $0x3e8] ss:$16 sps:$4 sm:$0xff]  }
 0x1f5   : > { %v1821_v57 = vpack.c.bf16 %v1789_v52, %v1785_v6  ;;  %v1788_v63 = vsel %vm1660_vm12, %v1596_v37, %v1724_v44  ;;  %v1743_v9 = vsel %vm1615_vm0, %v7244_v7, %v7299_v53  ;;  %vm1658_vm6 = vcmp.gt.f32.partialorder %v7496_v56, 0.0  ;;  %2754 = vmatpush1.bf16.msra.mxu0 %v6195_v49  ;;  %2980 = vmatpush1.bf16.msra.mxu1 %v6198_v30  ;;  %v6201_v7 = vld [vmem:[%s9210_s5 + $0x3c0] ss:$16 sps:$4 sm:$0xff]   ;;  %v6204_v53 = vld [vmem:[%s9210_s5 + $0x3c8] ss:$16 sps:$4 sm:$0xff]  }
 0x1f6   : > { %v7617_v13 = vmul.f32 0.2, %v7496_v56  ;;  %2707 = vmatmul.mubr.bf16.gmra.mrb[56].mxu0 %v1816_v11  ;;  %2933 = vmatmul.mubr.bf16.gmra.mrb[56].mxu1 %v1816_v11  ;;  %v1820_v60 = vpack.c.bf16 %v1788_v63, %v1784_v29  ;;  %v7620_v42 = vpack.c.bf16 %v1743_v9, %v7325_v1  ;;  %v1742_v37 = vsel %vm1614_vm2, %v7122_v17, %v7291_v50  ;;  %v9258_v44 = vld [vmem:[#allocation11_spill] sm:$0xff]  ;;  %v9268_v30 = vld [vmem:[#allocation17_spill] sm:$0xff]  ;;  %v9269_v11 = vld [vmem:[#allocation14_spill] sm:$0xff] }
 0x1f7   : > { %vm1659_vm12 = vcmp.gt.f32.partialorder %v7542_v2, 0.0  ;;  %v7634_v1 = vpack.c.bf16 %v1742_v37, %v7406_v0  ;;  %v1747_v17 = vsel %vm1619_vm3, %v7277_v40, %v7328_v14  ;;  %v1751_v50 = vsel %vm1623_vm4, %v7303_v54, %v7344_v21  ;;  %2716 = vmatprep.mubr.bf16.mxu0 %v1821_v57  ;;  %2755 = vmatprep.subr.bf16.mxu0 %v6203_v19  ;;  %v6212_v0 = vld [vmem:[%s9210_s5 + $0x3ec] ss:$16 sps:$4 sm:$0xff]  }
 0x1f8   : > { %v1723_v58 = vmul.f32 0.2, %v7542_v2  ;;  %v7651_v33 = vpack.c.bf16 %v1751_v50, %v1747_v17  ;;  %v1746_v40 = vsel %vm1618_vm5, %v7149_v46, %v7308_v27  ;;  %vm9252_vm0 = vcmp.gt.f32.partialorder %v7172_v61, 0.0  ;;  %2942 = vmatprep.mubr.bf16.mxu1 %v1821_v57  ;;  %2981 = vmatprep.subr.bf16.mxu1 %v6206_v39  ;;  %v9270_v19 = vld [vmem:[#allocation16_spill] sm:$0xff]  ;;  %v9271_v57 = vld [vmem:[#allocation19_spill] sm:$0xff]  ;;  %v9273_v9 = vld [vmem:[#allocation18_spill] sm:$0xff] }
 0x1f9   : > { %v1750_v54 = vsel %vm9252_vm0, %v7172_v61, %v7338_v5  ;;  %vm1662_vm2 = vcmp.gt.f32.partialorder %v7546_v32, 0.0  ;;  %vm9253_vm3 = vcmp.gt.f32.partialorder %v7312_v62, 0.0  ;;  %vm9254_vm4 = vcmp.gt.f32.partialorder %v7348_v8, 0.0  ;;  %v9256_v5 = vld [vmem:[#allocation9_spill] sm:$0xff]  ;;  %2756 = vmatpush1.bf16.msra.mxu0 %v6201_v7  ;;  %2982 = vmatpush1.bf16.msra.mxu1 %v6204_v53  ;;  %v6218_v29 = vld [vmem:[%s9212_s7 + $0xc] ss:$16 sps:$4 sm:$0xff]  }
 0x1fa   : > { %v7662_v14 = vpack.c.bf16 %v1750_v54, %v1746_v40  ;;  %v1755_v21 = vsel %vm9253_vm3, %v7312_v62, %v7361_v45  ;;  %v1759_v46 = vsel %vm9254_vm4, %v7348_v8, %v7399_v20  ;;  %vm9255_vm5 = vcmp.gt.f32.partialorder %v7190_v12, 0.0  ;;  %v9260_v20 = vld [vmem:[#allocation13_spill] sm:$0xff]  ;;  %2757 = vmatprep.subr.bf16.mxu0 %v6209_v16  ;;  %2983 = vmatprep.subr.bf16.mxu1 %v6212_v0  ;;  %v9272_v63 = vld [vmem:[#allocation8_spill] sm:$0xff] }
 0x1fb   : > { %v7672_v27 = vpack.c.bf16 %v1759_v46, %v1755_v21  ;;  %v1754_v61 = vsel %vm9255_vm5, %v7190_v12, %v7358_v43  ;;  %vm9257_vm13 = vcmp.gt.f32.partialorder %v9256_v5, 0.0  ;;  %vm9259_vm14 = vcmp.gt.f32.partialorder %v7368_v47, 0.0  ;;  %v9262_v43 = vld [vmem:[#allocation10_spill] sm:$0xff]  ;;  %v6233_v40 = vld [vmem:[%s9212_s7 + $0x64] ss:$16 sps:$4 sm:$0xff]  }
 0x1fc   : > { %v1758_v34 = vsel %vm9257_vm13, %v9256_v5, %v7364_v41  ;;  %v1763_v62 = vsel %vm9259_vm14, %v7368_v47, %v9258_v44  ;;  %v1726_v45 = vmul.f32 0.2, %v7546_v32  ;;  %vm9261_vm0 = vcmp.gt.f32.partialorder %v7375_v48, 0.0  ;;  %v6207_v47 = vld [vmem:[%s9210_s5 + $0x3e0] ss:$16 sps:$4 sm:$0xff]  }
 0x1fd   : > { %v7687_v8 = vpack.c.bf16 %v1758_v34, %v1754_v61  ;;  %v1767_v12 = vsel %vm9261_vm0, %v7375_v48, %v9260_v20  ;;  %vm9263_vm3 = vcmp.gt.f32.partialorder %v7231_v59, 0.0  ;;  %v1727_v26 = vmul.f32 0.2, %v7566_v3  ;;  %v9264_v48 = vld [vmem:[#allocation12_spill] sm:$0xff]  ;;  %2758 = vmatpush1.bf16.msra.mxu0 %v6207_v47  ;;  %2984 = vmatpush1.bf16.msra.mxu1 %v6210_v38  ;;  %v6245_v34 = vld [vmem:[%s9212_s7 + $0xa4] ss:$16 sps:$4 sm:$0xff]  }
 0x1fe   : > { %v1762_v41 = vsel %vm9263_vm3, %v7231_v59, %v9262_v43  ;;  %v7704_v35 = vpack.c.bf16 %v1767_v12, %v1763_v62  ;;  %vm9265_vm4 = vcmp.gt.f32.partialorder %v7249_v10, 0.0  ;;  %v9266_v59 = vld [vmem:[#allocation15_spill] sm:$0xff]  ;;  %vm9267_vm5 = vcmp.gt.f32.partialorder %v7419_v15, 0.0  ;;  %2717 = vmatmul.mubr.bf16.gmra.mrb[60].mxu0 %v1820_v60  ;;  %2943 = vmatmul.mubr.bf16.gmra.mrb[60].mxu1 %v1820_v60  ;;  %v6236_v54 = vld [vmem:[%s9212_s7 + $0x6c] ss:$16 sps:$4 sm:$0xff]  }
 0x1ff   : > { %v1766_v55 = vsel %vm9265_vm4, %v7249_v10, %v9264_v48  ;;  %v1771_v25 = vsel %vm9267_vm5, %v7419_v15, %v9266_v59  ;;  %v1775_v6 = vsel %vm1647_vm9, %v7429_v31, %v9268_v30  ;;  %v1770_v52 = vsel %vm1642_vm8, %v7294_v51, %v9269_v11  ;;  %v6215_v15 = vld [vmem:[%s9212_s7 + $0x4] ss:$16 sps:$4 sm:$0xff]   ;;  %2759 = vmatprep.mubr.bf16.mxu0 %v9272_v63  ;;  %v6219_v17 = vld [vmem:[%s9212_s7 + $0x20] ss:$16 sps:$4 sm:$0xff]   ;;  %v6222_v50 = vld [vmem:[%s9212_s7 + $0x28] ss:$16 sps:$4 sm:$0xff]  }
 0x200   : > { %v7714_v49 = vpack.c.bf16 %v1766_v55, %v1762_v41  ;;  %v1774_v10 = vsel %vm1646_vm10, %v7341_v4, %v9270_v19  ;;  %vm1663_vm9 = vcmp.gt.f32.partialorder %v7566_v3, 0.0  ;;  %v7735_v31 = vpack.c.bf16 %v1775_v6, %v1771_v25  ;;  %2985 = vmatprep.mubr.bf16.mxu1 %v9272_v63  ;;  %4080 = vmatprep.subr.bf16.mxu0 %v6215_v15  ;;  %v6225_v16 = vld [vmem:[%s9212_s7 + $0x40] ss:$16 sps:$4 sm:$0xff]   ;;  %v6228_v0 = vld [vmem:[%s9212_s7 + $0x48] ss:$16 sps:$4 sm:$0xff]  }
 0x201   : > { %v7737_v51 = vpack.c.bf16 %v1774_v10, %v1770_v52  ;;  %v1779_v4 = vsel %vm1651_vm15, %v7477_v24, %v9271_v57  ;;  %v1783_v39 = vsel %vm1655_vm11, %v7535_v22, %v7605_v36  ;;  %v1778_v60 = vsel %vm1650_vm1, %v7393_v23, %v9273_v9  ;;  %4306 = vmatprep.subr.bf16.mxu1 %v6218_v29  ;;  %v6231_v21 = vld [vmem:[%s9212_s7 + $0x60] ss:$16 sps:$4 sm:$0xff]   ;;  %v6234_v46 = vld [vmem:[%s9212_s7 + $0x68] ss:$16 sps:$4 sm:$0xff]   ;;  %v6248_v44 = vld [vmem:[%s9212_s7 + $0xac] ss:$16 sps:$4 sm:$0xff]  }
 0x202   : > { %v1782_v37 = vsel %vm1654_vm7, %v7439_v28, %v7580_v18  ;;  %v7757_v24 = vpack.c.bf16 %v1783_v39, %v1779_v4  ;;  %v1787_v22 = vsel %vm1659_vm12, %v7542_v2, %v1723_v58  ;;  %v1791_v36 = vsel %vm1663_vm9, %v7566_v3, %v1727_v26  ;;  %v6213_v2 = vld [vmem:[%s9212_s7] ss:$16 sps:$4 sm:$0xff]   ;;  %v6216_v3 = vld [vmem:[%s9212_s7 + $0x8] ss:$16 sps:$4 sm:$0xff]   ;;  %v6227_v58 = vld [vmem:[%s9212_s7 + $0x44] ss:$16 sps:$4 sm:$0xff]  }
 0x203   : > { %v7759_v7 = vpack.c.bf16 %v1782_v37, %v1778_v60  ;;  %v1786_v23 = vsel %vm1658_vm6, %v7496_v56, %v7617_v13  ;;  %v1790_v28 = vsel %vm1662_vm2, %v7546_v32, %v1726_v45  ;;  %v7774_v18 = vpack.c.bf16 %v1791_v36, %v1787_v22  ;;  %v6221_v56 = vld [vmem:[%s9212_s7 + $0x24] ss:$16 sps:$4 sm:$0xff]   ;;  %v6224_v32 = vld [vmem:[%s9212_s7 + $0x2c] ss:$16 sps:$4 sm:$0xff]   ;;  %v6237_v61 = vld [vmem:[%s9212_s7 + $0x80] ss:$16 sps:$4 sm:$0xff]  }
 0x204   : > { %v7776_v53 = vpack.c.bf16 %v1790_v28, %v1786_v23  ;;  %v9274_v13 = vld [vmem:[#allocation7_spill] sm:$0xff]  ;;  %v6260_v41 = vld [vmem:[%s9212_s7 + $0xec] ss:$16 sps:$4 sm:$0xff]  }
 0x205   : > { %v6240_v5 = vld [vmem:[%s9212_s7 + $0x88] ss:$16 sps:$4 sm:$0xff]   ;;  %v6243_v62 = vld [vmem:[%s9212_s7 + $0xa0] ss:$16 sps:$4 sm:$0xff]   ;;  %v6257_v43 = vld [vmem:[%s9212_s7 + $0xe4] ss:$16 sps:$4 sm:$0xff]  }
 0x206   : > { %2760 = vmatmul.mubr.bf16.vlgmr.msra.gmra.mrb[32].mxu0 %v9274_v13  ;;  %2986 = vmatmul.mubr.bf16.vlgmr.msra.gmra.mrb[32].mxu1 %v9274_v13  ;;  %v6246_v45 = vld [vmem:[%s9212_s7 + $0xa8] ss:$16 sps:$4 sm:$0xff]   ;;  %v6249_v20 = vld [vmem:[%s9212_s7 + $0xc0] ss:$16 sps:$4 sm:$0xff]   ;;  %v6266_v38 = vld [vmem:[%s9212_s7 + $0x10c] ss:$16 sps:$4 sm:$0xff]  }
 0x207   : > { %2769 = vmatprep.mubr.bf16.mxu0 %v7620_v42  ;;  %2995 = vmatprep.mubr.bf16.mxu1 %v7620_v42  ;;  %v6230_v42 = vld [vmem:[%s9212_s7 + $0x4c] ss:$16 sps:$4 sm:$0xff]   ;;  %v6252_v12 = vld [vmem:[%s9212_s7 + $0xc8] ss:$16 sps:$4 sm:$0xff]   ;;  %v6255_v26 = vld [vmem:[%s9212_s7 + $0xe0] ss:$16 sps:$4 sm:$0xff]  }
 0x208   : > { %4081 = vmatpush1.bf16.msra.mxu0 %v6213_v2  ;;  %4307 = vmatpush1.bf16.msra.mxu1 %v6216_v3  ;;  %v6258_v47 = vld [vmem:[%s9212_s7 + $0xe8] ss:$16 sps:$4 sm:$0xff]   ;;  %v6269_v55 = vld [vmem:[%s9212_s7 + $0x124] ss:$16 sps:$4 sm:$0xff]   ;;  %v6272_v59 = vld [vmem:[%s9212_s7 + $0x12c] ss:$16 sps:$4 sm:$0xff]  }
 0x209   : > { %4082 = vmatprep.subr.bf16.mxu0 %v6221_v56  ;;  %4308 = vmatprep.subr.bf16.mxu1 %v6224_v32  ;;  %v6264_v48 = vld [vmem:[%s9212_s7 + $0x108] ss:$16 sps:$4 sm:$0xff]   ;;  %v6267_v25 = vld [vmem:[%s9212_s7 + $0x120] ss:$16 sps:$4 sm:$0xff]   ;;  %v6278_v6 = vld [vmem:[%s9212_s7 + $0x14c] ss:$16 sps:$4 sm:$0xff]  }
 0x20a   : > { %v6270_v30 = vld [vmem:[%s9212_s7 + $0x128] ss:$16 sps:$4 sm:$0xff]   ;;  %v6273_v11 = vld [vmem:[%s9212_s7 + $0x140] ss:$16 sps:$4 sm:$0xff]   ;;  %v6281_v19 = vld [vmem:[%s9212_s7 + $0x164] ss:$16 sps:$4 sm:$0xff]  }
 0x20b   : > { %v6276_v52 = vld [vmem:[%s9212_s7 + $0x148] ss:$16 sps:$4 sm:$0xff]   ;;  %v6284_v10 = vld [vmem:[%s9212_s7 + $0x16c] ss:$16 sps:$4 sm:$0xff]   ;;  %v6279_v15 = vld [vmem:[%s9212_s7 + $0x160] ss:$16 sps:$4 sm:$0xff]  }
 0x20c   : > { %4083 = vmatpush1.bf16.msra.mxu0 %v6219_v17  ;;  %4309 = vmatpush1.bf16.msra.mxu1 %v6222_v50  ;;  %v6282_v29 = vld [vmem:[%s9212_s7 + $0x168] ss:$16 sps:$4 sm:$0xff]   ;;  %v6285_v57 = vld [vmem:[%s9212_s7 + $0x180] ss:$16 sps:$4 sm:$0xff]   ;;  %v6293_v63 = vld [vmem:[%s9212_s7 + $0x1a4] ss:$16 sps:$4 sm:$0xff]  }
 0x20d   : > { %4084 = vmatprep.subr.bf16.mxu0 %v6227_v58  ;;  %4310 = vmatprep.subr.bf16.mxu1 %v6230_v42  ;;  %v6288_v4 = vld [vmem:[%s9212_s7 + $0x188] ss:$16 sps:$4 sm:$0xff]   ;;  %v6291_v39 = vld [vmem:[%s9212_s7 + $0x1a0] ss:$16 sps:$4 sm:$0xff]   ;;  %v6296_v60 = vld [vmem:[%s9212_s7 + $0x1ac] ss:$16 sps:$4 sm:$0xff]  }
 0x20e   : > { %2770 = vmatmul.mubr.bf16.gmra.mrb[36].mxu0 %v7634_v1  ;;  %2996 = vmatmul.mubr.bf16.gmra.mrb[36].mxu1 %v7634_v1  ;;  %v6239_v1 = vld [vmem:[%s9212_s7 + $0x84] ss:$16 sps:$4 sm:$0xff]   ;;  %v6294_v9 = vld [vmem:[%s9212_s7 + $0x1a8] ss:$16 sps:$4 sm:$0xff]   ;;  %v6297_v37 = vld [vmem:[%s9212_s7 + $0x1c0] ss:$16 sps:$4 sm:$0xff]  }
 0x20f   : > { %2779 = vmatprep.mubr.bf16.mxu0 %v7651_v33  ;;  %3005 = vmatprep.mubr.bf16.mxu1 %v7651_v33  ;;  %v6242_v33 = vld [vmem:[%s9212_s7 + $0x8c] ss:$16 sps:$4 sm:$0xff]   ;;  %v6305_v36 = vld [vmem:[%s9212_s7 + $0x1e4] ss:$16 sps:$4 sm:$0xff]   ;;  %v6303_v28 = vld [vmem:[%s9212_s7 + $0x1e0] ss:$16 sps:$4 sm:$0xff]  }
 0x210   : > { %4085 = vmatpush1.bf16.msra.mxu0 %v6225_v16  ;;  %4311 = vmatpush1.bf16.msra.mxu1 %v6228_v0  ;;  %v6302_v22 = vld [vmem:[%s9212_s7 + $0x1cc] ss:$16 sps:$4 sm:$0xff]   ;;  %v1952_v3 = vld [vmem:[%s9211_s6] sm:$0xf]  ;;  %v9277_v50 = vld [vmem:[#allocation5_spill] sm:$0xff] }
 0x211   : > { %4086 = vmatprep.subr.bf16.mxu0 %v6233_v40  ;;  %4312 = vmatprep.subr.bf16.mxu1 %v6236_v54  ;;  %v6308_v23 = vld [vmem:[%s9212_s7 + $0x1ec] ss:$16 sps:$4 sm:$0xff]   ;;  %v9275_v56 = vld [vmem:[#allocation3_spill] sm:$0xff]  ;;  %v8010_v58 = vrot.slane %v1952_v3, %v9277_v50 }
 0x212   : > { %v6314_v2 = vld [vmem:[%s9212_s7 + $0x20c] ss:$16 sps:$4 sm:$0xff]   ;;  %v8004_v32 = vrot.slane %v1952_v3, %v9275_v56 }
 0x213   : > { %v9276_v13 = vld [vmem:[#allocation4_spill] sm:$0xff]  ;;  %v9278_v0 = vld [vmem:[#allocation6_spill] sm:$0xff] }
 0x214   : > { %4087 = vmatpush1.bf16.msra.mxu0 %v6231_v21  ;;  %4313 = vmatpush1.bf16.msra.mxu1 %v6234_v46  ;;  %v8007_v17 = vrot.slane %v1952_v3, %v9276_v13  ;;  %v8013_v40 = vrot.slane %v1952_v3, %v9278_v0 }
 0x215   : > { %4088 = vmatprep.subr.bf16.mxu0 %v6239_v1  ;;  %4314 = vmatprep.subr.bf16.mxu1 %v6242_v33 }
 0x216   : > { %2780 = vmatmul.mubr.bf16.gmra.mrb[40].mxu0 %v7662_v14  ;;  %3006 = vmatmul.mubr.bf16.gmra.mrb[40].mxu1 %v7662_v14  ;;  %v6251_v14 = vld [vmem:[%s9212_s7 + $0xc4] ss:$16 sps:$4 sm:$0xff]  }
 0x217   : > { %2789 = vmatprep.mubr.bf16.mxu0 %v7672_v27  ;;  %3015 = vmatprep.mubr.bf16.mxu1 %v7672_v27  ;;  %v6254_v27 = vld [vmem:[%s9212_s7 + $0xcc] ss:$16 sps:$4 sm:$0xff]  }
 0x218   : > { %4089 = vmatpush1.bf16.msra.mxu0 %v6237_v61  ;;  %4315 = vmatpush1.bf16.msra.mxu1 %v6240_v5 }
 0x219   : > { %4090 = vmatprep.subr.bf16.mxu0 %v6245_v34  ;;  %4316 = vmatprep.subr.bf16.mxu1 %v6248_v44 }
 0x21c   : > { %4091 = vmatpush1.bf16.msra.mxu0 %v6243_v62  ;;  %4317 = vmatpush1.bf16.msra.mxu1 %v6246_v45 }
 0x21d   : > { %4092 = vmatprep.subr.bf16.mxu0 %v6251_v14  ;;  %4318 = vmatprep.subr.bf16.mxu1 %v6254_v27 }
 0x21e   : > { %2790 = vmatmul.mubr.bf16.gmra.mrb[44].mxu0 %v7687_v8  ;;  %3016 = vmatmul.mubr.bf16.gmra.mrb[44].mxu1 %v7687_v8  ;;  %v6263_v8 = vld [vmem:[%s9212_s7 + $0x104] ss:$16 sps:$4 sm:$0xff]  }
 0x21f   : > { %2799 = vmatprep.mubr.bf16.mxu0 %v7704_v35  ;;  %3025 = vmatprep.mubr.bf16.mxu1 %v7704_v35  ;;  %v6261_v35 = vld [vmem:[%s9212_s7 + $0x100] ss:$16 sps:$4 sm:$0xff]  }
 0x220   : > { %4093 = vmatpush1.bf16.msra.mxu0 %v6249_v20  ;;  %4319 = vmatpush1.bf16.msra.mxu1 %v6252_v12 }
 0x221   : > { %4094 = vmatprep.subr.bf16.mxu0 %v6257_v43  ;;  %4320 = vmatprep.subr.bf16.mxu1 %v6260_v41 }
 0x224   : > { %4095 = vmatpush1.bf16.msra.mxu0 %v6255_v26  ;;  %4321 = vmatpush1.bf16.msra.mxu1 %v6258_v47 }
 0x225   : > { %4096 = vmatprep.subr.bf16.mxu0 %v6263_v8  ;;  %4322 = vmatprep.subr.bf16.mxu1 %v6266_v38 }
 0x226   : > { %2800 = vmatmul.mubr.bf16.gmra.mrb[48].mxu0 %v7714_v49  ;;  %3026 = vmatmul.mubr.bf16.gmra.mrb[48].mxu1 %v7714_v49  ;;  %v6275_v49 = vld [vmem:[%s9212_s7 + $0x144] ss:$16 sps:$4 sm:$0xff]  }
 0x227   : > { %2809 = vmatprep.mubr.bf16.mxu0 %v7735_v31  ;;  %3035 = vmatprep.mubr.bf16.mxu1 %v7735_v31  ;;  %v6287_v31 = vld [vmem:[%s9212_s7 + $0x184] ss:$16 sps:$4 sm:$0xff]  }
 0x228   : > { %4097 = vmatpush1.bf16.msra.mxu0 %v6261_v35  ;;  %4323 = vmatpush1.bf16.msra.mxu1 %v6264_v48 }
 0x229   : > { %4098 = vmatprep.subr.bf16.mxu0 %v6269_v55  ;;  %4324 = vmatprep.subr.bf16.mxu1 %v6272_v59 }
 0x22c   : > { %4099 = vmatpush1.bf16.msra.mxu0 %v6267_v25  ;;  %4325 = vmatpush1.bf16.msra.mxu1 %v6270_v30 }
 0x22d   : > { %4100 = vmatprep.subr.bf16.mxu0 %v6275_v49  ;;  %4326 = vmatprep.subr.bf16.mxu1 %v6278_v6 }
 0x22e   : > { %2810 = vmatmul.mubr.bf16.gmra.mrb[52].mxu0 %v7737_v51  ;;  %3036 = vmatmul.mubr.bf16.gmra.mrb[52].mxu1 %v7737_v51  ;;  %v6290_v51 = vld [vmem:[%s9212_s7 + $0x18c] ss:$16 sps:$4 sm:$0xff]  }
 0x22f   : > { %2819 = vmatprep.mubr.bf16.mxu0 %v7757_v24  ;;  %3045 = vmatprep.mubr.bf16.mxu1 %v7757_v24  ;;  %v6299_v24 = vld [vmem:[%s9212_s7 + $0x1c4] ss:$16 sps:$4 sm:$0xff]  }
 0x230   : > { %4101 = vmatpush1.bf16.msra.mxu0 %v6273_v11  ;;  %4327 = vmatpush1.bf16.msra.mxu1 %v6276_v52 }
 0x231   : > { %4102 = vmatprep.subr.bf16.mxu0 %v6281_v19  ;;  %4328 = vmatprep.subr.bf16.mxu1 %v6284_v10 }
 0x234   : > { %4103 = vmatpush1.bf16.msra.mxu0 %v6279_v15  ;;  %4329 = vmatpush1.bf16.msra.mxu1 %v6282_v29 }
 0x235   : > { %4104 = vmatprep.subr.bf16.mxu0 %v6287_v31  ;;  %4330 = vmatprep.subr.bf16.mxu1 %v6290_v51 }
 0x236   : > { %2820 = vmatmul.mubr.bf16.gmra.mrb[56].mxu0 %v7759_v7  ;;  %3046 = vmatmul.mubr.bf16.gmra.mrb[56].mxu1 %v7759_v7  ;;  %v6300_v7 = vld [vmem:[%s9212_s7 + $0x1c8] ss:$16 sps:$4 sm:$0xff]  }
 0x237   : > { %2829 = vmatprep.mubr.bf16.mxu0 %v7774_v18  ;;  %3055 = vmatprep.mubr.bf16.mxu1 %v7774_v18  ;;  %v6306_v18 = vld [vmem:[%s9212_s7 + $0x1e8] ss:$16 sps:$4 sm:$0xff]  }
 0x238   : > { %4105 = vmatpush1.bf16.msra.mxu0 %v6285_v57  ;;  %4331 = vmatpush1.bf16.msra.mxu1 %v6288_v4 }
 0x239   : > { %4106 = vmatprep.subr.bf16.mxu0 %v6293_v63  ;;  %4332 = vmatprep.subr.bf16.mxu1 %v6296_v60  ;;  %v6309_v63 = vld [vmem:[%s9212_s7 + $0x200] ss:$16 sps:$4 sm:$0xff]  }
 0x23c   : > { %4107 = vmatpush1.bf16.msra.mxu0 %v6291_v39  ;;  %4333 = vmatpush1.bf16.msra.mxu1 %v6294_v9  ;;  %v6312_v39 = vld [vmem:[%s9212_s7 + $0x208] ss:$16 sps:$4 sm:$0xff]  }
 0x23d   : > { %4108 = vmatprep.subr.bf16.mxu0 %v6299_v24  ;;  %4334 = vmatprep.subr.bf16.mxu1 %v6302_v22  ;;  %v6317_v22 = vld [vmem:[%s9212_s7 + $0x224] ss:$16 sps:$4 sm:$0xff]  }
 0x23e   : > { %2830 = vmatmul.mubr.bf16.gmra.mrb[60].mxu0 %v7776_v53  ;;  %3056 = vmatmul.mubr.bf16.gmra.mrb[60].mxu1 %v7776_v53  ;;  %v6311_v53 = vld [vmem:[%s9212_s7 + $0x204] ss:$16 sps:$4 sm:$0xff]  }
 0x240   : > { %4109 = vmatpush1.bf16.msra.mxu0 %v6297_v37  ;;  %4335 = vmatpush1.bf16.msra.mxu1 %v6300_v7 }
 0x241   : > { %4110 = vmatprep.subr.bf16.mxu0 %v6305_v36  ;;  %4336 = vmatprep.subr.bf16.mxu1 %v6308_v23 }
 0x244   : > { %4111 = vmatpush1.bf16.msra.mxu0 %v6303_v28  ;;  %4337 = vmatpush1.bf16.msra.mxu1 %v6306_v18  ;;  %v6320_v18 = vld [vmem:[%s9212_s7 + $0x22c] ss:$16 sps:$4 sm:$0xff]  }
 0x245   : > { %4193 = vmatprep.subr.bf16.mxu0 %v6311_v53  ;;  %4419 = vmatprep.subr.bf16.mxu1 %v6314_v2 }
 0x2d9   : > { %v2761_v42 = vpop.f32.mrb[32].mxu0  ;;  %v2987_v16 = vpop.f32.mrb[32].mxu1 }
 0x2da   : > { %v5563_v54 = vadd.f32 %v2761_v42, %v8004_v32  ;;  %v5595_v21 = vadd.f32 %v2987_v16, %v8007_v17  ;;  %v2763_v46 = vpop.f32.mrb[33].mxu0  ;;  %v2989_v1 = vpop.f32.mrb[33].mxu1  ;;  %v6315_v42 = vld [vmem:[%s9212_s7 + $0x220] ss:$16 sps:$4 sm:$0xff]  }
 0x2db   : > { %v5564_v33 = vadd.f32 %v2763_v46, %v8010_v58  ;;  %v2765_v61 = vpop.f32.mrb[34].mxu0  ;;  %v2991_v5 = vpop.f32.mrb[34].mxu1  ;;  %v5596_v44 = vadd.f32 %v2989_v1, %v8013_v40 }
 0x2dc   : > { %vm3066_vm10 = vcmp.gt.f32.partialorder %v5563_v54, 0.0  ;;  %v3130_v34 = vmul.f32 0.2, %v5563_v54  ;;  %vm3068_vm15 = vcmp.gt.f32.partialorder %v5595_v21, 0.0  ;;  %v3132_v62 = vmul.f32 0.2, %v5595_v21 }
 0x2dd   : > { %v5565_v45 = vadd.f32 %v2765_v61, %v8004_v32  ;;  %v5597_v14 = vadd.f32 %v2991_v5, %v8007_v17  ;;  %v2767_v27 = vpop.f32.mrb[35].mxu0  ;;  %v2993_v20 = vpop.f32.mrb[35].mxu1  ;;  %vm3067_vm8 = vcmp.gt.f32.partialorder %v5564_v33, 0.0  ;;  %v3131_v12 = vmul.f32 0.2, %v5564_v33 }
 0x2de   : > { %v5566_v43 = vadd.f32 %v2767_v27, %v8010_v58  ;;  %v5598_v41 = vadd.f32 %v2993_v20, %v8013_v40  ;;  %v3194_v8 = vsel %vm3066_vm10, %v5563_v54, %v3130_v34  ;;  %v3196_v48 = vsel %vm3068_vm15, %v5595_v21, %v3132_v62  ;;  %v6318_v21 = vld [vmem:[%s9212_s7 + $0x228] ss:$16 sps:$4 sm:$0xff]   ;;  %v6323_v62 = vld [vmem:[%s9212_s7 + $0x244] ss:$16 sps:$4 sm:$0xff]  }
 0x2df   : > { %vm3070_vm1 = vcmp.gt.f32.partialorder %v5565_v45, 0.0  ;;  %v3134_v26 = vmul.f32 0.2, %v5565_v45  ;;  %vm3072_vm7 = vcmp.gt.f32.partialorder %v5597_v14, 0.0  ;;  %v3136_v47 = vmul.f32 0.2, %v5597_v14 }
 0x2e0   : > { %vm3071_vm11 = vcmp.gt.f32.partialorder %v5566_v43, 0.0  ;;  %v3135_v38 = vmul.f32 0.2, %v5566_v43  ;;  %v3137_v35 = vmul.f32 0.2, %v5598_v41  ;;  %vm3073_vm6 = vcmp.gt.f32.partialorder %v5598_v41, 0.0 }
 0x2e1   : > { %v3198_v55 = vsel %vm3070_vm1, %v5565_v45, %v3134_v26  ;;  %v3200_v59 = vsel %vm3072_vm7, %v5597_v14, %v3136_v47  ;;  %v2771_v25 = vpop.f32.mrb[36].mxu0  ;;  %v8025_v30 = vpop.f32.mrb[36].mxu1  ;;  %v3133_v49 = vmul.f32 0.2, %v5596_v44  ;;  %vm3069_vm12 = vcmp.gt.f32.partialorder %v5596_v44, 0.0 }
 0x2e2   : > { %v3258_v6 = vpack.c.bf16 %v3198_v55, %v3194_v8  ;;  %v8027_v11 = vpack.c.bf16 %v3200_v59, %v3196_v48  ;;  %v5567_v52 = vadd.f32 %v2771_v25, %v8004_v32  ;;  %v2773_v19 = vpop.f32.mrb[37].mxu0  ;;  %v8030_v10 = vpop.f32.mrb[37].mxu1  ;;  %v3199_v51 = vsel %vm3071_vm11, %v5566_v43, %v3135_v38  ;;  %v6324_v26 = vld [vmem:[%s9212_s7 + $0x248] ss:$16 sps:$4 sm:$0xff]   ;;  %v6329_v47 = vld [vmem:[%s9212_s7 + $0x264] ss:$16 sps:$4 sm:$0xff]  }
 0x2e3   : > { %v5568_v15 = vadd.f32 %v2773_v19, %v8010_v58  ;;  %v2775_v29 = vpop.f32.mrb[38].mxu0  ;;  %v8033_v31 = vpop.f32.mrb[38].mxu1  ;;  %v3201_v57 = vsel %vm3073_vm6, %v5598_v41, %v3137_v35  ;;  %v3195_v4 = vsel %vm3067_vm8, %v5564_v33, %v3131_v12  ;;  %v3197_v36 = vsel %vm3069_vm12, %v5596_v44, %v3133_v49  ;;  %v6326_v12 = vld [vmem:[%s9212_s7 + $0x24c] ss:$16 sps:$4 sm:$0xff]   ;;  %v6321_v41 = vld [vmem:[%s9212_s7 + $0x240] ss:$16 sps:$4 sm:$0xff]  }
 0x2e4   : > { %9279 = vst [vmem:[#allocation9_spill] sm:$0xff] %v8027_v11  ;;  %v3138_v9 = vmul.f32 0.2, %v5567_v52  ;;  %v5569_v60 = vadd.f32 %v2775_v29, %v8004_v32  ;;  %v2777_v37 = vpop.f32.mrb[39].mxu0  ;;  %v8044_v24 = vpop.f32.mrb[39].mxu1  ;;  %v3259_v7 = vpack.c.bf16 %v3199_v51, %v3195_v4  ;;  %vm3074_vm2 = vcmp.gt.f32.partialorder %v5567_v52, 0.0 }
 0x2e5   : > { %v3139_v23 = vmul.f32 0.2, %v5568_v15  ;;  %v5570_v28 = vadd.f32 %v2777_v37, %v8010_v58  ;;  %v8053_v53 = vpack.c.bf16 %v3201_v57, %v3197_v36  ;;  %vm3075_vm13 = vcmp.gt.f32.partialorder %v5568_v15, 0.0  ;;  %v6332_v55 = vld [vmem:[%s9212_s7 + $0x26c] ss:$16 sps:$4 sm:$0xff]  }
 0x2e6   : > { %vm3078_vm14 = vcmp.gt.f32.partialorder %v5569_v60, 0.0  ;;  %v3142_v2 = vmul.f32 0.2, %v5569_v60  ;;  %4112 = vmatprep.mubr.bf16.mxu0 %v3259_v7  ;;  %4338 = vmatprep.mubr.bf16.mxu1 %v3259_v7  ;;  %v3202_v46 = vsel %vm3074_vm2, %v5567_v52, %v3138_v9  ;;  %v6327_v25 = vld [vmem:[%s9212_s7 + $0x260] ss:$16 sps:$4 sm:$0xff]  }
 0x2e7   : > { %9280 = vst [vmem:[#allocation11_spill] sm:$0xff] %v8053_v53  ;;  %vm3079_vm0 = vcmp.gt.f32.partialorder %v5570_v28, 0.0  ;;  %v3143_v3 = vmul.f32 0.2, %v5570_v28  ;;  %4113 = vmatmul.mubr.bf16.vlgmr.msra.gmra.mrb[64].mxu0 %v3258_v6  ;;  %4339 = vmatmul.mubr.bf16.vlgmr.msra.gmra.mrb[64].mxu1 %v3258_v6  ;;  %v3203_v34 = vsel %vm3075_vm13, %v5568_v15, %v3139_v23  ;;  %v6330_v52 = vld [vmem:[%s9212_s7 + $0x268] ss:$16 sps:$4 sm:$0xff]  }
 0x2e8   : > { %4194 = vmatpush1.bf16.msra.mxu0 %v6309_v63  ;;  %4420 = vmatpush1.bf16.msra.mxu1 %v6312_v39  ;;  %v3206_v1 = vsel %vm3078_vm14, %v5569_v60, %v3142_v2  ;;  %v6335_v15 = vld [vmem:[%s9212_s7 + $0x284] ss:$16 sps:$4 sm:$0xff]   ;;  %v6338_v9 = vld [vmem:[%s9212_s7 + $0x28c] ss:$16 sps:$4 sm:$0xff]  }
 0x2e9   : > { %v2781_v16 = vpop.f32.mrb[40].mxu0  ;;  %v8058_v54 = vpop.f32.mrb[40].mxu1  ;;  %4195 = vmatprep.subr.bf16.mxu0 %v6317_v22  ;;  %4421 = vmatprep.subr.bf16.mxu1 %v6320_v18  ;;  %v3207_v44 = vsel %vm3079_vm0, %v5570_v28, %v3143_v3  ;;  %v3262_v20 = vpack.c.bf16 %v3206_v1, %v3202_v46  ;;  %v6341_v1 = vld [vmem:[%s9212_s7 + $0x2a4] ss:$16 sps:$4 sm:$0xff]  }
 0x2ea   : > { %v5571_v33 = vadd.f32 %v2781_v16, %v8004_v32  ;;  %v2783_v61 = vpop.f32.mrb[41].mxu0  ;;  %v8065_v5 = vpop.f32.mrb[41].mxu1  ;;  %v3263_v27 = vpack.c.bf16 %v3207_v44, %v3203_v34  ;;  %v6333_v16 = vld [vmem:[%s9212_s7 + $0x280] ss:$16 sps:$4 sm:$0xff]   ;;  %v6344_v34 = vld [vmem:[%s9212_s7 + $0x2ac] ss:$16 sps:$4 sm:$0xff]   ;;  %v8138_v44 = vadd.f32 %v8025_v30, %v8007_v17 }
 0x2eb   : > { %v2785_v45 = vpop.f32.mrb[42].mxu0  ;;  %v8072_v14 = vpop.f32.mrb[42].mxu1  ;;  %v5572_v43 = vadd.f32 %v2783_v61, %v8010_v58  ;;  %v6347_v30 = vld [vmem:[%s9212_s7 + $0x2c4] ss:$16 sps:$4 sm:$0xff]  }
 0x2ec   : > { %4196 = vmatpush1.bf16.msra.mxu0 %v6315_v42  ;;  %4422 = vmatpush1.bf16.msra.mxu1 %v6318_v21  ;;  %v3146_v8 = vmul.f32 0.2, %v5571_v33  ;;  %v5573_v38 = vadd.f32 %v2785_v45, %v8004_v32  ;;  %v2787_v35 = vpop.f32.mrb[43].mxu0  ;;  %v8088_v48 = vpop.f32.mrb[43].mxu1  ;;  %vm3082_vm3 = vcmp.gt.f32.partialorder %v5571_v33, 0.0  ;;  %vm3076_vm11 = vcmp.gt.f32.partialorder %v8138_v44, 0.0 }
 0x2ed   : > { %4122 = vmatprep.mubr.bf16.mxu0 %v3263_v27  ;;  %4197 = vmatprep.subr.bf16.mxu0 %v6323_v62  ;;  %v5574_v59 = vadd.f32 %v2787_v35, %v8010_v58  ;;  %v3147_v29 = vmul.f32 0.2, %v5572_v43  ;;  %vm3083_vm9 = vcmp.gt.f32.partialorder %v5572_v43, 0.0  ;;  %v6336_v21 = vld [vmem:[%s9212_s7 + $0x288] ss:$16 sps:$4 sm:$0xff]  }
 0x2ee   : > { %4348 = vmatprep.mubr.bf16.mxu1 %v3263_v27  ;;  %4423 = vmatprep.subr.bf16.mxu1 %v6326_v12  ;;  %vm3086_vm4 = vcmp.gt.f32.partialorder %v5573_v38, 0.0  ;;  %v3150_v19 = vmul.f32 0.2, %v5573_v38  ;;  %v3210_v63 = vsel %vm3082_vm3, %v5571_v33, %v3146_v8  ;;  %v6339_v45 = vld [vmem:[%s9212_s7 + $0x2a0] ss:$16 sps:$4 sm:$0xff]  }
 0x2ef   : > { %4123 = vmatmul.mubr.bf16.gmra.mrb[68].mxu0 %v3262_v20  ;;  %4349 = vmatmul.mubr.bf16.gmra.mrb[68].mxu1 %v3262_v20  ;;  %vm3087_vm5 = vcmp.gt.f32.partialorder %v5574_v59, 0.0  ;;  %v3151_v51 = vmul.f32 0.2, %v5574_v59  ;;  %v3211_v23 = vsel %vm3083_vm9, %v5572_v43, %v3147_v29  ;;  %v6342_v27 = vld [vmem:[%s9212_s7 + $0x2a8] ss:$16 sps:$4 sm:$0xff]   ;;  %v8151_v43 = vadd.f32 %v8030_v10, %v8013_v40 }
 0x2f0   : > { %4198 = vmatpush1.bf16.msra.mxu0 %v6321_v41  ;;  %4424 = vmatpush1.bf16.msra.mxu1 %v6324_v26  ;;  %v3214_v39 = vsel %vm3086_vm4, %v5573_v38, %v3150_v19  ;;  %v6350_v10 = vld [vmem:[%s9212_s7 + $0x2cc] ss:$16 sps:$4 sm:$0xff]   ;;  %v8179_v19 = vadd.f32 %v8065_v5, %v8013_v40  ;;  %v6377_v53 = vld [vmem:[%s9212_s7 + $0x364] ss:$16 sps:$4 sm:$0xff]  }
 0x2f1   : > { %v2791_v49 = vpop.f32.mrb[44].mxu0  ;;  %v8097_v6 = vpop.f32.mrb[44].mxu1  ;;  %4199 = vmatprep.subr.bf16.mxu0 %v6329_v47  ;;  %4425 = vmatprep.subr.bf16.mxu1 %v6332_v55  ;;  %v3215_v7 = vsel %vm3087_vm5, %v5574_v59, %v3151_v51  ;;  %v3266_v22 = vpack.c.bf16 %v3214_v39, %v3210_v63  ;;  %v8163_v55 = vadd.f32 %v8033_v31, %v8007_v17  ;;  %v3141_v29 = vmul.f32 0.2, %v8151_v43 }
 0x2f2   : > { %v2793_v57 = vpop.f32.mrb[45].mxu0  ;;  %v8105_v4 = vpop.f32.mrb[45].mxu1  ;;  %v5575_v28 = vadd.f32 %v2791_v49, %v8004_v32  ;;  %v3267_v42 = vpack.c.bf16 %v3215_v7, %v3211_v23  ;;  %v8167_v59 = vadd.f32 %v8044_v24, %v8013_v40  ;;  %v6345_v24 = vld [vmem:[%s9212_s7 + $0x2c0] ss:$16 sps:$4 sm:$0xff]   ;;  %v8194_v51 = vadd.f32 %v8072_v14, %v8007_v17  ;;  %v6356_v23 = vld [vmem:[%s9212_s7 + $0x2ec] ss:$16 sps:$4 sm:$0xff]  }
 0x2f3   : > { %v2795_v60 = vpop.f32.mrb[46].mxu0  ;;  %v8112_v37 = vpop.f32.mrb[46].mxu1  ;;  %v5576_v36 = vadd.f32 %v2793_v57, %v8010_v58  ;;  %vm3077_vm7 = vcmp.gt.f32.partialorder %v8151_v43, 0.0 }
 0x2f4   : > { %4200 = vmatpush1.bf16.msra.mxu0 %v6327_v25  ;;  %4426 = vmatpush1.bf16.msra.mxu1 %v6330_v52  ;;  %v5577_v18 = vadd.f32 %v2795_v60, %v8004_v32  ;;  %v2797_v2 = vpop.f32.mrb[47].mxu0  ;;  %v8117_v3 = vpop.f32.mrb[47].mxu1  ;;  %v3154_v41 = vmul.f32 0.2, %v5575_v28  ;;  %vm3090_vm1 = vcmp.gt.f32.partialorder %v5575_v28, 0.0  ;;  %v8171_v25 = vadd.f32 %v8058_v54, %v8007_v17 }
 0x2f5   : > { %4201 = vmatprep.subr.bf16.mxu0 %v6335_v15  ;;  %4427 = vmatprep.subr.bf16.mxu1 %v6338_v9  ;;  %v5578_v46 = vadd.f32 %v2797_v2, %v8010_v58  ;;  %v3155_v20 = vmul.f32 0.2, %v5576_v36  ;;  %vm3091_vm8 = vcmp.gt.f32.partialorder %v5576_v36, 0.0  ;;  %v8175_v52 = vmul.f32 0.2, %v8138_v44 }
 0x2f6   : > { %v3158_v62 = vmul.f32 0.2, %v5577_v18  ;;  %4132 = vmatprep.mubr.bf16.mxu0 %v3267_v42  ;;  %4358 = vmatprep.mubr.bf16.mxu1 %v3267_v42  ;;  %vm3094_vm10 = vcmp.gt.f32.partialorder %v5577_v18, 0.0  ;;  %v6348_v54 = vld [vmem:[%s9212_s7 + $0x2c8] ss:$16 sps:$4 sm:$0xff]   ;;  %v3218_v39 = vsel %vm3090_vm1, %v5575_v28, %v3154_v41  ;;  %vm3081_vm5 = vcmp.gt.f32.partialorder %v8167_v59, 0.0 }
 0x2f7   : > { %vm3095_vm15 = vcmp.gt.f32.partialorder %v5578_v46, 0.0  ;;  %v3159_v12 = vmul.f32 0.2, %v5578_v46  ;;  %4133 = vmatmul.mubr.bf16.gmra.mrb[72].mxu0 %v3266_v22  ;;  %4359 = vmatmul.mubr.bf16.gmra.mrb[72].mxu1 %v3266_v22  ;;  %v3219_v15 = vsel %vm3091_vm8, %v5576_v36, %v3155_v20  ;;  %v6353_v9 = vld [vmem:[%s9212_s7 + $0x2e4] ss:$16 sps:$4 sm:$0xff]   ;;  %v8251_v20 = vsel %vm3077_vm7, %v8151_v43, %v3141_v29 }
 0x2f8   : > { %4202 = vmatpush1.bf16.msra.mxu0 %v6333_v16  ;;  %4428 = vmatpush1.bf16.msra.mxu1 %v6336_v21  ;;  %v3222_v49 = vsel %vm3094_vm10, %v5577_v18, %v3158_v62  ;;  %v8216_v28 = vmul.f32 0.2, %v8163_v55  ;;  %v8219_v18 = vmul.f32 0.2, %v8167_v59  ;;  %v8222_v2 = vmul.f32 0.2, %v8171_v25 }
 0x2f9   : > { %v8129_v33 = vpop.f32.mrb[48].mxu0  ;;  %v8131_v61 = vpop.f32.mrb[48].mxu1  ;;  %4203 = vmatprep.subr.bf16.mxu0 %v6341_v1  ;;  %4429 = vmatprep.subr.bf16.mxu1 %v6344_v34  ;;  %v3223_v35 = vsel %vm3095_vm15, %v5578_v46, %v3159_v12  ;;  %v3270_v7 = vpack.c.bf16 %v3222_v49, %v3218_v39  ;;  %v6351_v42 = vld [vmem:[%s9212_s7 + $0x2e0] ss:$16 sps:$4 sm:$0xff]   ;;  %v6354_v16 = vld [vmem:[%s9212_s7 + $0x2e8] ss:$16 sps:$4 sm:$0xff]   ;;  %v8266_v43 = vadd.f32 %v8105_v4, %v8013_v40 }
 0x2fa   : > { %v2803_v26 = vpop.f32.mrb[49].mxu0  ;;  %v8153_v47 = vpop.f32.mrb[49].mxu1  ;;  %v3271_v63 = vpack.c.bf16 %v3223_v35, %v3219_v15  ;;  %v8232_v21 = vadd.f32 %v8129_v33, %v8004_v32  ;;  %v6359_v34 = vld [vmem:[%s9212_s7 + $0x304] ss:$16 sps:$4 sm:$0xff]   ;;  %v8239_v62 = vmul.f32 0.2, %v8179_v19  ;;  %v8270_v35 = vadd.f32 %v8112_v37, %v8007_v17 }
 0x2fb   : > { %v2805_v8 = vpop.f32.mrb[50].mxu0  ;;  %v8155_v38 = vpop.f32.mrb[50].mxu1  ;;  %v8182_v31 = vadd.f32 %v2803_v26, %v8010_v58  ;;  %v8254_v12 = vmul.f32 0.2, %v8194_v51  ;;  %v6360_v49 = vld [vmem:[%s9212_s7 + $0x308] ss:$16 sps:$4 sm:$0xff]   ;;  %v8286_v37 = vadd.f32 %v8131_v61, %v8007_v17 }
 0x2fc   : > { %4204 = vmatpush1.bf16.msra.mxu0 %v6339_v45  ;;  %4430 = vmatpush1.bf16.msra.mxu1 %v6342_v27  ;;  %v2807_v5 = vpop.f32.mrb[51].mxu0  ;;  %v8196_v57 = vpop.f32.mrb[51].mxu1  ;;  %v8204_v60 = vadd.f32 %v2805_v8, %v8004_v32  ;;  %v8243_v45 = vadd.f32 %v8088_v48, %v8013_v40  ;;  %9281 = vst [vmem:[#allocation13_spill] sm:$0xff] %v8270_v35  ;;  %v3162_v4 = vmul.f32 0.2, %v8232_v21  ;;  %vm3098_vm13 = vcmp.gt.f32.partialorder %v8232_v21, 0.0 }
 0x2fd   : > { %v5582_v14 = vadd.f32 %v2807_v5, %v8010_v58  ;;  %4205 = vmatprep.subr.bf16.mxu0 %v6347_v30  ;;  %4431 = vmatprep.subr.bf16.mxu1 %v6350_v10  ;;  %v3163_v46 = vmul.f32 0.2, %v8182_v31  ;;  %vm3099_vm12 = vcmp.gt.f32.partialorder %v8182_v31, 0.0  ;;  %v8258_v30 = vadd.f32 %v8097_v6, %v8007_v17  ;;  %v6357_v10 = vld [vmem:[%s9212_s7 + $0x300] ss:$16 sps:$4 sm:$0xff]  }
 0x2fe   : > { %4142 = vmatprep.mubr.bf16.mxu0 %v3271_v63  ;;  %4368 = vmatprep.mubr.bf16.mxu1 %v3271_v63  ;;  %v3166_v48 = vmul.f32 0.2, %v8204_v60  ;;  %v8274_v6 = vadd.f32 %v8117_v3, %v8013_v40  ;;  %vm3102_vm2 = vcmp.gt.f32.partialorder %v8204_v60, 0.0  ;;  %v8290_v3 = vadd.f32 %v8153_v47, %v8013_v40 }
 0x2ff   : > { %vm3103_vm6 = vcmp.gt.f32.partialorder %v5582_v14, 0.0  ;;  %v3167_v1 = vmul.f32 0.2, %v5582_v14  ;;  %4143 = vmatmul.mubr.bf16.gmra.mrb[76].mxu0 %v3270_v7  ;;  %4369 = vmatmul.mubr.bf16.gmra.mrb[76].mxu1 %v3270_v7  ;;  %v3227_v15 = vsel %vm3099_vm12, %v8182_v31, %v3163_v46  ;;  %v8302_v29 = vmul.f32 0.2, %v8243_v45 }
 0x300   : > { %4206 = vmatpush1.bf16.msra.mxu0 %v6345_v24  ;;  %4432 = vmatpush1.bf16.msra.mxu1 %v6348_v54  ;;  %9282 = vst [vmem:[#allocation10_spill] sm:$0xff] %v8290_v3  ;;  %v6362_v24 = vld [vmem:[%s9212_s7 + $0x30c] ss:$16 sps:$4 sm:$0xff]   ;;  %v6365_v54 = vld [vmem:[%s9212_s7 + $0x324] ss:$16 sps:$4 sm:$0xff]   ;;  %v8313_v39 = vadd.f32 %v8155_v38, %v8007_v17  ;;  %vm3080_vm10 = vcmp.gt.f32.partialorder %v8163_v55, 0.0 }
 0x301   : > { %v8207_v22 = vpop.f32.mrb[52].mxu0  ;;  %v8209_v36 = vpop.f32.mrb[52].mxu1  ;;  %4207 = vmatprep.subr.bf16.mxu0 %v6353_v9  ;;  %4433 = vmatprep.subr.bf16.mxu1 %v6356_v23  ;;  %v3231_v8 = vsel %vm3103_vm6, %v5582_v14, %v3167_v1  ;;  %v8309_v63 = vmul.f32 0.2, %v8258_v30  ;;  %v3230_v14 = vsel %vm3102_vm2, %v8204_v60, %v3166_v48  ;;  %v8326_v46 = vmul.f32 0.2, %v8270_v35 }
 0x302   : > { %v2813_v33 = vpop.f32.mrb[53].mxu0  ;;  %v8246_v27 = vpop.f32.mrb[53].mxu1  ;;  %v3275_v5 = vpack.c.bf16 %v3231_v8, %v3227_v15  ;;  %v8329_v38 = vmul.f32 0.2, %v8274_v6  ;;  %v8333_v1 = vadd.f32 %v8196_v57, %v8013_v40  ;;  %v6363_v60 = vld [vmem:[%s9212_s7 + $0x320] ss:$16 sps:$4 sm:$0xff]   ;;  %v8349_v57 = vadd.f32 %v8207_v22, %v8004_v32 }
 0x303   : > { %v2815_v41 = vpop.f32.mrb[54].mxu0  ;;  %v8261_v26 = vpop.f32.mrb[54].mxu1  ;;  %v8306_v61 = vadd.f32 %v2813_v33, %v8010_v58  ;;  %v8342_v33 = vmul.f32 0.2, %v8286_v37  ;;  %v8345_v48 = vmul.f32 0.2, %v8290_v3  ;;  %v3226_v8 = vsel %vm3098_vm13, %v8232_v21, %v3162_v4 }
 0x304   : > { %4208 = vmatpush1.bf16.msra.mxu0 %v6351_v42  ;;  %4434 = vmatpush1.bf16.msra.mxu1 %v6354_v16  ;;  %v2817_v47 = vpop.f32.mrb[55].mxu0  ;;  %v3043_v31 = vpop.f32.mrb[55].mxu1  ;;  %v6368_v42 = vld [vmem:[%s9212_s7 + $0x32c] ss:$16 sps:$4 sm:$0xff]   ;;  %v8323_v16 = vmul.f32 0.2, %v8266_v43  ;;  %v3274_v13 = vpack.c.bf16 %v3230_v14, %v3226_v8 }
 0x305   : > { %v5586_v9 = vadd.f32 %v2817_v47, %v8010_v58  ;;  %4209 = vmatprep.subr.bf16.mxu0 %v6359_v34  ;;  %4152 = vmatprep.mubr.bf16.mxu0 %v3275_v5  ;;  %v6366_v34 = vld [vmem:[%s9212_s7 + $0x328] ss:$16 sps:$4 sm:$0xff]   ;;  %9283 = vst [vmem:[#allocation12_spill] sm:$0xff] %v8342_v33  ;;  %9284 = vst [vmem:[#allocation15_spill] sm:$0xff] %v8345_v48  ;;  %v6371_v15 = vld [vmem:[%s9212_s7 + $0x344] ss:$16 sps:$4 sm:$0xff]  }
 0x306   : > { %4378 = vmatprep.mubr.bf16.mxu1 %v3275_v5  ;;  %4435 = vmatprep.subr.bf16.mxu1 %v6362_v24  ;;  %v3171_v47 = vmul.f32 0.2, %v8306_v61  ;;  %v8359_v5 = vadd.f32 %v2815_v41, %v8004_v32  ;;  %v8362_v56 = vmul.f32 0.2, %v8313_v39  ;;  %vm3107_vm14 = vcmp.gt.f32.partialorder %v8306_v61, 0.0 }
 0x307   : > { %v3175_v0 = vmul.f32 0.2, %v5586_v9  ;;  %vm3111_vm0 = vcmp.gt.f32.partialorder %v5586_v9, 0.0  ;;  %v8371_v41 = vsel %vm3076_vm11, %v8138_v44, %v8175_v52  ;;  %v8382_v24 = vadd.f32 %v8246_v27, %v8013_v40  ;;  %4153 = vmatmul.mubr.bf16.gmra.mrb[80].mxu0 %v3274_v13  ;;  %4379 = vmatmul.mubr.bf16.gmra.mrb[80].mxu1 %v3274_v13  ;;  %v6369_v44 = vld [vmem:[%s9212_s7 + $0x340] ss:$16 sps:$4 sm:$0xff]  }
 0x308   : > { %4210 = vmatpush1.bf16.msra.mxu0 %v6357_v10  ;;  %4436 = vmatpush1.bf16.msra.mxu1 %v6360_v49  ;;  %9285 = vst [vmem:[#allocation17_spill] sm:$0xff] %v8362_v56  ;;  %v8374_v10 = vmul.f32 0.2, %v8333_v1  ;;  %v8378_v49 = vadd.f32 %v8209_v36, %v8007_v17  ;;  %v6374_v52 = vld [vmem:[%s9212_s7 + $0x34c] ss:$16 sps:$4 sm:$0xff]   ;;  %vm3106_vm3 = vcmp.gt.f32.partialorder %v8349_v57, 0.0  ;;  %v8397_v27 = vadd.f32 %v3043_v31, %v8013_v40 }
 0x309   : > { %v2821_v7 = vpop.f32.mrb[56].mxu0  ;;  %v3047_v23 = vpop.f32.mrb[56].mxu1  ;;  %4211 = vmatprep.subr.bf16.mxu0 %v6365_v54  ;;  %4437 = vmatprep.subr.bf16.mxu1 %v6368_v42  ;;  %v8386_v54 = vadd.f32 %v8261_v26, %v8007_v17  ;;  %v3170_v36 = vmul.f32 0.2, %v8349_v57  ;;  %v6372_v13 = vld [vmem:[%s9212_s7 + $0x348] ss:$16 sps:$4 sm:$0xff]   ;;  %v3235_v31 = vsel %vm3107_vm14, %v8306_v61, %v3171_v47 }
 0x30a   : > { %v2823_v22 = vpop.f32.mrb[57].mxu0  ;;  %v3049_v50 = vpop.f32.mrb[57].mxu1  ;;  %9286 = vst [vmem:[#allocation14_spill] sm:$0xff] %v8374_v10  ;;  %v8400_v26 = vadd.f32 %v2821_v7, %v8004_v32  ;;  %v3174_v14 = vmul.f32 0.2, %v8359_v5  ;;  %v8407_v42 = vadd.f32 %v3047_v23, %v8007_v17  ;;  %v3239_v7 = vsel %vm3111_vm0, %v5586_v9, %v3175_v0 }
 0x30b   : > { %v2825_v21 = vpop.f32.mrb[58].mxu0  ;;  %v8365_v4 = vpop.f32.mrb[58].mxu1  ;;  %vm3110_vm4 = vcmp.gt.f32.partialorder %v8359_v5, 0.0  ;;  %v8418_v56 = vadd.f32 %v2823_v22, %v8010_v58  ;;  %v6380_v0 = vld [vmem:[%s9212_s7 + $0x36c] ss:$16 sps:$4 sm:$0xff]   ;;  %v8436_v22 = vadd.f32 %v3049_v50, %v8013_v40  ;;  %vm3085_vm15 = vcmp.gt.f32.partialorder %v8179_v19, 0.0 }
 0x30c   : > { %4212 = vmatpush1.bf16.msra.mxu0 %v6363_v60  ;;  %4438 = vmatpush1.bf16.msra.mxu1 %v6366_v34  ;;  %v2827_v8 = vpop.f32.mrb[59].mxu0  ;;  %v3053_v11 = vpop.f32.mrb[59].mxu1  ;;  %v3279_v60 = vpack.c.bf16 %v3239_v7, %v3235_v31  ;;  %v8427_v61 = vmul.f32 0.2, %v8378_v49  ;;  %v8430_v9 = vmul.f32 0.2, %v8382_v24  ;;  %v8453_v50 = vadd.f32 %v2825_v21, %v8004_v32 }
 0x30d   : > { %v8421_v23 = vadd.f32 %v2827_v8, %v8010_v58  ;;  %4213 = vmatprep.subr.bf16.mxu0 %v6371_v15  ;;  %v8433_v47 = vmul.f32 0.2, %v8386_v54  ;;  %4439 = vmatprep.subr.bf16.mxu1 %v6374_v52  ;;  %v6375_v15 = vld [vmem:[%s9212_s7 + $0x360] ss:$16 sps:$4 sm:$0xff]   ;;  %v6378_v8 = vld [vmem:[%s9212_s7 + $0x368] ss:$16 sps:$4 sm:$0xff]   ;;  %v3238_v21 = vsel %vm3110_vm4, %v8359_v5, %v3174_v14 }
 0x30e   : > { %9287 = vst [vmem:[#allocation16_spill] sm:$0xff] %v8427_v61  ;;  %9288 = vst [vmem:[#allocation19_spill] sm:$0xff] %v8430_v9  ;;  %v8446_v31 = vmul.f32 0.2, %v8397_v27  ;;  %vm3114_vm9 = vcmp.gt.f32.partialorder %v8400_v26, 0.0  ;;  %4162 = vmatprep.mubr.bf16.mxu0 %v3279_v60  ;;  %4388 = vmatprep.mubr.bf16.mxu1 %v3279_v60  ;;  %v3234_v61 = vsel %vm3106_vm3, %v8349_v57, %v3170_v36  ;;  %vm3089_vm8 = vcmp.gt.f32.partialorder %v8243_v45, 0.0 }
 0x30f   : > { %9289 = vst [vmem:[#allocation8_spill] sm:$0xff] %v8433_v47  ;;  %v8450_v7 = vmul.f32 0.2, %v8400_v26  ;;  %v6383_v52 = vld [vmem:[%s9212_s7 + $0x384] ss:$16 sps:$4 sm:$0xff]   ;;  %vm3115_vm1 = vcmp.gt.f32.partialorder %v8418_v56, 0.0  ;;  %v3278_v5 = vpack.c.bf16 %v3238_v21, %v3234_v61 }
 0x310   : > { %9290 = vst [vmem:[#allocation18_spill] sm:$0xff] %v8446_v31  ;;  %v8460_v47 = vmul.f32 0.2, %v8407_v42  ;;  %4214 = vmatpush1.bf16.msra.mxu0 %v6369_v44  ;;  %4440 = vmatpush1.bf16.msra.mxu1 %v6372_v13  ;;  %v6386_v10 = vld [vmem:[%s9212_s7 + $0x38c] ss:$16 sps:$4 sm:$0xff]   ;;  %vm3084_vm7 = vcmp.gt.f32.partialorder %v8171_v25, 0.0 }
 0x311   : > { %v2831_v34 = vpop.f32.mrb[60].mxu0  ;;  %v3057_v33 = vpop.f32.mrb[60].mxu1  ;;  %v3183_v57 = vmul.f32 0.2, %v8421_v23  ;;  %4215 = vmatprep.subr.bf16.mxu0 %v6377_v53  ;;  %4441 = vmatprep.subr.bf16.mxu1 %v6380_v0  ;;  %v3179_v14 = vmul.f32 0.2, %v8418_v56 }
 0x312   : > { %9291 = vst [vmem:[#allocation7_spill] sm:$0xff] %v8460_v47  ;;  %v8469_v60 = vadd.f32 %v2831_v34, %v8004_v32  ;;  %v2833_v31 = vpop.f32.mrb[61].mxu0  ;;  %v3059_v9 = vpop.f32.mrb[61].mxu1  ;;  %v8483_v34 = vmul.f32 0.2, %v8436_v22  ;;  %v8487_v47 = vadd.f32 %v8365_v4, %v8007_v17  ;;  %vm3119_vm6 = vcmp.gt.f32.partialorder %v8421_v23, 0.0  ;;  %4163 = vmatmul.mubr.bf16.gmra.mrb[84].mxu0 %v3278_v5  ;;  %4389 = vmatmul.mubr.bf16.gmra.mrb[84].mxu1 %v3278_v5 }
 0x313   : > { %v5592_v44 = vadd.f32 %v2833_v31, %v8010_v58  ;;  %v2835_v36 = vpop.f32.mrb[62].mxu0  ;;  %v3061_v13 = vpop.f32.mrb[62].mxu1  ;;  %v6381_v53 = vld [vmem:[%s9212_s7 + $0x380] ss:$16 sps:$4 sm:$0xff]   ;;  %v6384_v0 = vld [vmem:[%s9212_s7 + $0x388] ss:$16 sps:$4 sm:$0xff]   ;;  %v8501_v4 = vadd.f32 %v3053_v11, %v8013_v40  ;;  %v8504_v31 = vadd.f32 %v3057_v33, %v8007_v17 }
 0x314   : > { %9292 = vst [vmem:[#allocation20_spill] sm:$0xff] %v8483_v34  ;;  %vm3118_vm13 = vcmp.gt.f32.partialorder %v8453_v50, 0.0  ;;  %v3182_v61 = vmul.f32 0.2, %v8453_v50  ;;  %v6389_v21 = vld [vmem:[%s9212_s7 + $0x3a4] ss:$16 sps:$4 sm:$0xff]   ;;  %4216 = vmatpush1.bf16.msra.mxu0 %v6375_v15  ;;  %v8514_v34 = vadd.f32 %v3059_v9, %v8013_v40  ;;  %4442 = vmatpush1.bf16.msra.mxu1 %v6378_v8  ;;  %v5593_v33 = vadd.f32 %v2835_v36, %v8004_v32 }
 0x315   : > { %vm3122_vm4 = vcmp.gt.f32.partialorder %v8469_v60, 0.0  ;;  %v3187_v11 = vmul.f32 0.2, %v5592_v44  ;;  %v2837_v5 = vpop.f32.mrb[63].mxu0  ;;  %v3063_v48 = vpop.f32.mrb[63].mxu1  ;;  %vm3123_vm0 = vcmp.gt.f32.partialorder %v5592_v44, 0.0  ;;  %v3247_v15 = vsel %vm3119_vm6, %v8421_v23, %v3183_v57  ;;  %4217 = vmatprep.subr.bf16.mxu0 %v6383_v52  ;;  %4443 = vmatprep.subr.bf16.mxu1 %v6386_v10 }
 0x316   : > { %v3186_v35 = vmul.f32 0.2, %v8469_v60  ;;  %v5594_v3 = vadd.f32 %v2837_v5, %v8010_v58  ;;  %v6392_v32 = vld [vmem:[%s9212_s7 + $0x3ac] ss:$16 sps:$4 sm:$0xff]   ;;  %v3190_v9 = vmul.f32 0.2, %v5593_v33  ;;  %v8530_v8 = vadd.f32 %v3061_v13, %v8007_v17 }
 0x317   : > { %v8533_v36 = vadd.f32 %v3063_v48, %v8013_v40  ;;  %v3243_v58 = vsel %vm3115_vm1, %v8418_v56, %v3179_v14  ;;  %vm3108_vm6 = vcmp.gt.f32.partialorder %v8378_v49, 0.0  ;;  %vm3112_vm14 = vcmp.gt.f32.partialorder %v8386_v54, 0.0  ;;  %v6387_v10 = vld [vmem:[%s9212_s7 + $0x3a0] ss:$16 sps:$4 sm:$0xff]   ;;  %v6395_v57 = vld [vmem:[%s9212_s7 + $0x3c4] ss:$16 sps:$4 sm:$0xff]  }
 0x318   : > { %vm3113_vm3 = vcmp.gt.f32.partialorder %v8397_v27, 0.0  ;;  %vm3126_vm12 = vcmp.gt.f32.partialorder %v5593_v33, 0.0  ;;  %vm3127_vm2 = vcmp.gt.f32.partialorder %v5594_v3, 0.0  ;;  %v3191_v23 = vmul.f32 0.2, %v5594_v3  ;;  %4218 = vmatpush1.bf16.msra.mxu0 %v6381_v53  ;;  %4444 = vmatpush1.bf16.msra.mxu1 %v6384_v0 }
 0x319   : > { %v3242_v17 = vsel %vm3114_vm9, %v8400_v26, %v8450_v7  ;;  %v8547_v40 = vmul.f32 0.2, %v8487_v47  ;;  %v3283_v56 = vpack.c.bf16 %v3247_v15, %v3243_v58  ;;  %v3246_v48 = vsel %vm3118_vm13, %v8453_v50, %v3182_v61  ;;  %v6390_v26 = vld [vmem:[%s9212_s7 + $0x3a8] ss:$16 sps:$4 sm:$0xff]   ;;  %4219 = vmatprep.subr.bf16.mxu0 %v6389_v21  ;;  %4445 = vmatprep.subr.bf16.mxu1 %v6392_v32 }
 0x31a   : > { %v3251_v7 = vsel %vm3123_vm0, %v5592_v44, %v3187_v11  ;;  %vm3116_vm9 = vcmp.gt.f32.partialorder %v8407_v42, 0.0  ;;  %vm3120_vm1 = vcmp.gt.f32.partialorder %v8487_v47, 0.0  ;;  %vm3121_vm11 = vcmp.gt.f32.partialorder %v8501_v4, 0.0  ;;  %v9299_v32 = vld [vmem:[#allocation15_spill] sm:$0xff] }
 0x31b   : > { %v3282_v52 = vpack.c.bf16 %v3246_v48, %v3242_v17  ;;  %v3255_v50 = vsel %vm3127_vm2, %v5594_v3, %v3191_v23  ;;  %v3250_v13 = vsel %vm3122_vm4, %v8469_v60, %v3186_v35  ;;  %v8570_v44 = vmul.f32 0.2, %v8501_v4  ;;  %4172 = vmatprep.mubr.bf16.mxu0 %v3283_v56  ;;  %4398 = vmatprep.mubr.bf16.mxu1 %v3283_v56  ;;  %v6398_v3 = vld [vmem:[%s9212_s7 + $0x3cc] ss:$16 sps:$4 sm:$0xff]   ;;  %v6399_v23 = vld [vmem:[%s9212_s7 + $0x3e0] ss:$16 sps:$4 sm:$0xff]  }
 0x31c   : > { %v3287_v14 = vpack.c.bf16 %v3255_v50, %v3251_v7  ;;  %v3254_v53 = vsel %vm3126_vm12, %v5593_v33, %v3190_v9  ;;  %v3209_v0 = vsel %vm3081_vm5, %v8167_v59, %v8219_v18  ;;  %vm3124_vm2 = vcmp.gt.f32.partialorder %v8504_v31, 0.0  ;;  %4220 = vmatpush1.bf16.msra.mxu0 %v6387_v10  ;;  %4446 = vmatpush1.bf16.msra.mxu1 %v6390_v26  ;;  %v6393_v59 = vld [vmem:[%s9212_s7 + $0x3c0] ss:$16 sps:$4 sm:$0xff]   ;;  %v6396_v18 = vld [vmem:[%s9212_s7 + $0x3c8] ss:$16 sps:$4 sm:$0xff]  }
 0x31d   : > { %v8582_v35 = vmul.f32 0.2, %v8504_v31  ;;  %4173 = vmatmul.mubr.bf16.gmra.mrb[88].mxu0 %v3282_v52  ;;  %4399 = vmatmul.mubr.bf16.gmra.mrb[88].mxu1 %v3282_v52  ;;  %v3286_v60 = vpack.c.bf16 %v3254_v53, %v3250_v13  ;;  %v8585_v61 = vpack.c.bf16 %v3209_v0, %v8251_v20  ;;  %v3208_v21 = vsel %vm3080_vm10, %v8163_v55, %v8216_v28  ;;  %v6401_v33 = vld [vmem:[%s9212_s7 + $0x3e4] ss:$16 sps:$4 sm:$0xff]   ;;  %v9300_v9 = vld [vmem:[#allocation10_spill] sm:$0xff]  ;;  %v9311_v50 = vld [vmem:[#allocation16_spill] sm:$0xff] }
 0x31e   : > { %vm3125_vm12 = vcmp.gt.f32.partialorder %v8514_v34, 0.0  ;;  %v8599_v20 = vpack.c.bf16 %v3208_v21, %v8371_v41  ;;  %v3213_v55 = vsel %vm3085_vm15, %v8179_v19, %v8239_v62  ;;  %v3217_v28 = vsel %vm3089_vm8, %v8243_v45, %v8302_v29  ;;  %4182 = vmatprep.mubr.bf16.mxu0 %v3287_v14  ;;  %4221 = vmatprep.subr.bf16.mxu0 %v6395_v57  ;;  %v6404_v41 = vld [vmem:[%s9212_s7 + $0x3ec] ss:$16 sps:$4 sm:$0xff]   ;;  %v6402_v17 = vld [vmem:[%s9212_s7 + $0x3e8] ss:$16 sps:$4 sm:$0xff]  }
 0x31f   : > { %v3189_v11 = vmul.f32 0.2, %v8514_v34  ;;  %v3269_v5 = vpack.c.bf16 %v3217_v28, %v3213_v55  ;;  %v3212_v19 = vsel %vm3084_vm7, %v8171_v25, %v8222_v2  ;;  %vm9293_vm5 = vcmp.gt.f32.partialorder %v8194_v51, 0.0  ;;  %4408 = vmatprep.mubr.bf16.mxu1 %v3287_v14  ;;  %4447 = vmatprep.subr.bf16.mxu1 %v6398_v3  ;;  %v9306_v48 = vld [vmem:[#allocation17_spill] sm:$0xff]  ;;  %v9308_v10 = vld [vmem:[#allocation19_spill] sm:$0xff]  ;;  %v9310_v7 = vld [vmem:[#allocation18_spill] sm:$0xff] }
 0x320   : > { %v3216_v62 = vsel %vm9293_vm5, %v8194_v51, %v8254_v12  ;;  %vm3128_vm10 = vcmp.gt.f32.partialorder %v8530_v8, 0.0  ;;  %vm9294_vm15 = vcmp.gt.f32.partialorder %v8266_v43, 0.0  ;;  %vm9295_vm8 = vcmp.gt.f32.partialorder %v8274_v6, 0.0  ;;  %v9297_v12 = vld [vmem:[#allocation13_spill] sm:$0xff]  ;;  %4222 = vmatpush1.bf16.msra.mxu0 %v6393_v59  ;;  %4448 = vmatpush1.bf16.msra.mxu1 %v6396_v18  ;;  %v9312_v13 = vld [vmem:[#allocation8_spill] sm:$0xff]  ;;  %v9315_v3 = vld [vmem:[#allocation11_spill] sm:$0xff] }
 0x321   : > { %v3268_v45 = vpack.c.bf16 %v3216_v62, %v3212_v19  ;;  %v3221_v29 = vsel %vm9294_vm15, %v8266_v43, %v8323_v16  ;;  %v3225_v25 = vsel %vm9295_vm8, %v8274_v6, %v8329_v38  ;;  %vm9296_vm7 = vcmp.gt.f32.partialorder %v8258_v30, 0.0  ;;  %v9302_v38 = vld [vmem:[#allocation14_spill] sm:$0xff]  ;;  %4223 = vmatprep.subr.bf16.mxu0 %v6401_v33  ;;  %4449 = vmatprep.subr.bf16.mxu1 %v6404_v41  ;;  %v9313_v53 = vld [vmem:[#allocation20_spill] sm:$0xff]  ;;  %v9317_v18 = vld [vmem:[#allocation9_spill] sm:$0xff] }
 0x322   : > { %v3273_v2 = vpack.c.bf16 %v3225_v25, %v3221_v29  ;;  %v3220_v51 = vsel %vm9296_vm7, %v8258_v30, %v8309_v63  ;;  %vm9298_vm13 = vcmp.gt.f32.partialorder %v9297_v12, 0.0  ;;  %vm9301_vm0 = vcmp.gt.f32.partialorder %v9300_v9, 0.0  ;;  %v9304_v63 = vld [vmem:[#allocation12_spill] sm:$0xff]  ;;  %v9321_v55 = vld [vmem:[#allocation6_spill] sm:$0xff] }
 0x323   : > { %v3224_v15 = vsel %vm9298_vm13, %v9297_v12, %v8326_v46  ;;  %v3229_v43 = vsel %vm9301_vm0, %v9300_v9, %v9299_v32  ;;  %v3192_v16 = vmul.f32 0.2, %v8530_v8  ;;  %vm9303_vm4 = vcmp.gt.f32.partialorder %v8333_v1, 0.0  ;;  %v4724_v25 = vld [vmem:[%s9214_s9] sm:$0xf] }
 0x324   : > { %v3272_v6 = vpack.c.bf16 %v3224_v15, %v3220_v51  ;;  %v3233_v30 = vsel %vm9303_vm4, %v8333_v1, %v9302_v38  ;;  %vm9305_vm5 = vcmp.gt.f32.partialorder %v8286_v37, 0.0  ;;  %v3193_v58 = vmul.f32 0.2, %v8533_v36  ;;  %4224 = vmatpush1.bf16.msra.mxu0 %v6399_v23  ;;  %4450 = vmatpush1.bf16.msra.mxu1 %v6402_v17 }
 0x325   : > { %v3228_v46 = vsel %vm9305_vm5, %v8286_v37, %v9304_v63  ;;  %v3277_v56 = vpack.c.bf16 %v3233_v30, %v3229_v43  ;;  %vm9307_vm15 = vcmp.gt.f32.partialorder %v8313_v39, 0.0  ;;  %vm9309_vm8 = vcmp.gt.f32.partialorder %v8382_v24, 0.0  ;;  %4183 = vmatmul.mubr.bf16.gmra.mrb[92].mxu0 %v3286_v60  ;;  %4409 = vmatmul.mubr.bf16.gmra.mrb[92].mxu1 %v3286_v60 }
 0x326   : > { %v3232_v1 = vsel %vm9307_vm15, %v8313_v39, %v9306_v48  ;;  %v3237_v37 = vsel %vm9309_vm8, %v8382_v24, %v9308_v10  ;;  %v3241_v52 = vsel %vm3113_vm3, %v8397_v27, %v9310_v7  ;;  %v3236_v57 = vsel %vm3108_vm6, %v8378_v49, %v9311_v50  ;;  %4225 = vmatprep.mubr.bf16.mxu0 %v9315_v3 }
 0x327   : > { %v3276_v26 = vpack.c.bf16 %v3232_v1, %v3228_v46  ;;  %v3240_v39 = vsel %vm3112_vm14, %v8386_v54, %v9312_v13  ;;  %vm3129_vm7 = vcmp.gt.f32.partialorder %v8533_v36, 0.0  ;;  %v3281_v24 = vpack.c.bf16 %v3241_v52, %v3237_v37  ;;  %4451 = vmatprep.mubr.bf16.mxu1 %v9315_v3  ;;  %v9316_v54 = vld [vmem:[#allocation7_spill] sm:$0xff] }
 0x328   : > { %v3280_v14 = vpack.c.bf16 %v3240_v39, %v3236_v57  ;;  %vm9314_vm3 = vcmp.gt.f32.partialorder %v8436_v22, 0.0  ;;  %v3249_v49 = vsel %vm3121_vm11, %v8501_v4, %v8570_v44  ;;  %v3244_v0 = vsel %vm3116_vm9, %v8407_v42, %v9316_v54 }
 0x329   : > { %v3245_v27 = vsel %vm9314_vm3, %v8436_v22, %v9313_v53  ;;  %v3248_v60 = vsel %vm3120_vm1, %v8487_v47, %v8547_v40  ;;  %v3253_v59 = vsel %vm3125_vm12, %v8514_v34, %v3189_v11  ;;  %v3257_v4 = vsel %vm3129_vm7, %v8533_v36, %v3193_v58  ;;  %v3418_v34 = vld [vmem:[%s9213_s8] sm:$0xf]  ;;  %v9319_v36 = vld [vmem:[#allocation5_spill] sm:$0xff] }
 0x32a   : > { %v3285_v22 = vpack.c.bf16 %v3249_v49, %v3245_v27  ;;  %v3284_v21 = vpack.c.bf16 %v3248_v60, %v3244_v0  ;;  %v3252_v42 = vsel %vm3124_vm2, %v8504_v31, %v8582_v35  ;;  %v3256_v47 = vsel %vm3128_vm10, %v8530_v8, %v3192_v16  ;;  %v9318_v31 = vld [vmem:[#allocation3_spill] sm:$0xff] }
 0x32b   : > { %v3289_v40 = vpack.c.bf16 %v3257_v4, %v3253_v59  ;;  %v3288_v44 = vpack.c.bf16 %v3256_v47, %v3252_v42  ;;  %v8723_v8 = vrot.slane %v3418_v34, %v9318_v31  ;;  %v8726_v35 = vrot.slane %v3418_v34, %v9319_v36 }
 0x32c   : > { %v8732_v28 = vrot.slane %v3418_v34, %v9321_v55  ;;  %v8743_v16 = vrot.slane %v4724_v25, %v9318_v31  ;;  %v8747_v30 = vrot.slane %v4724_v25, %v9319_v36  ;;  %v8758_v50 = vrot.slane %v4724_v25, %v9321_v55 }
 0x32d   : > { %4226 = vmatmul.mubr.bf16.vlgmr.msra.gmra.mrb[64].mxu0 %v9317_v18  ;;  %4452 = vmatmul.mubr.bf16.vlgmr.msra.gmra.mrb[64].mxu1 %v9317_v18 }
 0x32e   : > { %4235 = vmatprep.mubr.bf16.mxu0 %v8585_v61  ;;  %4461 = vmatprep.mubr.bf16.mxu1 %v8585_v61  ;;  %v9320_v61 = vld [vmem:[#allocation4_spill] sm:$0xff] }
 0x32f   : > { %v8754_v37 = vrot.slane %v4724_v25, %v9320_v61 }
 0x335   : > { %4236 = vmatmul.mubr.bf16.gmra.mrb[68].mxu0 %v8599_v20  ;;  %4462 = vmatmul.mubr.bf16.gmra.mrb[68].mxu1 %v8599_v20  ;;  %v8729_v20 = vrot.slane %v3418_v34, %v9320_v61 }
 0x336   : > { %4245 = vmatprep.mubr.bf16.mxu0 %v3269_v5  ;;  %4471 = vmatprep.mubr.bf16.mxu1 %v3269_v5 }
 0x33d   : > { %4246 = vmatmul.mubr.bf16.gmra.mrb[72].mxu0 %v3268_v45  ;;  %4472 = vmatmul.mubr.bf16.gmra.mrb[72].mxu1 %v3268_v45 }
 0x33e   : > { %4255 = vmatprep.mubr.bf16.mxu0 %v3273_v2  ;;  %4481 = vmatprep.mubr.bf16.mxu1 %v3273_v2 }
 0x345   : > { %4256 = vmatmul.mubr.bf16.gmra.mrb[76].mxu0 %v3272_v6  ;;  %4482 = vmatmul.mubr.bf16.gmra.mrb[76].mxu1 %v3272_v6 }
 0x346   : > { %4265 = vmatprep.mubr.bf16.mxu0 %v3277_v56  ;;  %4491 = vmatprep.mubr.bf16.mxu1 %v3277_v56 }
 0x34d   : > { %4266 = vmatmul.mubr.bf16.gmra.mrb[80].mxu0 %v3276_v26  ;;  %4492 = vmatmul.mubr.bf16.gmra.mrb[80].mxu1 %v3276_v26 }
 0x34e   : > { %4275 = vmatprep.mubr.bf16.mxu0 %v3281_v24  ;;  %4501 = vmatprep.mubr.bf16.mxu1 %v3281_v24 }
 0x355   : > { %4276 = vmatmul.mubr.bf16.gmra.mrb[84].mxu0 %v3280_v14  ;;  %4502 = vmatmul.mubr.bf16.gmra.mrb[84].mxu1 %v3280_v14 }
 0x356   : > { %4285 = vmatprep.mubr.bf16.mxu0 %v3285_v22  ;;  %4511 = vmatprep.mubr.bf16.mxu1 %v3285_v22 }
 0x35d   : > { %4286 = vmatmul.mubr.bf16.gmra.mrb[88].mxu0 %v3284_v21  ;;  %4512 = vmatmul.mubr.bf16.gmra.mrb[88].mxu1 %v3284_v21 }
 0x35e   : > { %4295 = vmatprep.mubr.bf16.mxu0 %v3289_v40  ;;  %4521 = vmatprep.mubr.bf16.mxu1 %v3289_v40 }
 0x365   : > { %4296 = vmatmul.mubr.bf16.gmra.mrb[92].mxu0 %v3288_v44  ;;  %4522 = vmatmul.mubr.bf16.gmra.mrb[92].mxu1 %v3288_v44 }
 0x400   : > { %v4227_v11 = vpop.f32.mrb[64].mxu0  ;;  %v4453_v33 = vpop.f32.mrb[64].mxu1 }
 0x401   : > { %v5627_v41 = vadd.f32 %v4227_v11, %v8723_v8  ;;  %v4229_v5 = vpop.f32.mrb[65].mxu0  ;;  %v4455_v19 = vpop.f32.mrb[65].mxu1  ;;  %v5659_v2 = vadd.f32 %v4453_v33, %v8729_v20 }
 0x402   : > { %v5628_v62 = vadd.f32 %v4229_v5, %v8726_v35  ;;  %v4231_v45 = vpop.f32.mrb[66].mxu0  ;;  %v4457_v29 = vpop.f32.mrb[66].mxu1  ;;  %v5660_v51 = vadd.f32 %v4455_v19, %v8732_v28 }
 0x403   : > { %v4596_v12 = vmul.f32 0.2, %v5627_v41  ;;  %vm4532_vm11 = vcmp.gt.f32.partialorder %v5627_v41, 0.0  ;;  %v5629_v32 = vadd.f32 %v4231_v45, %v8723_v8  ;;  %v4233_v9 = vpop.f32.mrb[67].mxu0  ;;  %v4459_v43 = vpop.f32.mrb[67].mxu1  ;;  %vm4534_vm6 = vcmp.gt.f32.partialorder %v5659_v2, 0.0 }
 0x404   : > { %v4597_v15 = vmul.f32 0.2, %v5628_v62  ;;  %vm4533_vm14 = vcmp.gt.f32.partialorder %v5628_v62, 0.0  ;;  %v5630_v6 = vadd.f32 %v4233_v9, %v8726_v35  ;;  %v4598_v38 = vmul.f32 0.2, %v5659_v2 }
 0x405   : > { %v4599_v63 = vmul.f32 0.2, %v5660_v51  ;;  %v4660_v46 = vsel %vm4532_vm11, %v5627_v41, %v4596_v12  ;;  %v4600_v23 = vmul.f32 0.2, %v5629_v32  ;;  %v5661_v17 = vadd.f32 %v4457_v29, %v8729_v20 }
 0x406   : > { %v4661_v58 = vsel %vm4533_vm14, %v5628_v62, %v4597_v15  ;;  %vm4536_vm9 = vcmp.gt.f32.partialorder %v5629_v32, 0.0  ;;  %v4601_v56 = vmul.f32 0.2, %v5630_v6  ;;  %v8751_v48 = vadd.f32 %v4459_v43, %v8732_v28 }
 0x407   : > { %vm4535_vm1 = vcmp.gt.f32.partialorder %v5660_v51, 0.0  ;;  %vm4537_vm2 = vcmp.gt.f32.partialorder %v5630_v6, 0.0  ;;  %v4746_v57 = vmul.f32 %v8743_v16, %v4660_v46  ;;  %v4662_v13 = vsel %vm4534_vm6, %v5659_v2, %v4598_v38 }
 0x408   : > { %v4237_v1 = vpop.f32.mrb[68].mxu0  ;;  %v4463_v10 = vpop.f32.mrb[68].mxu1  ;;  %v4747_v39 = vmul.f32 %v8747_v30, %v4661_v58  ;;  %v4664_v27 = vsel %vm4536_vm9, %v5629_v32, %v4600_v23  ;;  %vm4538_vm12 = vcmp.gt.f32.partialorder %v5661_v17, 0.0  ;;  %v4602_v3 = vmul.f32 0.2, %v5661_v17 }
 0x409   : > { %v5631_v26 = vadd.f32 %v4237_v1, %v8723_v8  ;;  %v4239_v7 = vpop.f32.mrb[69].mxu0  ;;  %v4465_v52 = vpop.f32.mrb[69].mxu1  ;;  %v4665_v60 = vsel %vm4537_vm2, %v5630_v6, %v4601_v56  ;;  %vm4539_vm10 = vcmp.gt.f32.partialorder %v8751_v48, 0.0  ;;  %v4603_v22 = vmul.f32 0.2, %v8751_v48 }
 0x40a   : > { %v5632_v24 = vadd.f32 %v4239_v7, %v8726_v35  ;;  %v4241_v14 = vpop.f32.mrb[70].mxu0  ;;  %v4467_v53 = vpop.f32.mrb[70].mxu1  ;;  %v5663_v21 = vadd.f32 %v4463_v10, %v8729_v20  ;;  %v4663_v59 = vsel %vm4535_vm1, %v5660_v51, %v4599_v63  ;;  %v8772_v47 = vadd.f32 %v4465_v52, %v8732_v28 }
 0x40b   : > { %v5633_v49 = vadd.f32 %v4241_v14, %v8723_v8  ;;  %v4243_v54 = vpop.f32.mrb[71].mxu0  ;;  %v4469_v0 = vpop.f32.mrb[71].mxu1  ;;  %v4604_v4 = vmul.f32 0.2, %v5631_v26  ;;  %v5665_v40 = vadd.f32 %v4467_v53, %v8729_v20  ;;  %v4750_v44 = vmul.f32 %v8743_v16, %v4664_v27 }
 0x40c   : > { %v4605_v42 = vmul.f32 0.2, %v5632_v24  ;;  %vm4540_vm13 = vcmp.gt.f32.partialorder %v5631_v26, 0.0  ;;  %vm4541_vm0 = vcmp.gt.f32.partialorder %v5632_v24, 0.0  ;;  %v4748_v18 = vmul.f32 %v8754_v37, %v4662_v13 }
 0x40d   : > { %v4666_v34 = vsel %vm4538_vm12, %v5661_v17, %v4602_v3  ;;  %v4751_v31 = vmul.f32 %v8747_v30, %v4665_v60  ;;  %v4608_v36 = vmul.f32 0.2, %v5633_v49  ;;  %v5634_v61 = vadd.f32 %v4243_v54, %v8726_v35 }
 0x40e   : > { %vm4542_vm4 = vcmp.gt.f32.partialorder %v5663_v21, 0.0  ;;  %v4606_v33 = vmul.f32 0.2, %v5663_v21  ;;  %vm4544_vm5 = vcmp.gt.f32.partialorder %v5633_v49, 0.0  ;;  %v4810_v41 = vadd.f32 %v4747_v39, %v4746_v57 }
 0x40f   : > { %v4668_v62 = vsel %vm4540_vm13, %v5631_v26, %v4604_v4  ;;  %v4669_v45 = vsel %vm4541_vm0, %v5632_v24, %v4605_v42  ;;  %v8781_v29 = vmul.f32 0.2, %v8772_v47  ;;  %vm4546_vm15 = vcmp.gt.f32.partialorder %v5665_v40, 0.0 }
 0x410   : > { %v4247_v55 = vpop.f32.mrb[72].mxu0  ;;  %v4473_v11 = vpop.f32.mrb[72].mxu1  ;;  %vm4543_vm8 = vcmp.gt.f32.partialorder %v8772_v47, 0.0  ;;  %v4610_v51 = vmul.f32 0.2, %v5665_v40  ;;  %v4749_v12 = vmul.f32 %v8758_v50, %v4663_v59  ;;  %v4811_v15 = vadd.f32 %v4810_v41, %v4748_v18 }
 0x411   : > { %v4249_v5 = vpop.f32.mrb[73].mxu0  ;;  %v4475_v19 = vpop.f32.mrb[73].mxu1  ;;  %v5635_v32 = vadd.f32 %v4247_v55, %v8723_v8  ;;  %v4672_v6 = vsel %vm4544_vm5, %v5633_v49, %v4608_v36  ;;  %v4609_v38 = vmul.f32 0.2, %v5634_v61  ;;  %v5667_v63 = vadd.f32 %v4473_v11, %v8729_v20 }
 0x412   : > { %v4251_v25 = vpop.f32.mrb[74].mxu0  ;;  %v4477_v2 = vpop.f32.mrb[74].mxu1  ;;  %v5636_v46 = vadd.f32 %v4249_v5, %v8726_v35  ;;  %v4754_v58 = vmul.f32 %v8743_v16, %v4668_v62  ;;  %vm4545_vm7 = vcmp.gt.f32.partialorder %v5634_v61, 0.0  ;;  %v4812_v23 = vadd.f32 %v4811_v15, %v4749_v12 }
 0x413   : > { %v4253_v9 = vpop.f32.mrb[75].mxu0  ;;  %v4479_v43 = vpop.f32.mrb[75].mxu1  ;;  %v4612_v17 = vmul.f32 0.2, %v5635_v32  ;;  %v4670_v56 = vsel %vm4542_vm4, %v5663_v21, %v4606_v33  ;;  %v4755_v1 = vmul.f32 %v8747_v30, %v4669_v45  ;;  %v8793_v10 = vadd.f32 %v4469_v0, %v8732_v28 }
 0x414   : > { %vm4548_vm3 = vcmp.gt.f32.partialorder %v5635_v32, 0.0  ;;  %v8796_v26 = vmul.f32 %v8743_v16, %v4672_v6  ;;  %v8799_v7 = vsel %vm4546_vm15, %v5665_v40, %v4610_v51  ;;  %4813 = vadd.xlane.f32.xlu0 %v4812_v23  ;;  %vm4550_vm11 = vcmp.gt.f32.partialorder %v5667_v63, 0.0 }
 0x415   : > { %v8802_v52 = vadd.f32 %v4475_v19, %v8732_v28  ;;  %v4673_v57 = vsel %vm4545_vm7, %v5634_v61, %v4609_v38  ;;  %v4614_v13 = vmul.f32 0.2, %v5667_v63  ;;  %v4613_v39 = vmul.f32 0.2, %v5636_v46 }
 0x416   : > { %v4667_v24 = vsel %vm4539_vm10, %v8751_v48, %v4603_v22  ;;  %v4676_v27 = vsel %vm4548_vm3, %v5635_v32, %v4612_v17  ;;  %v4752_v3 = vmul.f32 %v8754_v37, %v4666_v34  ;;  %v4815_v49 = vadd.f32 %v4751_v31, %v4750_v44 }
 0x417   : > { %v5637_v54 = vadd.f32 %v4251_v25, %v8723_v8  ;;  %v8810_v21 = vmul.f32 0.2, %v8793_v10  ;;  %vm4549_vm14 = vcmp.gt.f32.partialorder %v5636_v46, 0.0  ;;  %v5669_v59 = vadd.f32 %v4477_v2, %v8729_v20 }
 0x418   : > { %v4257_v14 = vpop.f32.mrb[76].mxu0  ;;  %v4483_v53 = vpop.f32.mrb[76].mxu1  ;;  %v5638_v4 = vadd.f32 %v4253_v9, %v8726_v35  ;;  %v8815_v22 = vmul.f32 %v8747_v30, %v4673_v57  ;;  %v8818_v40 = vmul.f32 0.2, %v8802_v52  ;;  %v4753_v44 = vmul.f32 %v8758_v50, %v4667_v24 }
 0x419   : > { %v4259_v0 = vpop.f32.mrb[77].mxu0  ;;  %v4485_v60 = vpop.f32.mrb[77].mxu1  ;;  %v4816_v18 = vadd.f32 %v4815_v49, %v4752_v3  ;;  %vm4547_vm6 = vcmp.gt.f32.partialorder %v8793_v10, 0.0  ;;  %v8825_v36 = vmul.f32 %v8743_v16, %v4676_v27  ;;  %v8828_v61 = vsel %vm4550_vm11, %v5667_v63, %v4614_v13 }
 0x41a   : > { %v4261_v42 = vpop.f32.mrb[78].mxu0  ;;  %v4487_v48 = vpop.f32.mrb[78].mxu1  ;;  %v4616_v55 = vmul.f32 0.2, %v5637_v54  ;;  %v4617_v11 = vmul.f32 0.2, %v5638_v4  ;;  %v4677_v33 = vsel %vm4549_vm14, %v5636_v46, %v4613_v39  ;;  %v8833_v5 = vadd.f32 %v4479_v43, %v8732_v28 }
 0x41b   : > { %v4263_v34 = vpop.f32.mrb[79].mxu0  ;;  %v8821_v31 = vpop.f32.mrb[79].mxu1  ;;  %v4817_v41 = vadd.f32 %v4816_v18, %v4753_v44  ;;  %vm4552_vm9 = vcmp.gt.f32.partialorder %v5637_v54, 0.0  ;;  %vm4553_vm1 = vcmp.gt.f32.partialorder %v5638_v4, 0.0  ;;  %vm4551_vm2 = vcmp.gt.f32.partialorder %v8802_v52, 0.0 }
 0x41c   : > { %vm4554_vm12 = vcmp.gt.f32.partialorder %v5669_v59, 0.0  ;;  %v4671_v19 = vsel %vm4543_vm8, %v8772_v47, %v8781_v29  ;;  %v4756_v62 = vmul.f32 %v8754_v37, %v4670_v56  ;;  %v4618_v45 = vmul.f32 0.2, %v5669_v59 }
 0x41d   : > { %4818 = vadd.xlane.f32.xlu1 %v4817_v41  ;;  %v4820_v25 = vadd.f32 %v4755_v1, %v4754_v58  ;;  %v5639_v2 = vadd.f32 %v4257_v14, %v8723_v8  ;;  %v5671_v51 = vadd.f32 %v4483_v53, %v8729_v20  ;;  %v4680_v12 = vsel %vm4552_vm9, %v5637_v54, %v4616_v55 }
 0x41e   : > { %v4681_v15 = vsel %vm4553_vm1, %v5638_v4, %v4617_v11  ;;  %v5640_v32 = vadd.f32 %v4259_v0, %v8726_v35  ;;  %v5641_v9 = vadd.f32 %v4261_v42, %v8723_v8  ;;  %v4757_v38 = vmul.f32 %v8758_v50, %v4671_v19 }
 0x41f   : > { %v4821_v47 = vadd.f32 %v4820_v25, %v4756_v62  ;;  %vm4556_vm10 = vcmp.gt.f32.partialorder %v5639_v2, 0.0  ;;  %v4620_v29 = vmul.f32 0.2, %v5639_v2  ;;  %v4622_v58 = vmul.f32 0.2, %v5671_v51 }
 0x420   : > { %v4267_v43 = vpop.f32.mrb[80].mxu0  ;;  %v4493_v6 = vpop.f32.mrb[80].mxu1  ;;  %vm4557_vm13 = vcmp.gt.f32.partialorder %v5640_v32, 0.0  ;;  %v4621_v23 = vmul.f32 0.2, %v5640_v32  ;;  %v8848_v17 = vadd.f32 %v4485_v60, %v8732_v28  ;;  %vm4558_vm0 = vcmp.gt.f32.partialorder %v5671_v51, 0.0 }
 0x421   : > { %v4269_v63 = vpop.f32.mrb[81].mxu0  ;;  %v8845_v46 = vpop.f32.mrb[81].mxu1  ;;  %v4822_v56 = vadd.f32 %v4821_v47, %v4757_v38  ;;  %v4684_v1 = vsel %vm4556_vm10, %v5639_v2, %v4620_v29  ;;  %v5673_v57 = vadd.f32 %v4487_v48, %v8729_v20  ;;  %v4763_v24 = vmul.f32 %v8747_v30, %v4677_v33 }
 0x422   : > { %v8851_v13 = vpop.f32.mrb[82].mxu0  ;;  %v8853_v39 = vpop.f32.mrb[82].mxu1  ;;  %vm4555_vm4 = vcmp.gt.f32.partialorder %v8833_v5, 0.0  ;;  %v4619_v14 = vmul.f32 0.2, %v8833_v5  ;;  %v4685_v53 = vsel %vm4557_vm13, %v5640_v32, %v4621_v23  ;;  %v4766_v54 = vmul.f32 %v8743_v16, %v4680_v12 }
 0x423   : > { %v4624_v27 = vmul.f32 0.2, %v5641_v9  ;;  %v8858_v3 = vpop.f32.mrb[83].mxu0  ;;  %v8860_v49 = vpop.f32.mrb[83].mxu1  ;;  %v4682_v0 = vsel %vm4554_vm12, %v5669_v59, %v4618_v45  ;;  %4823 = vadd.xlane.f32.xlu0 %v4822_v56  ;;  %vm4560_vm5 = vcmp.gt.f32.partialorder %v5641_v9, 0.0  ;;  %v5642_v60 = vadd.f32 %v4263_v34, %v8726_v35 }
 0x424   : > { %v4767_v4 = vmul.f32 %v8747_v30, %v4681_v15  ;;  %v8867_v42 = vmul.f32 %v8743_v16, %v4684_v1  ;;  %v8870_v48 = vsel %vm4558_vm0, %v5671_v51, %v4622_v58  ;;  %v8873_v44 = vmul.f32 0.2, %v8848_v17 }
 0x425   : > { %v8876_v18 = vmul.f32 %v8747_v30, %v4685_v53  ;;  %vm4562_vm15 = vcmp.gt.f32.partialorder %v5673_v57, 0.0  ;;  %v4626_v59 = vmul.f32 0.2, %v5673_v57  ;;  %v4675_v34 = vsel %vm4547_vm6, %v8793_v10, %v8810_v21 }
 0x426   : > { %v4688_v55 = vsel %vm4560_vm5, %v5641_v9, %v4624_v27  ;;  %v4625_v11 = vmul.f32 0.2, %v5642_v60  ;;  %v4760_v33 = vmul.f32 %v8754_v37, %v8799_v7  ;;  %v4825_v41 = vadd.f32 %v8815_v22, %v8796_v26 }
 0x427   : > { %vm4561_vm8 = vcmp.gt.f32.partialorder %v5642_v60, 0.0  ;;  %v4679_v45 = vsel %vm4551_vm2, %v8802_v52, %v8818_v40  ;;  %v4764_v10 = vmul.f32 %v8754_v37, %v8828_v61  ;;  %v4830_v21 = vadd.f32 %v4763_v24, %v8825_v36 }
 0x428   : > { %v8886_v19 = vpop.f32.mrb[84].mxu0  ;;  %v8888_v62 = vpop.f32.mrb[84].mxu1  ;;  %vm4559_vm7 = vcmp.gt.f32.partialorder %v8848_v17, 0.0  ;;  %v8904_v26 = vadd.f32 %v8821_v31, %v8732_v28  ;;  %v4761_v22 = vmul.f32 %v8758_v50, %v4675_v34  ;;  %v4826_v2 = vadd.f32 %v4825_v41, %v4760_v33 }
 0x429   : > { %v8897_v25 = vpop.f32.mrb[85].mxu0  ;;  %v8899_v7 = vpop.f32.mrb[85].mxu1  ;;  %v5643_v52 = vadd.f32 %v4267_v43, %v8723_v8  ;;  %v4765_v36 = vmul.f32 %v8758_v50, %v4679_v45  ;;  %v4831_v51 = vadd.f32 %v4830_v21, %v4764_v10  ;;  %v5675_v12 = vadd.f32 %v4493_v6, %v8729_v20 }
 0x42a   : > { %v8908_v40 = vpop.f32.mrb[86].mxu0  ;;  %v8910_v61 = vpop.f32.mrb[86].mxu1  ;;  %v5644_v15 = vadd.f32 %v4269_v63, %v8726_v35  ;;  %v8920_v9 = vmul.f32 %v8743_v16, %v4688_v55  ;;  %v4689_v43 = vsel %vm4561_vm8, %v5642_v60, %v4625_v11  ;;  %v4827_v38 = vadd.f32 %v4826_v2, %v4761_v22 }
 0x42b   : > { %v8915_v32 = vpop.f32.mrb[87].mxu0  ;;  %v8917_v31 = vpop.f32.mrb[87].mxu1  ;;  %v4628_v47 = vmul.f32 0.2, %v5643_v52  ;;  %v8924_v29 = vsel %vm4562_vm15, %v5673_v57, %v4626_v59  ;;  %v4832_v58 = vadd.f32 %v4831_v51, %v4765_v36  ;;  %vm4564_vm3 = vcmp.gt.f32.partialorder %v5643_v52, 0.0 }
 0x42c   : > { %v8928_v6 = vadd.f32 %v8845_v46, %v8732_v28  ;;  %vm4563_vm11 = vcmp.gt.f32.partialorder %v8904_v26, 0.0  ;;  %v4627_v63 = vmul.f32 0.2, %v8904_v26  ;;  %4828 = vadd.xlane.f32.xlu0 %v4827_v38  ;;  %vm4565_vm14 = vcmp.gt.f32.partialorder %v5644_v15, 0.0 }
 0x42d   : > { %v4629_v23 = vmul.f32 0.2, %v5644_v15  ;;  %v8933_v56 = vmul.f32 %v8747_v30, %v4689_v43  ;;  %4833 = vadd.xlane.f32.xlu1 %v4832_v58  ;;  %vm4566_vm6 = vcmp.gt.f32.partialorder %v5675_v12, 0.0  ;;  %v4630_v1 = vmul.f32 0.2, %v5675_v12 }
 0x42e   : > { %v4683_v57 = vsel %vm4555_vm4, %v8833_v5, %v4619_v14  ;;  %v4692_v24 = vsel %vm4564_vm3, %v5643_v52, %v4628_v47  ;;  %v4768_v46 = vmul.f32 %v8754_v37, %v4682_v0  ;;  %v4835_v53 = vadd.f32 %v4767_v4, %v4766_v54 }
 0x42f   : > { %v5645_v27 = vadd.f32 %v8851_v13, %v8723_v8  ;;  %v4693_v34 = vsel %vm4565_vm14, %v5644_v15, %v4629_v23  ;;  %v8946_v55 = vmul.f32 0.2, %v8928_v6  ;;  %v5677_v11 = vadd.f32 %v8853_v39, %v8729_v20 }
 0x430   : > { %v8941_v60 = vpop.f32.mrb[88].mxu0  ;;  %v8943_v59 = vpop.f32.mrb[88].mxu1  ;;  %v5646_v5 = vadd.f32 %v8858_v3, %v8726_v35  ;;  %v4769_v13 = vmul.f32 %v8758_v50, %v4683_v57  ;;  %v4836_v0 = vadd.f32 %v4835_v53, %v4768_v46  ;;  %v8962_v45 = vmul.f32 %v8743_v16, %v4692_v24 }
 0x431   : > { %v8952_v14 = vpop.f32.mrb[89].mxu0  ;;  %v8954_v54 = vpop.f32.mrb[89].mxu1  ;;  %vm4568_vm9 = vcmp.gt.f32.partialorder %v5645_v27, 0.0  ;;  %v4632_v4 = vmul.f32 0.2, %v5645_v27  ;;  %v8966_v3 = vadd.f32 %v8860_v49, %v8732_v28  ;;  %v8969_v10 = vsel %vm4566_vm6, %v5675_v12, %v4630_v1 }
 0x432   : > { %v8957_v33 = vpop.f32.mrb[90].mxu0  ;;  %v8959_v41 = vpop.f32.mrb[90].mxu1  ;;  %vm4569_vm1 = vcmp.gt.f32.partialorder %v5646_v5, 0.0  ;;  %v4633_v39 = vmul.f32 0.2, %v5646_v5  ;;  %v8972_v21 = vmul.f32 %v8747_v30, %v4693_v34  ;;  %vm4567_vm2 = vcmp.gt.f32.partialorder %v8928_v6, 0.0 }
 0x433   : > { %v4837_v22 = vadd.f32 %v4836_v0, %v4769_v13  ;;  %v4696_v2 = vsel %vm4568_vm9, %v5645_v27, %v4632_v4  ;;  %v8975_v52 = vpop.f32.mrb[91].mxu0  ;;  %v8977_v36 = vpop.f32.mrb[91].mxu1  ;;  %vm4570_vm12 = vcmp.gt.f32.partialorder %v5677_v11, 0.0  ;;  %v4634_v51 = vmul.f32 0.2, %v5677_v11 }
 0x434   : > { %v4687_v49 = vsel %vm4559_vm7, %v8848_v17, %v8873_v44  ;;  %v4772_v12 = vmul.f32 %v8754_v37, %v8870_v48  ;;  %v4697_v15 = vsel %vm4569_vm1, %v5646_v5, %v4633_v39  ;;  %v4840_v43 = vadd.f32 %v8876_v18, %v8867_v42 }
 0x435   : > { %4838 = vadd.xlane.f32.xlu0 %v4837_v22  ;;  %v5647_v38 = vadd.f32 %v8886_v19, %v8723_v8  ;;  %v5679_v47 = vadd.f32 %v8888_v62, %v8729_v20  ;;  %v8992_v58 = vmul.f32 %v8743_v16, %v4696_v2  ;;  %v8995_v23 = vmul.f32 0.2, %v8966_v3 }
 0x436   : > { %v5648_v17 = vadd.f32 %v8897_v25, %v8726_v35  ;;  %v9001_v48 = vadd.f32 %v8899_v7, %v8732_v28  ;;  %v4773_v42 = vmul.f32 %v8758_v50, %v4687_v49  ;;  %v4841_v44 = vadd.f32 %v4840_v43, %v4772_v12 }
 0x437   : > { %vm4572_vm10 = vcmp.gt.f32.partialorder %v5647_v38, 0.0  ;;  %v4636_v18 = vmul.f32 0.2, %v5647_v38  ;;  %v9009_v1 = vsel %vm4570_vm12, %v5677_v11, %v4634_v51  ;;  %v9012_v57 = vmul.f32 %v8747_v30, %v4697_v15 }
 0x438   : > { %v9004_v19 = vpop.f32.mrb[92].mxu0  ;;  %v9006_v62 = vpop.f32.mrb[92].mxu1  ;;  %v4637_v25 = vmul.f32 0.2, %v5648_v17  ;;  %v4691_v7 = vsel %vm4563_vm11, %v8904_v26, %v4627_v63  ;;  %vm4571_vm13 = vcmp.gt.f32.partialorder %v8966_v3, 0.0  ;;  %v4842_v24 = vadd.f32 %v4841_v44, %v4773_v42 }
 0x439   : > { %v4700_v46 = vsel %vm4572_vm10, %v5647_v38, %v4636_v18  ;;  %vm4574_vm0 = vcmp.gt.f32.partialorder %v5679_v47, 0.0  ;;  %vm4573_vm4 = vcmp.gt.f32.partialorder %v5648_v17, 0.0  ;;  %v9018_v53 = vpop.f32.mrb[93].mxu0  ;;  %v9020_v27 = vpop.f32.mrb[93].mxu1  ;;  %v4638_v34 = vmul.f32 0.2, %v5679_v47 }
 0x43a   : > { %v9023_v11 = vmul.f32 0.2, %v9001_v48  ;;  %v4776_v5 = vmul.f32 %v8754_v37, %v8924_v29  ;;  %v4845_v26 = vadd.f32 %v8933_v56, %v8920_v9  ;;  %v9029_v63 = vpop.f32.mrb[94].mxu0  ;;  %v9031_v13 = vpop.f32.mrb[94].mxu1  ;;  %4843 = vadd.xlane.f32.xlu1 %v4842_v24  ;;  %v4777_v0 = vmul.f32 %v8758_v50, %v4691_v7 }
 0x43b   : > { %v5649_v4 = vadd.f32 %v8908_v40, %v8723_v8  ;;  %v5681_v39 = vadd.f32 %v8910_v61, %v8729_v20  ;;  %v5650_v22 = vadd.f32 %v8915_v32, %v8726_v35  ;;  %v9040_v29 = vpop.f32.mrb[95].mxu0  ;;  %v9042_v2 = vpop.f32.mrb[95].mxu1  ;;  %v9045_v9 = vmul.f32 %v8743_v16, %v4700_v46 }
 0x43c   : > { %v4701_v56 = vsel %vm4573_vm4, %v5648_v17, %v4637_v25  ;;  %v4846_v51 = vadd.f32 %v4845_v26, %v4776_v5  ;;  %v9050_v49 = vadd.f32 %v8917_v31, %v8732_v28  ;;  %vm4575_vm5 = vcmp.gt.f32.partialorder %v9001_v48, 0.0 }
 0x43d   : > { %vm4576_vm15 = vcmp.gt.f32.partialorder %v5649_v4, 0.0  ;;  %v4640_v40 = vmul.f32 0.2, %v5649_v4  ;;  %vm4578_vm8 = vcmp.gt.f32.partialorder %v5681_v39, 0.0  ;;  %v4642_v61 = vmul.f32 0.2, %v5681_v39 }
 0x43e   : > { %v4702_v32 = vsel %vm4574_vm0, %v5679_v47, %v4638_v34  ;;  %v4847_v12 = vadd.f32 %v4846_v51, %v4777_v0  ;;  %v4641_v15 = vmul.f32 0.2, %v5650_v22  ;;  %v4695_v43 = vsel %vm4567_vm2, %v8928_v6, %v8946_v55 }
 0x43f   : > { %v4787_v38 = vmul.f32 %v8747_v30, %v4701_v56  ;;  %v4704_v17 = vsel %vm4576_vm15, %v5649_v4, %v4640_v40  ;;  %vm4577_vm7 = vcmp.gt.f32.partialorder %v5650_v22, 0.0  ;;  %v4780_v31 = vmul.f32 %v8754_v37, %v8969_v10 }
 0x440   : > { %4848 = vadd.xlane.f32.xlu0 %v4847_v12  ;;  %v9061_v42 = vsel %vm4578_vm8, %v5681_v39, %v4642_v61  ;;  %v4643_v44 = vmul.f32 0.2, %v9050_v49  ;;  %v4850_v47 = vadd.f32 %v8972_v21, %v8962_v45  ;;  %v5651_v18 = vadd.f32 %v8941_v60, %v8723_v8 }
 0x441   : > { %v4781_v6 = vmul.f32 %v8758_v50, %v4695_v43  ;;  %v5683_v55 = vadd.f32 %v8943_v59, %v8729_v20  ;;  %v5652_v25 = vadd.f32 %v8952_v14, %v8726_v35  ;;  %v9075_v10 = vadd.f32 %v8954_v54, %v8732_v28 }
 0x442   : > { %v4705_v7 = vsel %vm4577_vm7, %v5650_v22, %v4641_v15  ;;  %vm4579_vm3 = vcmp.gt.f32.partialorder %v9050_v49, 0.0  ;;  %v4851_v24 = vadd.f32 %v4850_v47, %v4780_v31  ;;  %vm4580_vm11 = vcmp.gt.f32.partialorder %v5651_v18, 0.0 }
 0x443   : > { %v4644_v45 = vmul.f32 0.2, %v5651_v18  ;;  %vm4582_vm14 = vcmp.gt.f32.partialorder %v5683_v55, 0.0  ;;  %v4646_v60 = vmul.f32 0.2, %v5683_v55  ;;  %vm4581_vm6 = vcmp.gt.f32.partialorder %v5652_v25, 0.0 }
 0x444   : > { %v4645_v21 = vmul.f32 0.2, %v5652_v25  ;;  %v4790_v46 = vmul.f32 %v8743_v16, %v4704_v17  ;;  %v4852_v59 = vadd.f32 %v4851_v24, %v4781_v6  ;;  %v4699_v14 = vsel %vm4571_vm13, %v8966_v3, %v8995_v23 }
 0x445   : > { %v4708_v34 = vsel %vm4580_vm11, %v5651_v18, %v4644_v45  ;;  %v4791_v54 = vmul.f32 %v8747_v30, %v4705_v7  ;;  %v9087_v26 = vsel %vm4582_vm14, %v5683_v55, %v4646_v60  ;;  %v4647_v0 = vmul.f32 0.2, %v9075_v10 }
 0x446   : > { %v9085_v5 = vmul.f32 %v8743_v16, %v4708_v34  ;;  %4853 = vadd.xlane.f32.xlu1 %v4852_v59  ;;  %v4709_v4 = vsel %vm4581_vm6, %v5652_v25, %v4645_v21  ;;  %v4784_v39 = vmul.f32 %v8754_v37, %v9009_v1  ;;  %v4855_v22 = vadd.f32 %v9012_v57, %v8992_v58 }
 0x447   : > { %v5653_v3 = vadd.f32 %v8957_v33, %v8723_v8  ;;  %v4785_v23 = vmul.f32 %v8758_v50, %v4699_v14  ;;  %v5685_v56 = vadd.f32 %v8959_v41, %v8729_v20  ;;  %v5654_v51 = vadd.f32 %v8975_v52, %v8726_v35 }
 0x448   : > { %v9103_v40 = vadd.f32 %v8977_v36, %v8732_v28  ;;  %vm4583_vm9 = vcmp.gt.f32.partialorder %v9075_v10, 0.0  ;;  %v4856_v1 = vadd.f32 %v4855_v22, %v4784_v39  ;;  %v4703_v33 = vsel %vm4575_vm5, %v9001_v48, %v9023_v11 }
 0x449   : > { %vm4584_vm1 = vcmp.gt.f32.partialorder %v5653_v3, 0.0  ;;  %v4648_v58 = vmul.f32 0.2, %v5653_v3  ;;  %vm4586_vm2 = vcmp.gt.f32.partialorder %v5685_v56, 0.0  ;;  %v4650_v57 = vmul.f32 0.2, %v5685_v56 }
 0x44a   : > { %vm4585_vm12 = vcmp.gt.f32.partialorder %v5654_v51, 0.0  ;;  %v4649_v41 = vmul.f32 0.2, %v5654_v51  ;;  %v4795_v52 = vmul.f32 %v8747_v30, %v4709_v4  ;;  %v4857_v61 = vadd.f32 %v4856_v1, %v4785_v23 }
 0x44b   : > { %v4712_v12 = vsel %vm4584_vm1, %v5653_v3, %v4648_v58  ;;  %v4788_v36 = vmul.f32 %v8754_v37, %v4702_v32  ;;  %v4714_v43 = vsel %vm4586_vm2, %v5685_v56, %v4650_v57  ;;  %v4651_v31 = vmul.f32 0.2, %v9103_v40 }
 0x44c   : > { %v4798_v15 = vmul.f32 %v8743_v16, %v4712_v12  ;;  %v4713_v17 = vsel %vm4585_vm12, %v5654_v51, %v4649_v41  ;;  %4858 = vadd.xlane.f32.xlu0 %v4857_v61  ;;  %vm4587_vm10 = vcmp.gt.f32.partialorder %v9103_v40, 0.0  ;;  %v4789_v48 = vmul.f32 %v8758_v50, %v4703_v33 }
 0x44d   : > { %v4860_v11 = vadd.f32 %v4787_v38, %v9045_v9  ;;  %v5655_v47 = vadd.f32 %v9004_v19, %v8723_v8  ;;  %v5687_v18 = vadd.f32 %v9006_v62, %v8729_v20  ;;  %v4799_v32 = vmul.f32 %v8747_v30, %v4713_v17 }
 0x44e   : > { %v5656_v6 = vadd.f32 %v9018_v53, %v8726_v35  ;;  %v5688_v55 = vadd.f32 %v9020_v27, %v8732_v28  ;;  %v4707_v25 = vsel %vm4579_vm3, %v9050_v49, %v4643_v44  ;;  %v4792_v19 = vmul.f32 %v8754_v37, %v9061_v42 }
 0x44f   : > { %v4861_v7 = vadd.f32 %v4860_v11, %v4788_v36  ;;  %vm4588_vm13 = vcmp.gt.f32.partialorder %v5655_v47, 0.0  ;;  %v4652_v9 = vmul.f32 0.2, %v5655_v47  ;;  %vm4590_vm0 = vcmp.gt.f32.partialorder %v5687_v18, 0.0 }
 0x450   : > { %v4654_v62 = vmul.f32 0.2, %v5687_v18  ;;  %vm4589_vm4 = vcmp.gt.f32.partialorder %v5656_v6, 0.0  ;;  %v4653_v38 = vmul.f32 0.2, %v5656_v6  ;;  %vm4591_vm5 = vcmp.gt.f32.partialorder %v5688_v55, 0.0 }
 0x451   : > { %v4862_v24 = vadd.f32 %v4861_v7, %v4789_v48  ;;  %v4716_v45 = vsel %vm4588_vm13, %v5655_v47, %v4652_v9  ;;  %v4655_v53 = vmul.f32 0.2, %v5688_v55  ;;  %v4793_v21 = vmul.f32 %v8758_v50, %v4707_v25 }
 0x452   : > { %v4802_v27 = vmul.f32 %v8743_v16, %v4716_v45  ;;  %v4717_v60 = vsel %vm4589_vm4, %v5656_v6, %v4653_v38  ;;  %v4865_v49 = vadd.f32 %v4791_v54, %v4790_v46  ;;  %v4718_v44 = vsel %vm4590_vm0, %v5687_v18, %v4654_v62 }
 0x453   : > { %4863 = vadd.xlane.f32.xlu1 %v4862_v24  ;;  %v5657_v59 = vadd.f32 %v9029_v63, %v8723_v8  ;;  %v5689_v42 = vadd.f32 %v9031_v13, %v8729_v20  ;;  %v5658_v34 = vadd.f32 %v9040_v29, %v8726_v35  ;;  %v4803_v14 = vmul.f32 %v8747_v30, %v4717_v60 }
 0x454   : > { %v4866_v4 = vadd.f32 %v4865_v49, %v4792_v19  ;;  %v5690_v39 = vadd.f32 %v9042_v2, %v8732_v28  ;;  %v4711_v46 = vsel %vm4583_vm9, %v9075_v10, %v4647_v0  ;;  %v4796_v35 = vmul.f32 %v8754_v37, %v9087_v26 }
 0x455   : > { %vm4592_vm15 = vcmp.gt.f32.partialorder %v5657_v59, 0.0  ;;  %v4656_v54 = vmul.f32 0.2, %v5657_v59  ;;  %vm4594_vm8 = vcmp.gt.f32.partialorder %v5689_v42, 0.0  ;;  %v4658_v8 = vmul.f32 0.2, %v5689_v42 }
 0x456   : > { %v4867_v63 = vadd.f32 %v4866_v4, %v4793_v21  ;;  %vm4593_vm7 = vcmp.gt.f32.partialorder %v5658_v34, 0.0  ;;  %v4657_v20 = vmul.f32 0.2, %v5658_v34  ;;  %vm4595_vm3 = vcmp.gt.f32.partialorder %v5690_v39, 0.0 }
 0x457   : > { %v4720_v13 = vsel %vm4592_vm15, %v5657_v59, %v4656_v54  ;;  %v4722_v29 = vsel %vm4594_vm8, %v5689_v42, %v4658_v8  ;;  %v4659_v22 = vmul.f32 0.2, %v5690_v39  ;;  %v4870_v10 = vadd.f32 %v4795_v52, %v9085_v5 }
 0x458   : > { %4868 = vadd.xlane.f32.xlu0 %v4867_v63  ;;  %v4806_v28 = vmul.f32 %v8743_v16, %v4720_v13  ;;  %v4721_v2 = vsel %vm4593_vm7, %v5658_v34, %v4657_v20  ;;  %v4715_v0 = vsel %vm4587_vm10, %v9103_v40, %v4651_v31  ;;  %v4797_v23 = vmul.f32 %v8758_v50, %v4711_v46  ;;  %v9162_v31 = vld [vmem:[#allocation2] ss:$0 sm:$0xff] }
 0x459   : > { %v4807_v3 = vmul.f32 %v8747_v30, %v4721_v2  ;;  %v4800_v26 = vmul.f32 %v8754_v37, %v4714_v43  ;;  %v4875_v56 = vadd.f32 %v4799_v32, %v4798_v15  ;;  %v4871_v51 = vadd.f32 %v4870_v10, %v4796_v35 }
 0x45a   : > { %v4719_v1 = vsel %vm4591_vm5, %v5688_v55, %v4655_v53  ;;  %v4804_v58 = vmul.f32 %v8754_v37, %v4718_v44  ;;  %v4880_v16 = vadd.f32 %v4803_v14, %v4802_v27  ;;  %v4801_v33 = vmul.f32 %v8758_v50, %v4715_v0 }
 0x45b   : > { %v4876_v5 = vadd.f32 %v4875_v56, %v4800_v26  ;;  %v4805_v57 = vmul.f32 %v8758_v50, %v4719_v1  ;;  %v4723_v40 = vsel %vm4595_vm3, %v5690_v39, %v4659_v22  ;;  %v4872_v41 = vadd.f32 %v4871_v51, %v4797_v23 }
 0x45c   : > { %v4881_v30 = vadd.f32 %v4880_v16, %v4804_v58  ;;  %v4808_v52 = vmul.f32 %v8754_v37, %v4722_v29  ;;  %v4885_v61 = vadd.f32 %v4807_v3, %v4806_v28  ;;  %v4809_v15 = vmul.f32 %v8758_v50, %v4723_v40 }
 0x45d   : > { %v4877_v12 = vadd.f32 %v4876_v5, %v4801_v33  ;;  %4873 = vadd.xlane.f32.xlu1 %v4872_v41 }
 0x45e   : > { %v4882_v36 = vadd.f32 %v4881_v30, %v4805_v57  ;;  %v4886_v43 = vadd.f32 %v4885_v61, %v4808_v52 }
 0x45f   : > { %4878 = vadd.xlane.f32.xlu0 %v4877_v12 }
 0x460   : > { %v4887_v17 = vadd.f32 %v4886_v43, %v4809_v15 }
 0x461   : > { %4883 = vadd.xlane.f32.xlu1 %v4882_v36 }
 0x463   : > { %4888 = vadd.xlane.f32.xlu0 %v4887_v17 }
 0x4a1   : > { %v4814_v48 = vpop.xlane.xlu0 %4813 }
 0x4a2   : > { %v4897_v11 = vadd.f32 %v9162_v31, %v4814_v48 }
 0x4a4   : > { %v5544_v47 = vmul.f32 -1.442695, %v4897_v11 }
 0x4a6   : > { %6405 = vpow2.f32 %v5544_v47 }
 0x4aa   : > { %v4819_v18 = vpop.xlane.xlu1 %4818 }
 0x4ab   : > { %v4898_v37 = vadd.f32 %v9162_v31, %v4819_v18 }
 0x4ad   : > { %v5545_v32 = vmul.f32 -1.442695, %v4898_v37 }
 0x4af   : > { %6407 = vpow2.f32 %v5545_v32 }
 0x4b0   : > { %v4824_v6 = vpop.xlane.xlu0 %4823  ;;  %v6406_v55 = vpop.eup %6405 }
 0x4b1   : > { %v4899_v50 = vadd.f32 %v9162_v31, %v4824_v6  ;;  %v4961_v25 = vadd.f32 1.0, %v6406_v55 }
 0x4b3   : > { %v5546_v7 = vmul.f32 -1.442695, %v4899_v50  ;;  %6409 = vrcp.f32 %v4961_v25 }
 0x4b5   : > { %6411 = vpow2.f32 %v5546_v7 }
 0x4b9   : > { %v6408_v9 = vpop.eup %6407  ;;  %v4829_v19 = vpop.xlane.xlu0 %4828 }
 0x4ba   : > { %v4962_v62 = vadd.f32 1.0, %v6408_v9  ;;  %v4900_v38 = vadd.f32 %v9162_v31, %v4829_v19  ;;  %v4834_v24 = vpop.xlane.xlu1 %4833 }
 0x4bb   : > { %v4901_v45 = vadd.f32 %v9162_v31, %v4834_v24 }
 0x4bc   : > { %6413 = vrcp.f32 %v4962_v62  ;;  %v5547_v53 = vmul.f32 -1.442695, %v4900_v38 }
 0x4bd   : > { %v5548_v27 = vmul.f32 -1.442695, %v4901_v45  ;;  %v6410_v60 = vpop.eup %6409 }
 0x4be   : > { %6415 = vpow2.f32 %v5547_v53  ;;  %5011 = vperm.xlu1 %5894, %v6410_v60  }
 0x4bf   : > { %v6412_v21 = vpop.eup %6411  ;;  %6417 = vpow2.f32 %v5548_v27 }
 0x4c0   : > { %v4963_v49 = vadd.f32 1.0, %v6412_v21 }
 0x4c2   : > { %v4839_v44 = vpop.xlane.xlu0 %4838  ;;  %6419 = vrcp.f32 %v4963_v49 }
 0x4c3   : > { %v4902_v59 = vadd.f32 %v9162_v31, %v4839_v44 }
 0x4c5   : > { %v5549_v42 = vmul.f32 -1.442695, %v4902_v59 }
 0x4c6   : > { %v6414_v34 = vpop.eup %6413 }
 0x4c7   : > { %6421 = vpow2.f32 %v5549_v42  ;;  %v4844_v14 = vpop.xlane.xlu1 %4843  ;;  %5016 = vperm.xlu0 %5893, %v6414_v34  }
 0x4c8   : > { %v6416_v4 = vpop.eup %6415  ;;  %v4903_v39 = vadd.f32 %v9162_v31, %v4844_v14 }
 0x4c9   : > { %v6418_v46 = vpop.eup %6417  ;;  %v4964_v54 = vadd.f32 1.0, %v6416_v4 }
 0x4ca   : > { %v4965_v8 = vadd.f32 1.0, %v6418_v46  ;;  %v5550_v63 = vmul.f32 -1.442695, %v4903_v39 }
 0x4cb   : > { %6423 = vrcp.f32 %v4964_v54 }
 0x4cc   : > { %v6420_v20 = vpop.eup %6419  ;;  %6425 = vrcp.f32 %v4965_v8 }
 0x4cd   : > { %v4849_v35 = vpop.xlane.xlu0 %4848  ;;  %6427 = vpow2.f32 %v5550_v63  ;;  %5021 = vperm.xlu1 %5894, %v6420_v20  }
 0x4ce   : > { %v4904_v13 = vadd.f32 %v9162_v31, %v4849_v35 }
 0x4d0   : > { %v5551_v29 = vmul.f32 -1.442695, %v4904_v13 }
 0x4d1   : > { %v6422_v22 = vpop.eup %6421 }
 0x4d2   : > { %v4966_v28 = vadd.f32 1.0, %v6422_v22  ;;  %6429 = vpow2.f32 %v5551_v29 }
 0x4d3   : > { %v4854_v2 = vpop.xlane.xlu1 %4853 }
 0x4d4   : > { %6431 = vrcp.f32 %v4966_v28  ;;  %v4905_v10 = vadd.f32 %v9162_v31, %v4854_v2 }
 0x4d5   : > { %v6424_v0 = vpop.eup %6423 }
 0x4d6   : > { %v5552_v3 = vmul.f32 -1.442695, %v4905_v10  ;;  %v6426_v23 = vpop.eup %6425  ;;  %5026 = vperm.xlu1 %5894, %v6424_v0  }
 0x4d7   : > { %v6428_v26 = vpop.eup %6427  ;;  %5031 = vperm.xlu0 %5893, %v6426_v23  }
 0x4d8   : > { %6433 = vpow2.f32 %v5552_v3  ;;  %v4967_v56 = vadd.f32 1.0, %v6428_v26 }
 0x4d9   : > { %v4859_v51 = vpop.xlane.xlu0 %4858 }
 0x4da   : > { %v4906_v1 = vadd.f32 %v9162_v31, %v4859_v51  ;;  %6435 = vrcp.f32 %v4967_v56 }
 0x4dc   : > { %v6430_v58 = vpop.eup %6429  ;;  %v5553_v16 = vmul.f32 -1.442695, %v4906_v1 }
 0x4dd   : > { %v4968_v33 = vadd.f32 1.0, %v6430_v58 }
 0x4de   : > { %v6432_v5 = vpop.eup %6431  ;;  %6437 = vpow2.f32 %v5553_v16 }
 0x4df   : > { %6439 = vrcp.f32 %v4968_v33  ;;  %5036 = vperm.xlu1 %5894, %v6432_v5  }
 0x4e0   : > { %v4864_v57 = vpop.xlane.xlu1 %4863 }
 0x4e1   : > { %v4907_v40 = vadd.f32 %v9162_v31, %v4864_v57 }
 0x4e2   : > { %v6434_v41 = vpop.eup %6433 }
 0x4e3   : > { %v5554_v30 = vmul.f32 -1.442695, %v4907_v40  ;;  %v4969_v52 = vadd.f32 1.0, %v6434_v41 }
 0x4e4   : > { %v6436_v12 = vpop.eup %6435 }
 0x4e5   : > { %6441 = vpow2.f32 %v5554_v30  ;;  %v4869_v61 = vpop.xlane.xlu0 %4868  ;;  %5041 = vperm.xlu0 %5893, %v6436_v12  }
 0x4e6   : > { %6443 = vrcp.f32 %v4969_v52  ;;  %v4908_v36 = vadd.f32 %v9162_v31, %v4869_v61 }
 0x4e8   : > { %v5555_v15 = vmul.f32 -1.442695, %v4908_v36  ;;  %v6438_v43 = vpop.eup %6437 }
 0x4e9   : > { %v6440_v17 = vpop.eup %6439  ;;  %v4970_v48 = vadd.f32 1.0, %v6438_v43 }
 0x4ea   : > { %6445 = vpow2.f32 %v5555_v15  ;;  %v4874_v11 = vpop.xlane.xlu1 %4873  ;;  %5046 = vperm.xlu1 %5894, %v6440_v17  }
 0x4eb   : > { %6447 = vrcp.f32 %v4970_v48  ;;  %v4909_v47 = vadd.f32 %v9162_v31, %v4874_v11 }
 0x4ec   : > { %v4879_v18 = vpop.xlane.xlu0 %4878 }
 0x4ed   : > { %v4910_v37 = vadd.f32 %v9162_v31, %v4879_v18  ;;  %v5556_v32 = vmul.f32 -1.442695, %v4909_v47 }
 0x4ee   : > { %v4884_v50 = vpop.xlane.xlu1 %4883 }
 0x4ef   : > { %v6442_v6 = vpop.eup %6441  ;;  %v5557_v55 = vmul.f32 -1.442695, %v4910_v37  ;;  %6449 = vpow2.f32 %v5556_v32  ;;  %v4911_v9 = vadd.f32 %v9162_v31, %v4884_v50 }
 0x4f0   : > { %v6444_v25 = vpop.eup %6443  ;;  %v4971_v7 = vadd.f32 1.0, %v6442_v6  ;;  %v4889_v19 = vpop.xlane.xlu0 %4888 }
 0x4f1   : > { %6451 = vpow2.f32 %v5557_v55  ;;  %v4912_v62 = vadd.f32 %v9162_v31, %v4889_v19  ;;  %5051 = vperm.xlu0 %5893, %v6444_v25   ;;  %v5558_v38 = vmul.f32 -1.442695, %v4911_v9 }
 0x4f2   : > { %6453 = vrcp.f32 %v4971_v7 }
 0x4f3   : > { %v5559_v24 = vmul.f32 -1.442695, %v4912_v62  ;;  %6455 = vpow2.f32 %v5558_v38 }
 0x4f4   : > { %v6446_v45 = vpop.eup %6445 }
 0x4f5   : > { %v4972_v53 = vadd.f32 1.0, %v6446_v45  ;;  %6457 = vpow2.f32 %v5559_v24  ;;  %v6448_v27 = vpop.eup %6447 }
 0x4f6   : > { %5056 = vperm.xlu1 %5894, %v6448_v27  }
 0x4f7   : > { %6459 = vrcp.f32 %v4972_v53 }
 0x4f9   : > { %v6450_v60 = vpop.eup %6449 }
 0x4fa   : > { %v4973_v49 = vadd.f32 1.0, %v6450_v60 }
 0x4fb   : > { %v6452_v21 = vpop.eup %6451 }
 0x4fc   : > { %v6454_v44 = vpop.eup %6453  ;;  %v4974_v59 = vadd.f32 1.0, %v6452_v21  ;;  %6461 = vrcp.f32 %v4973_v49 }
 0x4fd   : > { %5061 = vperm.xlu0 %5893, %v6454_v44   ;;  %v6456_v42 = vpop.eup %6455 }
 0x4fe   : > { %6463 = vrcp.f32 %v4974_v59  ;;  %v4975_v34 = vadd.f32 1.0, %v6456_v42 }
 0x4ff   : > { %v6458_v31 = vpop.eup %6457 }
 0x500   : > { %v4976_v14 = vadd.f32 1.0, %v6458_v31  ;;  %6465 = vrcp.f32 %v4975_v34 }
 0x501   : > { %v6460_v4 = vpop.eup %6459 }
 0x502   : > { %6467 = vrcp.f32 %v4976_v14  ;;  %5066 = vperm.xlu1 %5894, %v6460_v4  }
 0x506   : > { %v6462_v39 = vpop.eup %6461 }
 0x507   : > { %5071 = vperm.xlu0 %5893, %v6462_v39  }
 0x508   : > { %v6464_v46 = vpop.eup %6463 }
 0x509   : > { %5076 = vperm.xlu1 %5894, %v6464_v46  }
 0x50a   : > { %v6466_v54 = vpop.eup %6465 }
 0x50b   : > { %5081 = vperm.xlu0 %5893, %v6466_v54  }
 0x50c   : > { %v6468_v8 = vpop.eup %6467 }
 0x50d   : > { %5086 = vperm.xlu1 %5894, %v6468_v8  }
 0x53d   : > { %v5012_v63 = vpop.permute.xlu1 %5011 }
 0x53e   : > { %5089 = vst [vmem:[%s9184_s14] sm:$0xff] %v5012_v63 }
 0x546   : > { %v5017_v20 = vpop.permute.xlu0 %5016 }
 0x547   : > { %5090 = vst [vmem:[%s9184_s14 + $0x8] sm:$0xff] %v5017_v20 }
 0x54c   : > { %v5022_v35 = vpop.permute.xlu1 %5021 }
 0x54d   : > { %5091 = vst [vmem:[%s9184_s14 + $0x10] sm:$0xff] %v5022_v35 }
 0x555   : > { %v5027_v13 = vpop.permute.xlu1 %5026 }
 0x556   : > { %5092 = vst [vmem:[%s9184_s14 + $0x18] sm:$0xff] %v5027_v13  ;;  %v5032_v29 = vpop.permute.xlu0 %5031 }
 0x557   : > { %5093 = vst [vmem:[%s9184_s14 + $0x20] sm:$0xff] %v5032_v29 }
 0x55e   : > { %v5037_v22 = vpop.permute.xlu1 %5036 }
 0x55f   : > { %5094 = vst [vmem:[%s9184_s14 + $0x28] sm:$0xff] %v5037_v22 }
 0x564   : > { %v5042_v28 = vpop.permute.xlu0 %5041 }
 0x565   : > { %5095 = vst [vmem:[%s9184_s14 + $0x30] sm:$0xff] %v5042_v28 }
 0x569   : > { %v5047_v2 = vpop.permute.xlu1 %5046 }
 0x56a   : > { %5096 = vst [vmem:[%s9184_s14 + $0x38] sm:$0xff] %v5047_v2 }
 0x570   : > { %v5052_v10 = vpop.permute.xlu0 %5051 }
 0x571   : > { %5097 = vst [vmem:[%s9184_s14 + $0x40] sm:$0xff] %v5052_v10 }
 0x575   : > { %v5057_v0 = vpop.permute.xlu1 %5056 }
 0x576   : > { %5098 = vst [vmem:[%s9184_s14 + $0x48] sm:$0xff] %v5057_v0 }
 0x57c   : > { %v5062_v3 = vpop.permute.xlu0 %5061 }
 0x57d   : > { %5099 = vst [vmem:[%s9184_s14 + $0x50] sm:$0xff] %v5062_v3 }
 0x581   : > { %v5067_v23 = vpop.permute.xlu1 %5066 }
 0x582   : > { %5100 = vst [vmem:[%s9184_s14 + $0x58] sm:$0xff] %v5067_v23 }
 0x586   : > { %v5072_v26 = vpop.permute.xlu0 %5071 }
 0x587   : > { %5101 = vst [vmem:[%s9184_s14 + $0x60] sm:$0xff] %v5072_v26 }
 0x588   : > { %v5077_v56 = vpop.permute.xlu1 %5076 }
 0x589   : > { %5102 = vst [vmem:[%s9184_s14 + $0x68] sm:$0xff] %v5077_v56 }
 0x58a   : > { %v5082_v51 = vpop.permute.xlu0 %5081 }
 0x58b   : > { %5103 = vst [vmem:[%s9184_s14 + $0x70] sm:$0xff] %v5082_v51 }
 0x58c   : > { %v5087_v1 = vpop.permute.xlu1 %5086 }
 0x58d   : > { %5104 = vst [vmem:[%s9184_s14 + $0x78] sm:$0xff] %v5087_v1 }
 0x58e PF: > { %s23_s19 = sadd.s32 1, %s6475_s19  }
 0x58f   : > { %p20_p4 = scmp.ge.s32.totalorder %s23_s19, 4  }
 0x591   :  { %22 = sbr.rel (!%p20_p4) target bundleno = 3 (0x3), region = 97 }

</bundles_post_ra>
